<compile_context>
chip_gen: v7x
topology: tpu7x:2x2x1
jax: 0.10.0
libtpu: 0.0.40
codegen_flags: <defaults>
</compile_context>

<pallas_src>
import jax
import jax.numpy as jnp
from jax.experimental import pallas as pl
from jax.experimental.pallas import tpu as pltpu


def se_scale_kernel(x_se_ref, wt_ref, b_ref, x_main_ref, out_ref):
    # Lane-dense matvec on the MXU: [1, C_in] @ [C_in, C_out] -> [1, C_out].
    w = wt_ref[...].astype(jnp.float32)              # bf16 weight upcast in VMEM
    s = jnp.dot(x_se_ref[...], w, preferred_element_type=jnp.float32)
    gate_row = jax.nn.sigmoid(s + b_ref[...])        # [1, C_out], f32, lane-dense
    # Per-channel gate as a column so it broadcasts over the H*W lane axis of
    # the channel-major main tensor.  Tiny XLU transpose (free vext slot).
    gate_col = jnp.transpose(gate_row)               # [C_out, 1], f32
    # Multiply in f32; cast only the product to the output dtype.
    out_ref[...] = (x_main_ref[...] * gate_col).astype(out_ref.dtype)


def prepare_weight(weight):
    """One-time (parameter-load-time) prep of the static conv weight:
    [C_out, C_in, 1, 1] f32  ->  [C_in, C_out] bf16.  NOT in the hot path."""
    c_out, c_in = weight.shape[:2]
    return jnp.asarray(jnp.transpose(weight.reshape(c_out, c_in)),
                       dtype=jnp.bfloat16)


def _se_scale(x567, x564, w_t_bf16, bias):
    """x567: [1, C_in, 1, 1], x564: [1, C_out, H, W] (donated),
    w_t_bf16: [C_in, C_out] bf16 (pre-transposed/pre-cast), bias: [C_out]."""
    n, c_out, h, w = x564.shape
    c_in = x567.shape[1]
    assert n == 1 and x567.shape == (1, c_in, 1, 1)
    assert w_t_bf16.shape == (c_in, c_out)

    x_se_row = x567.reshape(1, c_in).astype(jnp.float32)    # [1, C_in]
    b_row = bias.reshape(1, c_out).astype(jnp.float32)      # [1, C_out]
    # Big tensor: native dtype, channel-major view (free reshape of NCHW).
    x_main = x564.reshape(c_out, h * w)                     # [C_out, H*W]

    out2d = pl.pallas_call(
        se_scale_kernel,
        out_shape=jax.ShapeDtypeStruct((c_out, h * w), x564.dtype),
        in_specs=[
            pl.BlockSpec((1, c_in), lambda: (0, 0)),
            pl.BlockSpec((c_in, c_out), lambda: (0, 0)),
            pl.BlockSpec((1, c_out), lambda: (0, 0)),
            pl.BlockSpec((c_out, h * w), lambda: (0, 0)),
        ],
        out_specs=pl.BlockSpec((c_out, h * w), lambda: (0, 0)),
        input_output_aliases={3: 0},   # output reuses x_main's HBM buffer
        compiler_params=pltpu.CompilerParams(vmem_limit_bytes=8 << 20),
    )(x_se_row, w_t_bf16, b_row, x_main)

    return out2d.reshape(n, c_out, h, w)


# Donate x564 so the pallas-level alias is actually honored (no defensive copy).
se_scale = jax.jit(_se_scale, donate_argnums=(1,))


if __name__ == "__main__":
    key = jax.random.PRNGKey(0)
    k1, k2, k3, k4 = jax.random.split(key, 4)

    C_IN, C_OUT, H, W = 76, 1824, 7, 7

    x567 = jax.random.normal(k1, (1, C_IN, 1, 1), dtype=jnp.float32)
    x564 = jax.random.normal(k2, (1, C_OUT, H, W), dtype=jnp.float32)
    # deterministic synthetic Conv2d(76, 1824, 1) parameters
    weight = jax.random.normal(k3, (C_OUT, C_IN, 1, 1), dtype=jnp.float32) * 0.05
    bias = jax.random.normal(k4, (C_OUT,), dtype=jnp.float32) * 0.05

    # One-time weight prep (outside the jitted hot path).
    w_t_bf16 = jax.block_until_ready(prepare_weight(weight))

    # Pure-JAX module reference (f32 weights), computed & materialized BEFORE
    # the donating kernel call.  bf16 weight storage in the kernel introduces
    # <~3e-3 absolute deviation from the f32 module; tolerance set accordingly.
    gate_ref = jax.nn.sigmoid(
        jnp.einsum("oc,c->o", weight.reshape(C_OUT, C_IN), x567.reshape(C_IN),
                   precision=jax.lax.Precision.HIGHEST) + bias
    )
    ref = jax.block_until_ready(gate_ref.reshape(1, C_OUT, 1, 1) * x564)

    out = se_scale(x567, x564, w_t_bf16, bias)   # x564 donated here
    out = jax.block_until_ready(out)

    assert out.shape == (1, C_OUT, H, W)
    assert jnp.allclose(out, ref, atol=2e-2, rtol=2e-2)

    print("KERNEL_OK")
</pallas_src>

<mosaic_0001>
module attributes {stable_mosaic.version = 11 : i64} {
  func.func @se_scale_kernel(%arg0: memref<1x76xf32, #tpu.memory_space<vmem>>, %arg1: memref<76x1824xbf16, #tpu.memory_space<vmem>>, %arg2: memref<1x1824xf32, #tpu.memory_space<vmem>>, %arg3: memref<1824x49xf32, #tpu.memory_space<vmem>>, %arg4: memref<1824x49xf32, #tpu.memory_space<vmem>>) attributes {dimension_semantics = [], scalar_prefetch = 0 : i64, scratch_operands = 0 : i64, tpu.core_type = #tpu.core_type<tc>} {
    %c0 = arith.constant 0 : index
    %c0_0 = arith.constant 0 : index
    %0 = vector.load %arg1[%c0, %c0_0] : memref<76x1824xbf16, #tpu.memory_space<vmem>>, vector<76x1824xbf16>
    %1 = arith.extf %0 : vector<76x1824xbf16> to vector<76x1824xf32>
    %c0_1 = arith.constant 0 : index
    %c0_2 = arith.constant 0 : index
    %2 = vector.load %arg0[%c0_1, %c0_2] : memref<1x76xf32, #tpu.memory_space<vmem>>, vector<1x76xf32>
    %cst = arith.constant dense<0.000000e+00> : vector<1x1824xf32>
    %3 = tpu.matmul %2, %1, %cst {dimension_numbers = #tpu.dot_dimension_numbers<[1], [0], [0], [1], [0, 0, 1, 1], [], []>} : vector<1x76xf32>, vector<76x1824xf32>, vector<1x1824xf32> -> vector<1x1824xf32>
    %c0_3 = arith.constant 0 : index
    %c0_4 = arith.constant 0 : index
    %4 = vector.load %arg2[%c0_3, %c0_4] : memref<1x1824xf32, #tpu.memory_space<vmem>>, vector<1x1824xf32>
    %5 = arith.addf %3, %4 : vector<1x1824xf32>
    %6 = arith.negf %5 : vector<1x1824xf32>
    %7 = math.exp %6 : vector<1x1824xf32>
    %cst_5 = arith.constant 1.000000e+00 : f32
    %8 = vector.broadcast %cst_5 : f32 to vector<1x1824xf32>
    %9 = arith.addf %8, %7 : vector<1x1824xf32>
    %10 = arith.divf %8, %9 : vector<1x1824xf32>
    %11 = tpu.transpose %10, [1, 0] : vector<1x1824xf32> -> vector<1824x1xf32>
    %c0_6 = arith.constant 0 : index
    %c0_7 = arith.constant 0 : index
    %12 = vector.load %arg3[%c0_6, %c0_7] : memref<1824x49xf32, #tpu.memory_space<vmem>>, vector<1824x49xf32>
    %13 = vector.broadcast %11 : vector<1824x1xf32> to vector<1824x49xf32>
    %14 = arith.mulf %12, %13 : vector<1824x49xf32>
    %c0_8 = arith.constant 0 : index
    %c0_9 = arith.constant 0 : index
    %15 = vector.load %arg4[%c0_8, %c0_9] : memref<1824x49xf32, #tpu.memory_space<vmem>>, vector<1824x49xf32>
    tpu.vector_store %arg4[%c0_8, %c0_9], %14 {strides = array<i32>} : memref<1824x49xf32, #tpu.memory_space<vmem>>, vector<1824x49xf32>,
    return
  }
}

</mosaic_0001>

<bundles_post_ra>
// kernel: _se_scale.1
= control target key start
LH: loop header
LB: loop body
LE: loop exit
PB: predicated region body
PF: predicated region fallthrough
CT: control target
= control target key end

     0   :  { %v3837_v1 = vmov 0.0   ;;  %vm331_vm0 = vcmask 1043456   ;;  %vm3838_vm1 = vmmov 1   ;;  %vm327_vm3 = vcmask 621568   ;;  %s6525_s1 = inlined_call_operand.vmem [shape: bf16[76,1824], index: 1, kind: input, shape index: {}]   ;;  %s6526_s0 = inlined_call_operand.vmem [shape: f32[1,76], index: 0, kind: input, shape index: {}]   ;;  %s6527_s2 = inlined_call_operand.vmem [shape: f32[1,1824], index: 2, kind: input, shape index: {}]   ;;  %s6528_s3 = inlined_call_operand.vmem [shape: f32[1824,49], index: 3, kind: input, shape index: {}, may-alias: {3,4}]   ;;  %s6529_s4 = inlined_call_operand.vmem [shape: f32[1824,49], index: 4, kind: output, shape index: {}, may-alias: {3,4}]  }
   0x1   :  { %v3667_v0 = vld [vmem:[%s6525_s1 + $0x4] ss:$60 sps:$4 sm:$0xff]   ;;  %441 = vmatprep.mubr.f32.mxu0 %v3837_v1  ;;  %512 = vmatprep.mubr.f32.mxu1 %v3837_v1  ;;  %v3669_v2 = vld [vmem:[%s6525_s1 + $0xc] ss:$60 sps:$4 sm:$0xff]   ;;  %v3673_v5 = vld [vmem:[%s6525_s1 + $0x7c] ss:$60 sps:$4 sm:$0xff]  }
   0x2   :  { %3416 = vmatprep.subr.bf16.mxu0 %v3667_v0  ;;  %v3671_v3 = vld [vmem:[%s6525_s1] ss:$60 sps:$4 sm:$0xff]   ;;  %v3672_v4 = vld [vmem:[%s6525_s1 + $0x8] ss:$60 sps:$4 sm:$0xff]   ;;  %3438 = vmatprep.subr.bf16.mxu1 %v3669_v2  ;;  %v3677_v7 = vld [vmem:[%s6525_s1 + $0x78] ss:$60 sps:$4 sm:$0xff]  }
   0x3   :  { %3418 = vmatpush1.bf16.msra.mxu0 %v3671_v3  ;;  %3440 = vmatpush1.bf16.msra.mxu1 %v3672_v4  ;;  %v3675_v6 = vld [vmem:[%s6525_s1 + $0x84] ss:$60 sps:$4 sm:$0xff]   ;;  %v3679_v9 = vld [vmem:[%s6525_s1 + $0xf4] ss:$60 sps:$4 sm:$0xff]   ;;  %v3681_v10 = vld [vmem:[%s6525_s1 + $0xfc] ss:$60 sps:$4 sm:$0xff]  }
   0x4   :  { %3420 = vmatprep.subr.bf16.mxu0 %v3673_v5  ;;  %v3678_v8 = vld [vmem:[%s6525_s1 + $0x80] ss:$60 sps:$4 sm:$0xff]   ;;  %3442 = vmatprep.subr.bf16.mxu1 %v3675_v6  ;;  %v3683_v11 = vld [vmem:[%s6525_s1 + $0xf0] ss:$60 sps:$4 sm:$0xff]   ;;  %v3684_v12 = vld [vmem:[%s6525_s1 + $0xf8] ss:$60 sps:$4 sm:$0xff]  }
   0x5   :  { %v3685_v13 = vld [vmem:[%s6525_s1 + $0x16c] ss:$60 sps:$4 sm:$0xff]   ;;  %v3687_v14 = vld [vmem:[%s6525_s1 + $0x174] ss:$60 sps:$4 sm:$0xff]   ;;  %vm3923_vm2 = vmpackc.low %vm331_vm0, %vm3838_vm1  ;;  %vm3840_vm4 = vmmov 0   ;;  %vm3110_vm5 = vcmask 400384  }
   0x6   :  { %v3689_v15 = vld [vmem:[%s6525_s1 + $0x168] ss:$60 sps:$4 sm:$0xff]   ;;  %v3690_v16 = vld [vmem:[%s6525_s1 + $0x170] ss:$60 sps:$4 sm:$0xff]   ;;  %v3943_v23 = vld [vmem:[%s6526_s0] sm:$0x1] }
   0x7   :  { %3422 = vmatpush1.bf16.msra.mxu0 %v3677_v7  ;;  %3444 = vmatpush1.bf16.msra.mxu1 %v3678_v8  ;;  %v3691_v17 = vld [vmem:[%s6525_s1 + $0x1e4] ss:$60 sps:$4 sm:$0x3f]   ;;  %v3693_v18 = vld [vmem:[%s6525_s1 + $0x1ec] ss:$60 sps:$4 sm:$0x3f]   ;;  %v252_v8 = vlaneseq }
   0x8   :  { %3424 = vmatprep.subr.bf16.mxu0 %v3679_v9  ;;  %3446 = vmatprep.subr.bf16.mxu1 %v3681_v10  ;;  %v3695_v20 = vld [vmem:[%s6525_s1 + $0x1e0] ss:$60 sps:$4 sm:$0x3f]   ;;  %v3696_v21 = vld [vmem:[%s6525_s1 + $0x1e8] ss:$60 sps:$4 sm:$0x3f]  }
   0x9   :  { %v3697_v22 = vld [vmem:[%s6525_s1 + $0x14] ss:$60 sps:$4 sm:$0xff]   ;;  %v3700_v25 = vld [vmem:[%s6525_s1 + $0x8c] ss:$60 sps:$4 sm:$0xff]   ;;  %v3712_v26 = vld [vmem:[%s6525_s1 + $0x1c] ss:$60 sps:$4 sm:$0xff]  }
   0xa   :  { %v3699_v24 = vld [vmem:[%s6525_s1 + $0x10] ss:$60 sps:$4 sm:$0xff]   ;;  %v3714_v27 = vld [vmem:[%s6525_s1 + $0x18] ss:$60 sps:$4 sm:$0xff]   ;;  %v3702_v29 = vld [vmem:[%s6525_s1 + $0x88] ss:$60 sps:$4 sm:$0xff]  }
   0xb   :  { %3426 = vmatpush1.bf16.msra.mxu0 %v3683_v11  ;;  %3448 = vmatpush1.bf16.msra.mxu1 %v3684_v12  ;;  %v3715_v28 = vld [vmem:[%s6525_s1 + $0x94] ss:$60 sps:$4 sm:$0xff]   ;;  %v3703_v30 = vld [vmem:[%s6525_s1 + $0x104] ss:$60 sps:$4 sm:$0xff]   ;;  %v3706_v33 = vld [vmem:[%s6525_s1 + $0x17c] ss:$60 sps:$4 sm:$0xff]  }
   0xc   :  { %3428 = vmatprep.subr.bf16.mxu0 %v3685_v13  ;;  %3450 = vmatprep.subr.bf16.mxu1 %v3687_v14  ;;  %v3717_v31 = vld [vmem:[%s6525_s1 + $0x90] ss:$60 sps:$4 sm:$0xff]   ;;  %v3705_v32 = vld [vmem:[%s6525_s1 + $0x100] ss:$60 sps:$4 sm:$0xff]   ;;  %v3720_v35 = vld [vmem:[%s6525_s1 + $0x108] ss:$60 sps:$4 sm:$0xff]  }
   0xd   :  { %v3718_v34 = vld [vmem:[%s6525_s1 + $0x10c] ss:$60 sps:$4 sm:$0xff]   ;;  %v3721_v36 = vld [vmem:[%s6525_s1 + $0x184] ss:$60 sps:$4 sm:$0xff]   ;;  %v3708_v37 = vld [vmem:[%s6525_s1 + $0x178] ss:$60 sps:$4 sm:$0xff]  }
   0xe   :  { %v3709_v38 = vld [vmem:[%s6525_s1 + $0x1f4] ss:$60 sps:$4 sm:$0x3f]   ;;  %v3723_v39 = vld [vmem:[%s6525_s1 + $0x180] ss:$60 sps:$4 sm:$0xff]   ;;  %v4123_v9 = vshrl.u32 %v252_v8, 7 }
   0xf   :  { %3430 = vmatpush1.bf16.msra.mxu0 %v3689_v15  ;;  %3452 = vmatpush1.bf16.msra.mxu1 %v3690_v16  ;;  %v3724_v40 = vld [vmem:[%s6525_s1 + $0x1fc] ss:$60 sps:$4 sm:$0x3f]   ;;  %v3711_v41 = vld [vmem:[%s6525_s1 + $0x1f0] ss:$60 sps:$4 sm:$0x3f]  }
  0x10   :  { %3433 = vmatprep.subr.msk.bf16.mxu0 %vm3923_vm2, %v3691_v17  ;;  %3455 = vmatprep.subr.msk.bf16.mxu1 %vm3923_vm2, %v3693_v18  ;;  %v3726_v42 = vld [vmem:[%s6525_s1 + $0x1f8] ss:$60 sps:$4 sm:$0x3f]   ;;  %v3727_v43 = vld [vmem:[%s6525_s1 + $0x24] ss:$60 sps:$4 sm:$0xff]   ;;  %v254_v10 = vsub.s32 0, %v4123_v9 }
  0x11   :  { %v3729_v44 = vld [vmem:[%s6525_s1 + $0x20] ss:$60 sps:$4 sm:$0xff]   ;;  %v3732_v46 = vld [vmem:[%s6525_s1 + $0x98] ss:$60 sps:$4 sm:$0xff]   ;;  %v3735_v48 = vld [vmem:[%s6525_s1 + $0x110] ss:$60 sps:$4 sm:$0xff]  }
  0x12   :  { %v3730_v45 = vld [vmem:[%s6525_s1 + $0x9c] ss:$60 sps:$4 sm:$0xff]   ;;  %v3733_v47 = vld [vmem:[%s6525_s1 + $0x114] ss:$60 sps:$4 sm:$0xff]   ;;  %v3736_v49 = vld [vmem:[%s6525_s1 + $0x18c] ss:$60 sps:$4 sm:$0xff]  }
  0x13   :  { %3436 = vmatpush1.bf16.msk.msra.mxu0 %vm3923_vm2, %v3695_v20  ;;  %3458 = vmatpush1.bf16.msk.msra.mxu1 %vm3923_vm2, %v3696_v21  ;;  %v3738_v50 = vld [vmem:[%s6525_s1 + $0x188] ss:$60 sps:$4 sm:$0xff]   ;;  %v3747_v55 = vld [vmem:[%s6525_s1 + $0xa0] ss:$60 sps:$4 sm:$0xff]   ;;  %v3750_v58 = vld [vmem:[%s6525_s1 + $0x118] ss:$60 sps:$4 sm:$0xff]  }
  0x14   :  { %3460 = vmatprep.subr.bf16.mxu0 %v3697_v22  ;;  %3482 = vmatprep.subr.bf16.mxu1 %v3712_v26  ;;  %v3742_v51 = vld [vmem:[%s6525_s1 + $0x2c] ss:$60 sps:$4 sm:$0xff]   ;;  %v3745_v53 = vld [vmem:[%s6525_s1 + $0xa4] ss:$60 sps:$4 sm:$0xff]   ;;  %v3748_v57 = vld [vmem:[%s6525_s1 + $0x11c] ss:$60 sps:$4 sm:$0xff]  }
  0x15   :  { %v3744_v52 = vld [vmem:[%s6525_s1 + $0x28] ss:$60 sps:$4 sm:$0xff]   ;;  %v3741_v56 = vld [vmem:[%s6525_s1 + $0x200] ss:$60 sps:$4 sm:$0x3f]   ;;  %v6534_v11 = vsub.s32 2, %v4123_v9 }
  0x16   :  { %3345 = vmatmul.mubr.msk.f32.vlgmr.msra.gmra.mrb[0].mxu0 %vm327_vm3, %v3943_v23  ;;  %3348 = vmatmul.mubr.msk.f32.vlgmr.msra.gmra.mrb[0].mxu1 %vm327_vm3, %v3943_v23  ;;  %v3739_v54 = vld [vmem:[%s6525_s1 + $0x204] ss:$60 sps:$4 sm:$0x3f]   ;;  %v3751_v59 = vld [vmem:[%s6525_s1 + $0x194] ss:$60 sps:$4 sm:$0xff]  }
  0x17   :  { %3462 = vmatpush1.bf16.msra.mxu0 %v3699_v24  ;;  %583 = vmatprep.mubr.f32.mxu0 %v3837_v1  ;;  %v3753_v60 = vld [vmem:[%s6525_s1 + $0x190] ss:$60 sps:$4 sm:$0xff]   ;;  %v3756_v2 = vld [vmem:[%s6525_s1 + $0x208] ss:$60 sps:$4 sm:$0x3f]  }
  0x18   :  { %3464 = vmatprep.subr.bf16.mxu0 %v3700_v25  ;;  %3484 = vmatpush1.bf16.msra.mxu1 %v3714_v27  ;;  %v3754_v61 = vld [vmem:[%s6525_s1 + $0x20c] ss:$60 sps:$4 sm:$0x3f]   ;;  %v3757_v62 = vld [vmem:[%s6525_s1 + $0x34] ss:$60 sps:$4 sm:$0xff]   ;;  %v4130_v12 = vld [vmem:[%s6527_s2] sm:$0xff] }
  0x19   :  { %654 = vmatprep.mubr.f32.mxu1 %v3837_v1  ;;  %3486 = vmatprep.subr.bf16.mxu1 %v3715_v28  ;;  %v3759_v63 = vld [vmem:[%s6525_s1 + $0x30] ss:$60 sps:$4 sm:$0xff]   ;;  %v3762_v3 = vld [vmem:[%s6525_s1 + $0xa8] ss:$60 sps:$4 sm:$0xff]   ;;  %v3765_v5 = vld [vmem:[%s6525_s1 + $0x120] ss:$60 sps:$4 sm:$0xff]   ;;  %v255_v13 = vrot.slane %v4130_v12, %v254_v10  ;;  %v263_v14 = vrot.slane %v4130_v12, %v6534_v11 }
  0x1a   :  { %v3760_v0 = vld [vmem:[%s6525_s1 + $0xac] ss:$60 sps:$4 sm:$0xff]   ;;  %v3763_v4 = vld [vmem:[%s6525_s1 + $0x124] ss:$60 sps:$4 sm:$0xff]   ;;  %v3766_v6 = vld [vmem:[%s6525_s1 + $0x19c] ss:$60 sps:$4 sm:$0xff]  }
  0x1b   :  { %3466 = vmatpush1.bf16.msra.mxu0 %v3702_v29  ;;  %v3768_v7 = vld [vmem:[%s6525_s1 + $0x198] ss:$60 sps:$4 sm:$0xff]  }
  0x1c   :  { %3468 = vmatprep.subr.bf16.mxu0 %v3703_v30  ;;  %3488 = vmatpush1.bf16.msra.mxu1 %v3717_v31 }
  0x1d   :  { %3490 = vmatprep.subr.bf16.mxu1 %v3718_v34  ;;  %v3771_v34 = vld [vmem:[%s6525_s1 + $0x210] ss:$60 sps:$4 sm:$0x3f]  }
  0x1f   :  { %3470 = vmatpush1.bf16.msra.mxu0 %v3705_v32 }
  0x20   :  { %3472 = vmatprep.subr.bf16.mxu0 %v3706_v33  ;;  %3492 = vmatpush1.bf16.msra.mxu1 %v3720_v35  ;;  %v3769_v33 = vld [vmem:[%s6525_s1 + $0x214] ss:$60 sps:$4 sm:$0x3f]   ;;  %v258_v35 = vsub.s32 1, %v4123_v9 }
  0x21   :  { %3494 = vmatprep.subr.bf16.mxu1 %v3721_v36  ;;  %v6533_v36 = vsub.s32 3, %v4123_v9 }
  0x23   :  { %3474 = vmatpush1.bf16.msra.mxu0 %v3708_v37  ;;  %v259_v37 = vrot.slane %v4130_v12, %v258_v35 }
  0x24   :  { %3477 = vmatprep.subr.msk.bf16.mxu0 %vm3923_vm2, %v3709_v38  ;;  %3496 = vmatpush1.bf16.msra.mxu1 %v3723_v39  ;;  %v267_v38 = vrot.slane %v4130_v12, %v6533_v36 }
  0x25   :  { %3499 = vmatprep.subr.msk.bf16.mxu1 %vm3923_vm2, %v3724_v40 }
  0x27   :  { %3480 = vmatpush1.bf16.msk.msra.mxu0 %vm3923_vm2, %v3711_v41 }
  0x28   :  { %3502 = vmatpush1.bf16.msk.msra.mxu1 %vm3923_vm2, %v3726_v42  ;;  %3504 = vmatprep.subr.bf16.mxu0 %v3727_v43 }
  0x29   :  { %3526 = vmatprep.subr.bf16.mxu1 %v3742_v51  ;;  %v3773_v51 = vld [vmem:[%s6525_s1 + $0xb0] ss:$60 sps:$4 sm:$0xff]  }
  0x2a   :  { %3351 = vmatmul.mubr.msk.f32.vlgmr.msra.gmra.mrb[2].mxu0 %vm327_vm3, %v3943_v23 }
  0x2b   :  { %725 = vmatprep.mubr.f32.mxu0 %v3837_v1  ;;  %3354 = vmatmul.mubr.msk.f32.vlgmr.msra.gmra.mrb[2].mxu1 %vm327_vm3, %v3943_v23 }
  0x2c   :  { %796 = vmatprep.mubr.f32.mxu1 %v3837_v1  ;;  %3506 = vmatpush1.bf16.msra.mxu0 %v3729_v44 }
  0x2d   :  { %3508 = vmatprep.subr.bf16.mxu0 %v3730_v45  ;;  %3528 = vmatpush1.bf16.msra.mxu1 %v3744_v52  ;;  %v3774_v52 = vld [vmem:[%s6525_s1 + $0x128] ss:$60 sps:$4 sm:$0xff]  }
  0x2e   :  { %3530 = vmatprep.subr.bf16.mxu1 %v3745_v53 }
  0x30   :  { %3510 = vmatpush1.bf16.msra.mxu0 %v3732_v46 }
  0x31   :  { %3512 = vmatprep.subr.bf16.mxu0 %v3733_v47  ;;  %3532 = vmatpush1.bf16.msra.mxu1 %v3747_v55  ;;  %v3775_v55 = vld [vmem:[%s6525_s1 + $0x1a0] ss:$60 sps:$4 sm:$0xff]  }
  0x32   :  { %3534 = vmatprep.subr.bf16.mxu1 %v3748_v57  ;;  %v6532_v57 = vsub.s32 4, %v4123_v9 }
  0x34   :  { %3514 = vmatpush1.bf16.msra.mxu0 %v3735_v48  ;;  %v3839_v48 = vmov 0.0|0.0  }
  0x35   :  { %3516 = vmatprep.subr.bf16.mxu0 %v3736_v49  ;;  %3536 = vmatpush1.bf16.msra.mxu1 %v3750_v58  ;;  %v6531_v58 = vsub.s32 5, %v4123_v9 }
  0x36   :  { %3538 = vmatprep.subr.bf16.mxu1 %v3751_v59  ;;  %v271_v59 = vrot.slane %v4130_v12, %v6532_v57 }
  0x38   :  { %3518 = vmatpush1.bf16.msra.mxu0 %v3738_v50  ;;  %v3772_v50 = vld [vmem:[%s6525_s1 + $0x38] ss:$60 sps:$4 sm:$0xff]  }
  0x39   :  { %3521 = vmatprep.subr.msk.bf16.mxu0 %vm3923_vm2, %v3739_v54  ;;  %3540 = vmatpush1.bf16.msra.mxu1 %v3753_v60  ;;  %v275_v60 = vrot.slane %v4130_v12, %v6531_v58 }
  0x3a   :  { %3543 = vmatprep.subr.msk.bf16.mxu1 %vm3923_vm2, %v3754_v61 }
  0x3c   :  { %3524 = vmatpush1.bf16.msk.msra.mxu0 %vm3923_vm2, %v3741_v56  ;;  %v3776_v56 = vld [vmem:[%s6525_s1 + $0x218] ss:$60 sps:$4 sm:$0x3f]  }
  0x3d   :  { %3548 = vmatprep.subr.bf16.mxu0 %v3757_v62  ;;  %3546 = vmatpush1.bf16.msk.msra.mxu1 %vm3923_vm2, %v3756_v2 }
  0x3e   :  { %3569 = vmatprep.subr.bf16.mxu1 %v3839_v48 }
  0x3f   :  { %3357 = vmatmul.mubr.msk.f32.vlgmr.msra.gmra.mrb[4].mxu0 %vm327_vm3, %v3943_v23 }
  0x40   :  { %867 = vmatprep.mubr.f32.mxu0 %v3837_v1  ;;  %3550 = vmatpush1.bf16.msra.mxu0 %v3759_v63 }
  0x41   :  { %3552 = vmatprep.subr.bf16.mxu0 %v3760_v0  ;;  %3360 = vmatmul.mubr.msk.f32.vlgmr.msra.gmra.mrb[4].mxu1 %vm327_vm3, %v3943_v23 }
  0x42   :  { %3571 = vmatpush3.bf16.msra.mxu1 %v3772_v50  ;;  %3412 = vmatprep.mubr.msk.f32.mxu1 %vm3840_vm4, %v3837_v1 }
  0x43   :  { %3572 = vmatprep.subr.bf16.mxu1 %v3839_v48 }
  0x44   :  { %3554 = vmatpush1.bf16.msra.mxu0 %v3762_v3 }
  0x45   :  { %3556 = vmatprep.subr.bf16.mxu0 %v3763_v4 }
  0x46   :  { %3574 = vmatpush3.bf16.msra.mxu1 %v3773_v51 }
  0x47   :  { %3575 = vmatprep.subr.bf16.mxu1 %v3839_v48 }
  0x48   :  { %3558 = vmatpush1.bf16.msra.mxu0 %v3765_v5 }
  0x49   :  { %3560 = vmatprep.subr.bf16.mxu0 %v3766_v6 }
  0x4a   :  { %3577 = vmatpush3.bf16.msra.mxu1 %v3774_v52 }
  0x4b   :  { %3578 = vmatprep.subr.bf16.mxu1 %v3839_v48 }
  0x4c   :  { %3562 = vmatpush1.bf16.msra.mxu0 %v3768_v7 }
  0x4d   :  { %3565 = vmatprep.subr.msk.bf16.mxu0 %vm3923_vm2, %v3769_v33 }
  0x4e   :  { %3580 = vmatpush3.bf16.msra.mxu1 %v3775_v55 }
  0x4f   :  { %3581 = vmatprep.subr.bf16.mxu1 %v3839_v48 }
  0x50   :  { %3568 = vmatpush1.bf16.msk.msra.mxu0 %vm3923_vm2, %v3771_v34 }
  0x52   :  { %3584 = vmatpush3.bf16.msk.msra.mxu1 %vm3923_vm2, %v3776_v56 }
  0x53   :  { %3363 = vmatmul.mubr.msk.f32.vlgmr.msra.gmra.mrb[6].mxu0 %vm327_vm3, %v3943_v23 }
  0x55   :  { %3413 = vmatmul.mubr.msk.f32.vlgmr.msra.gmra.mrb[6].mxu1 %vm327_vm3, %v3943_v23 }
  0xe9   :  { %v443_v15 = vpop.f32.mrb[0].mxu0  ;;  %v514_v16 = vpop.f32.mrb[0].mxu1 }
  0xea   :  { %v444_v17 = vadd.f32 %v443_v15, %v255_v13  ;;  %v515_v18 = vadd.f32 %v514_v16, %v263_v14  ;;  %v445_v20 = vpop.f32.mrb[1].mxu0  ;;  %v516_v21 = vpop.f32.mrb[1].mxu1 }
  0xeb   :  { %v446_v39 = vadd.f32 %v445_v20, %v259_v37  ;;  %v517_v40 = vadd.f32 %v516_v21, %v267_v38 }
  0xec   :  { %v3366_v22 = vmul.f32 -1.442695, %v444_v17  ;;  %v3368_v24 = vmul.f32 -1.442695, %v515_v18  ;;  %v6530_v17 = vsub.s32 6, %v4123_v9  ;;  %v282_v18 = vsub.s32 7, %v4123_v9 }
  0xed   :  { %v3367_v41 = vmul.f32 -1.442695, %v446_v39  ;;  %v3369_v42 = vmul.f32 -1.442695, %v517_v40 }
  0xee   :  { %3777 = vpow2.f32 %v3366_v22  ;;  %v279_v22 = vrot.slane %v4130_v12, %v6530_v17 }
  0xef   :  { %3779 = vpow2.f32 %v3368_v24  ;;  %v283_v24 = vrot.slane %v4130_v12, %v282_v18 }
  0xf8   :  { %v3778_v25 = vpop.eup %3777 }
  0xf9   :  { %v3780_v26 = vpop.eup %3779  ;;  %v989_v27 = vadd.f32 1.0, %v3778_v25 }
  0xfa   :  { %v991_v28 = vadd.f32 1.0, %v3780_v26 }
  0xfb   :  { %3781 = vrcp.f32 %v989_v27 }
  0xfc   :  { %3783 = vrcp.f32 %v991_v28 }
  0xfd   :  { %v585_v29 = vpop.f32.mrb[2].mxu0  ;;  %3785 = vpow2.f32 %v3367_v41 }
  0xfe   :  { %v587_v30 = vpop.f32.mrb[3].mxu0  ;;  %v4158_v43 = vpop.f32.mrb[2].mxu1  ;;  %3787 = vpow2.f32 %v3369_v42  ;;  %v586_v61 = vadd.f32 %v585_v29, %v271_v59 }
  0xff   :  { %v4160_v44 = vpop.f32.mrb[3].mxu1  ;;  %v588_v1 = vadd.f32 %v587_v30, %v275_v60  ;;  %v657_v27 = vadd.f32 %v4158_v43, %v279_v22 }
 0x100   :  { %v3370_v62 = vmul.f32 -1.442695, %v586_v61  ;;  %v659_v28 = vadd.f32 %v4160_v44, %v283_v24 }
 0x101   :  { %v3371_v19 = vmul.f32 -1.442695, %v588_v1 }
 0x105   :  { %v3782_v31 = vpop.eup %3781 }
 0x106   :  { %v3784_v32 = vpop.eup %3783  ;;  %1034 = vxpose.xlu0.b32.start.end [1/1] (short) %v3782_v31, 128  ;;  %v3372_v31 = vmul.f32 -1.442695, %v657_v27 }
 0x107   :  { %1098 = vxpose.xlu1.b32.start.end [1/1] (short) %v3784_v32, 128  ;;  %v3786_v45 = vpop.eup %3785  ;;  %v3373_v32 = vmul.f32 -1.442695, %v659_v28 }
 0x108   :  { %v3788_v46 = vpop.eup %3787  ;;  %v990_v47 = vadd.f32 1.0, %v3786_v45 }
 0x109   :  { %v992_v49 = vadd.f32 1.0, %v3788_v46 }
 0x10a   :  { %3789 = vrcp.f32 %v990_v47 }
 0x10b   :  { %3791 = vrcp.f32 %v992_v49 }
 0x10c   :  { %3793 = vpow2.f32 %v3370_v62 }
 0x10d   :  { %3795 = vpow2.f32 %v3371_v19 }
 0x112   :  { %v4190_v63 = vpop.f32.mrb[4].mxu0 }
 0x113   :  { %v4192_v23 = vpop.f32.mrb[5].mxu0 }
 0x114   :  { %v3790_v53 = vpop.eup %3789  ;;  %v4230_v12 = vpop.f32.mrb[4].mxu1 }
 0x115   :  { %v3792_v54 = vpop.eup %3791  ;;  %v4236_v39 = vpop.f32.mrb[5].mxu1 }
 0x116   :  { %v3794_v0 = vpop.eup %3793 }
 0x117   :  { %v3796_v2 = vpop.eup %3795  ;;  %v993_v3 = vadd.f32 1.0, %v3794_v0 }
 0x118   :  { %v994_v4 = vadd.f32 1.0, %v3796_v2 }
 0x119   :  { %3797 = vrcp.f32 %v993_v3 }
 0x11a   :  { %3799 = vrcp.f32 %v994_v4 }
 0x11b   :  { %3801 = vpow2.f32 %v3372_v31 }
 0x11c   :  { %3803 = vpow2.f32 %v3373_v32 }
 0x123   :  { %v3798_v5 = vpop.eup %3797 }
 0x124   :  { %v3800_v6 = vpop.eup %3799 }
 0x125   :  { %v3802_v42 = vpop.eup %3801 }
 0x126   :  { %v3804_v44 = vpop.eup %3803  ;;  %v995_v46 = vadd.f32 1.0, %v3802_v42 }
 0x127   :  { %v996_v47 = vadd.f32 1.0, %v3804_v44 }
 0x128   :  { %3805 = vrcp.f32 %v995_v46 }
 0x129   :  { %3807 = vrcp.f32 %v996_v47 }
 0x132   :  { %v3806_v55 = vpop.eup %3805 }
 0x133   :  { %v3808_v59 = vpop.eup %3807 }
 0x143   :  { %1066 = vxpose.xlu0.b32.start.end [1/1] (short) %v3790_v53, 128 }
 0x144   :  { %1130 = vxpose.xlu1.b32.start.end [1/1] (short) %v3792_v54, 128 }
 0x180   :  { %1162 = vxpose.xlu0.b32.start.end [1/1] (short) %v3798_v5, 128 }
 0x181   :  { %1194 = vxpose.xlu1.b32.start.end [1/1] (short) %v3800_v6, 128  ;;  %v4285_v6 = vld [vmem:[%s6527_s2 + $0x8] sm:$0x7f] }
 0x182   :  { %v287_v24 = vrot.slane %v4285_v6, %v254_v10  ;;  %v291_v27 = vrot.slane %v4285_v6, %v258_v35  ;;  %v4311_v35 = vpop.f32.mrb[6].mxu0 }
 0x183   :  { %v4313_v17 = vpop.f32.mrb[7].mxu0 }
 0x184   :  { %v728_v32 = vadd.f32 %v4190_v63, %v287_v24  ;;  %v730_v42 = vadd.f32 %v4192_v23, %v291_v27 }
 0x186   :  { %v4194_v7 = vpop.trf.xlu0  ;;  %v3374_v47 = vmul.f32 -1.442695, %v728_v32 }
 0x187   :  { %v4196_v8 = vpop.trf.xlu1 }
 0x188   :  { %3809 = vpow2.f32 %v3374_v47 }
 0x18a   :  { %v4198_v13 = vpop.trf.xlu0 }
 0x18b   :  { %v4200_v14 = vpop.trf.xlu1 }
 0x18e   :  { %v4202_v15 = vpop.trf.xlu0 }
 0x18f   :  { %v4204_v16 = vpop.trf.xlu1 }
 0x192   :  { %v4208_v20 = vpop.trf.xlu0  ;;  %v3810_v27 = vpop.eup %3809 }
 0x193   :  { %v4210_v21 = vpop.trf.xlu1  ;;  %v997_v47 = vadd.f32 1.0, %v3810_v27 }
 0x196   :  { %v4216_v25 = vpop.trf.xlu0 }
 0x197   :  { %v4218_v26 = vpop.trf.xlu1 }
 0x19a   :  { %v4222_v29 = vpop.trf.xlu0 }
 0x19b   :  { %v4224_v30 = vpop.trf.xlu1 }
 0x19e   :  { %v4226_v33 = vpop.trf.xlu0 }
 0x19f   :  { %v4228_v34 = vpop.trf.xlu1 }
 0x1a2   :  { %v4232_v37 = vpop.trf.xlu0 }
 0x1a3   :  { %v4234_v38 = vpop.trf.xlu1 }
 0x1a6   :  { %v4238_v40 = vpop.trf.xlu0 }
 0x1a7   :  { %v4240_v41 = vpop.trf.xlu1 }
 0x1aa   :  { %v4242_v43 = vpop.trf.xlu0 }
 0x1ab   :  { %v4244_v45 = vpop.trf.xlu1 }
 0x1ae   :  { %v4246_v48 = vpop.trf.xlu0 }
 0x1af   :  { %v4248_v49 = vpop.trf.xlu1 }
 0x1b2   :  { %v4250_v50 = vpop.trf.xlu0 }
 0x1b3   :  { %v4252_v51 = vpop.trf.xlu1 }
 0x1b6   :  { %v4254_v52 = vpop.trf.xlu0 }
 0x1b7   :  { %v4256_v53 = vpop.trf.xlu1 }
 0x1b8   :  { %6537 = vst [vmem:[#allocation2_spill] sm:$0xff] %v4256_v53  ;;  %v4387_v53 = vpop.f32.mrb[6].mxu1 }
 0x1ba   :  { %v4258_v54 = vpop.trf.xlu0 }
 0x1bb   :  { %v4260_v56 = vpop.trf.xlu1 }
 0x1bc   :  { %6538 = vst [vmem:[#allocation3_spill] sm:$0xff] %v4260_v56 }
 0x1be   :  { %v4262_v60 = vpop.trf.xlu0  ;;  %1226 = vxpose.xlu0.b32.start.end [1/1] (short) %v3806_v55, 128  ;;  %v3375_v55 = vmul.f32 -1.442695, %v730_v42 }
 0x1bf   :  { %v4264_v61 = vpop.trf.xlu1  ;;  %1258 = vxpose.xlu1.b32.start.end [1/1] (short) %v3808_v59, 128 }
 0x1c0   :  { %6539 = vst [vmem:[#allocation4_spill] sm:$0xff] %v4264_v61  ;;  %3811 = vpow2.f32 %v3375_v55 }
 0x1c1   :  { %3813 = vrcp.f32 %v997_v47 }
 0x1c2   :  { %v4266_v1 = vpop.trf.xlu0 }
 0x1c3   :  { %v4268_v62 = vpop.trf.xlu1 }
 0x1c4   :  { %6540 = vst [vmem:[#allocation5_spill] sm:$0xff] %v4268_v62 }
 0x1c6   :  { %v4270_v19 = vpop.trf.xlu0 }
 0x1c7   :  { %v4272_v0 = vpop.trf.xlu1 }
 0x1c8   :  { %6541 = vst [vmem:[#allocation6_spill] sm:$0xff] %v4272_v0 }
 0x1ca   :  { %v4274_v2 = vpop.trf.xlu0  ;;  %v3812_v42 = vpop.eup %3811 }
 0x1cb   :  { %v4276_v3 = vpop.trf.xlu1  ;;  %v998_v36 = vadd.f32 1.0, %v3812_v42 }
 0x1cc   :  { %6542 = vst [vmem:[#allocation7_spill] sm:$0xff] %v4276_v3 }
 0x1cd   :  { %3815 = vrcp.f32 %v998_v36 }
 0x1ce   :  { %v4278_v4 = vpop.trf.xlu0 }
 0x1cf   :  { %v4280_v5 = vpop.trf.xlu1 }
 0x1d0   :  { %6543 = vst [vmem:[#allocation8_spill] sm:$0xff] %v4280_v5 }
 0x1d2   :  { %v4287_v18 = vpop.trf.xlu0 }
 0x1d3   :  { %v4289_v22 = vpop.trf.xlu1 }
 0x1d4   :  { %6544 = vst [vmem:[#allocation9_spill] sm:$0xff] %v4289_v22  ;;  %v3814_v22 = vpop.eup %3813 }
 0x1d6   :  { %v4297_v28 = vpop.trf.xlu0 }
 0x1d7   :  { %v4299_v31 = vpop.trf.xlu1  ;;  %v3816_v27 = vpop.eup %3815 }
 0x1d8   :  { %6545 = vst [vmem:[#allocation10_spill] sm:$0xff] %v4299_v31 }
 0x1da   :  { %v4303_v44 = vpop.trf.xlu0 }
 0x1db   :  { %v4305_v46 = vpop.trf.xlu1 }
 0x1dc   :  { %6546 = vst [vmem:[#allocation11_spill] sm:$0xff] %v4305_v46 }
 0x1de   :  { %v4307_v59 = vpop.trf.xlu0 }
 0x1df   :  { %v4309_v10 = vpop.trf.xlu1 }
 0x1e0   :  { %6547 = vst [vmem:[#allocation12_spill] sm:$0xff] %v4309_v10 }
 0x1e2   :  { %v4315_v58 = vpop.trf.xlu0 }
 0x1e3   :  { %v4317_v63 = vpop.trf.xlu1 }
 0x1e4   :  { %6548 = vst [vmem:[#allocation13_spill] sm:$0xff] %v4317_v63 }
 0x1e6   :  { %v4319_v23 = vpop.trf.xlu0 }
 0x1e7   :  { %v4321_v24 = vpop.trf.xlu1 }
 0x1e8   :  { %6549 = vst [vmem:[#allocation14_spill] sm:$0xff] %v4321_v24 }
 0x1ea   :  { %v4323_v32 = vpop.trf.xlu0 }
 0x1eb   :  { %v4325_v57 = vpop.trf.xlu1 }
 0x1ec   :  { %6550 = vst [vmem:[#allocation15_spill] sm:$0xff] %v4325_v57 }
 0x1ee   :  { %v4327_v11 = vpop.trf.xlu0 }
 0x1ef   :  { %v4329_v55 = vpop.trf.xlu1 }
 0x1f0   :  { %6551 = vst [vmem:[#allocation16_spill] sm:$0xff] %v4329_v55 }
 0x1f2   :  { %v4331_v10 = vpop.trf.xlu0 }
 0x1f3   :  { %v4333_v63 = vpop.trf.xlu1 }
 0x1f4   :  { %6552 = vst [vmem:[#allocation17_spill] sm:$0xff] %v4333_v63 }
 0x1f6   :  { %v4335_v46 = vpop.trf.xlu0 }
 0x1f7   :  { %v4337_v24 = vpop.trf.xlu1 }
 0x1f8   :  { %6553 = vst [vmem:[#allocation18_spill] sm:$0xff] %v4337_v24 }
 0x1fa   :  { %v4339_v31 = vpop.trf.xlu0 }
 0x1fb   :  { %v4341_v57 = vpop.trf.xlu1 }
 0x1fc   :  { %6554 = vst [vmem:[#allocation19_spill] sm:$0xff] %v4341_v57 }
 0x1fe   :  { %v4343_v42 = vpop.trf.xlu0  ;;  %1290 = vxpose.xlu0.b32.start.end [1/1] (short) %v3814_v22, 128 }
 0x1ff   :  { %v4345_v55 = vpop.trf.xlu1  ;;  %1322 = vxpose.xlu1.b32.start.end [1/1] (short) %v3816_v27, 128  ;;  %v6565_v27 = vsub.s32 2, %v4123_v9 }
 0x200   :  { %6555 = vst [vmem:[#allocation20_spill] sm:$0xff] %v4345_v55 }
 0x202   :  { %v4347_v36 = vpop.trf.xlu0 }
 0x203   :  { %v4349_v47 = vpop.trf.xlu1 }
 0x204   :  { %6556 = vst [vmem:[#allocation21_spill] sm:$0xff] %v4349_v47  ;;  %v295_v47 = vrot.slane %v4285_v6, %v6565_v27 }
 0x206   :  { %v4351_v63 = vpop.trf.xlu0 }
 0x207   :  { %6557 = vst [vmem:[#allocation22_spill] sm:$0xff] %v4351_v63  ;;  %v4353_v5 = vpop.trf.xlu1  ;;  %v6566_v63 = vsub.s32 3, %v4123_v9 }
 0x208   :  { %6558 = vst [vmem:[#allocation23_spill] sm:$0xff] %v4353_v5 }
 0x209   :  { %v299_v5 = vrot.slane %v4285_v6, %v6566_v63  ;;  %v3414_v63 = vpop.f32.mrb[7].mxu1 }
 0x20a   :  { %v4355_v24 = vpop.trf.xlu0 }
 0x20b   :  { %6559 = vst [vmem:[#allocation24_spill] sm:$0xff] %v4355_v24  ;;  %v4357_v3 = vpop.trf.xlu1 }
 0x20c   :  { %6560 = vst [vmem:[#allocation25_spill] sm:$0xff] %v4357_v3  ;;  %v799_v3 = vadd.f32 %v4230_v12, %v295_v47 }
 0x20e   :  { %v4359_v57 = vpop.trf.xlu0 }
 0x20f   :  { %6561 = vst [vmem:[#allocation26_spill] sm:$0xff] %v4359_v57  ;;  %v4361_v0 = vpop.trf.xlu1 }
 0x210   :  { %6562 = vst [vmem:[#allocation27_spill] sm:$0xff] %v4361_v0  ;;  %v801_v0 = vadd.f32 %v4236_v39, %v299_v5 }
 0x212   :  { %v4363_v22 = vpop.trf.xlu0  ;;  %v3377_v61 = vmul.f32 -1.442695, %v801_v0 }
 0x213   :  { %6563 = vst [vmem:[#allocation28_spill] sm:$0xff] %v4363_v22  ;;  %v4365_v55 = vpop.trf.xlu1 }
 0x214   :  { %6564 = vst [vmem:[#allocation29_spill] sm:$0xff] %v4365_v55  ;;  %v3376_v55 = vmul.f32 -1.442695, %v799_v3 }
 0x216   :  { %v4373_v62 = vpop.trf.xlu0  ;;  %3817 = vpow2.f32 %v3376_v55 }
 0x217   :  { %v4375_v24 = vpop.trf.xlu1  ;;  %3819 = vpow2.f32 %v3377_v61 }
 0x218   :  { %6567 = vst [vmem:[#allocation30_spill] sm:$0xff] %v4375_v24 }
 0x21a   :  { %v4379_v57 = vpop.trf.xlu0 }
 0x21b   :  { %6568 = vst [vmem:[#allocation31_spill] sm:$0xff] %v4379_v57  ;;  %v4381_v22 = vpop.trf.xlu1 }
 0x21c   :  { %6569 = vst [vmem:[#allocation32_spill] sm:$0xff] %v4381_v22 }
 0x21e   :  { %v4383_v56 = vpop.trf.xlu0 }
 0x21f   :  { %6570 = vst [vmem:[#allocation33_spill] sm:$0xff] %v4383_v56  ;;  %v4385_v27 = vpop.trf.xlu1 }
 0x220   :  { %6571 = vst [vmem:[#allocation34_spill] sm:$0xff] %v4385_v27  ;;  %v3818_v47 = vpop.eup %3817 }
 0x221   :  { %v3820_v0 = vpop.eup %3819  ;;  %v999_v27 = vadd.f32 1.0, %v3818_v47 }
 0x222   :  { %v4389_v24 = vpop.trf.xlu0  ;;  %v1000_v56 = vadd.f32 1.0, %v3820_v0 }
 0x223   :  { %v4391_v12 = vpop.trf.xlu1  ;;  %3821 = vrcp.f32 %v999_v27 }
 0x224   :  { %6572 = vst [vmem:[#allocation35_spill] sm:$0xff] %v4391_v12  ;;  %3823 = vrcp.f32 %v1000_v56 }
 0x226   :  { %v4393_v39 = vpop.trf.xlu0 }
 0x227   :  { %6573 = vst [vmem:[#allocation36_spill] sm:$0xff] %v4393_v39  ;;  %v4395_v5 = vpop.trf.xlu1 }
 0x228   :  { %6574 = vst [vmem:[#allocation37_spill] sm:$0xff] %v4395_v5 }
 0x22a   :  { %v4397_v3 = vpop.trf.xlu0 }
 0x22b   :  { %6575 = vst [vmem:[#allocation38_spill] sm:$0xff] %v4397_v3  ;;  %v4399_v22 = vpop.trf.xlu1 }
 0x22c   :  { %6576 = vst [vmem:[#allocation39_spill] sm:$0xff] %v4399_v22 }
 0x22d   :  { %v3822_v39 = vpop.eup %3821 }
 0x22e   :  { %v4401_v57 = vpop.trf.xlu0  ;;  %v3824_v47 = vpop.eup %3823 }
 0x22f   :  { %6577 = vst [vmem:[#allocation40_spill] sm:$0xff] %v4401_v57  ;;  %v4403_v55 = vpop.trf.xlu1 }
 0x230   :  { %6578 = vst [vmem:[#allocation41_spill] sm:$0xff] %v4403_v55 }
 0x232   :  { %v4405_v61 = vpop.trf.xlu0 }
 0x233   :  { %6579 = vst [vmem:[#allocation42_spill] sm:$0xff] %v4405_v61  ;;  %v4407_v63 = vpop.trf.xlu1 }
 0x234   :  { %6580 = vst [vmem:[#allocation43_spill] sm:$0xff] %v4407_v63 }
 0x236   :  { %v4409_v12 = vpop.trf.xlu0 }
 0x237   :  { %6581 = vst [vmem:[#allocation44_spill] sm:$0xff] %v4409_v12  ;;  %v4411_v5 = vpop.trf.xlu1 }
 0x238   :  { %6582 = vst [vmem:[#allocation45_spill] sm:$0xff] %v4411_v5 }
 0x23a   :  { %v4413_v3 = vpop.trf.xlu0 }
 0x23b   :  { %6583 = vst [vmem:[#allocation46_spill] sm:$0xff] %v4413_v3  ;;  %v4415_v22 = vpop.trf.xlu1 }
 0x23c   :  { %6584 = vst [vmem:[#allocation47_spill] sm:$0xff] %v4415_v22 }
 0x23e   :  { %v4417_v0 = vpop.trf.xlu0  ;;  %1354 = vxpose.xlu0.b32.start.end [1/1] (short) %v3822_v39, 128 }
 0x23f   :  { %6585 = vst [vmem:[#allocation48_spill] sm:$0xff] %v4417_v0  ;;  %v4419_v55 = vpop.trf.xlu1  ;;  %1386 = vxpose.xlu1.b32.start.end [1/1] (short) %v3824_v47, 128  ;;  %v6597_v47 = vsub.s32 4, %v4123_v9 }
 0x240   :  { %6586 = vst [vmem:[#allocation49_spill] sm:$0xff] %v4419_v55 }
 0x242   :  { %v4421_v56 = vpop.trf.xlu0 }
 0x243   :  { %6587 = vst [vmem:[#allocation50_spill] sm:$0xff] %v4421_v56  ;;  %v4423_v27 = vpop.trf.xlu1 }
 0x244   :  { %6588 = vst [vmem:[#allocation51_spill] sm:$0xff] %v4423_v27  ;;  %v303_v27 = vrot.slane %v4285_v6, %v6597_v47 }
 0x246   :  { %v4425_v63 = vpop.trf.xlu0 }
 0x247   :  { %6589 = vst [vmem:[#allocation52_spill] sm:$0xff] %v4425_v63  ;;  %v4427_v12 = vpop.trf.xlu1  ;;  %v6598_v63 = vsub.s32 5, %v4123_v9 }
 0x248   :  { %6590 = vst [vmem:[#allocation53_spill] sm:$0xff] %v4427_v12 }
 0x249   :  { %v307_v12 = vrot.slane %v4285_v6, %v6598_v63 }
 0x24a   :  { %v4429_v5 = vpop.trf.xlu0 }
 0x24b   :  { %6591 = vst [vmem:[#allocation54_spill] sm:$0xff] %v4429_v5  ;;  %v4431_v3 = vpop.trf.xlu1 }
 0x24c   :  { %6592 = vst [vmem:[#allocation55_spill] sm:$0xff] %v4431_v3  ;;  %v870_v3 = vadd.f32 %v4311_v35, %v303_v27 }
 0x24e   :  { %v4433_v22 = vpop.trf.xlu0 }
 0x24f   :  { %6593 = vst [vmem:[#allocation56_spill] sm:$0xff] %v4433_v22  ;;  %v4435_v61 = vpop.trf.xlu1 }
 0x250   :  { %6594 = vst [vmem:[#allocation57_spill] sm:$0xff] %v4435_v61  ;;  %v872_v61 = vadd.f32 %v4313_v17, %v307_v12 }
 0x252   :  { %v4437_v39 = vpop.trf.xlu0  ;;  %v3379_v0 = vmul.f32 -1.442695, %v872_v61 }
 0x253   :  { %6595 = vst [vmem:[#allocation58_spill] sm:$0xff] %v4437_v39  ;;  %v4439_v55 = vpop.trf.xlu1 }
 0x254   :  { %6596 = vst [vmem:[#allocation59_spill] sm:$0xff] %v4439_v55  ;;  %v3378_v55 = vmul.f32 -1.442695, %v870_v3 }
 0x256   :  { %v4447_v56 = vpop.trf.xlu0  ;;  %3825 = vpow2.f32 %v3378_v55 }
 0x257   :  { %6599 = vst [vmem:[#allocation60_spill] sm:$0xff] %v4447_v56  ;;  %v4449_v5 = vpop.trf.xlu1  ;;  %3827 = vpow2.f32 %v3379_v0 }
 0x258   :  { %6600 = vst [vmem:[#allocation61_spill] sm:$0xff] %v4449_v5 }
 0x25a   :  { %v4453_v22 = vpop.trf.xlu0 }
 0x25b   :  { %v4455_v39 = vpop.trf.xlu1 }
 0x25c   :  { %6601 = vst [vmem:[#allocation62_spill] sm:$0xff] %v4455_v39 }
 0x25e   :  { %v4457_v57 = vpop.trf.xlu0 }
 0x25f   :  { %6602 = vst [vmem:[#allocation63_spill] sm:$0xff] %v4457_v57  ;;  %v4459_v47 = vpop.trf.xlu1 }
 0x260   :  { %6603 = vst [vmem:[#allocation64_spill] sm:$0xff] %v4459_v47  ;;  %v3826_v17 = vpop.eup %3825 }
 0x261   :  { %v3828_v27 = vpop.eup %3827  ;;  %v1001_v61 = vadd.f32 1.0, %v3826_v17 }
 0x262   :  { %v4461_v63 = vpop.trf.xlu0  ;;  %v1002_v39 = vadd.f32 1.0, %v3828_v27 }
 0x263   :  { %v4463_v56 = vpop.trf.xlu1  ;;  %3829 = vrcp.f32 %v1001_v61 }
 0x264   :  { %6604 = vst [vmem:[#allocation65_spill] sm:$0xff] %v4463_v56  ;;  %3831 = vrcp.f32 %v1002_v39 }
 0x266   :  { %v4465_v5 = vpop.trf.xlu0 }
 0x267   :  { %6605 = vst [vmem:[#allocation66_spill] sm:$0xff] %v4465_v5  ;;  %v4467_v35 = vpop.trf.xlu1 }
 0x268   :  { %6606 = vst [vmem:[#allocation67_spill] sm:$0xff] %v4467_v35 }
 0x26a   :  { %v4469_v12 = vpop.trf.xlu0 }
 0x26b   :  { %6607 = vst [vmem:[#allocation68_spill] sm:$0xff] %v4469_v12  ;;  %v4471_v3 = vpop.trf.xlu1 }
 0x26c   :  { %6608 = vst [vmem:[#allocation69_spill] sm:$0xff] %v4471_v3 }
 0x26d   :  { %v3830_v5 = vpop.eup %3829 }
 0x26e   :  { %v4473_v57 = vpop.trf.xlu0  ;;  %v3832_v17 = vpop.eup %3831 }
 0x26f   :  { %v4475_v55 = vpop.trf.xlu1 }
 0x270   :  { %6609 = vst [vmem:[#allocation70_spill] sm:$0xff] %v4475_v55 }
 0x272   :  { %v4477_v0 = vpop.trf.xlu0 }
 0x273   :  { %6610 = vst [vmem:[#allocation71_spill] sm:$0xff] %v4477_v0  ;;  %v4479_v56 = vpop.trf.xlu1 }
 0x274   :  { %6611 = vst [vmem:[#allocation72_spill] sm:$0xff] %v4479_v56 }
 0x276   :  { %v4481_v47 = vpop.trf.xlu0 }
 0x277   :  { %6612 = vst [vmem:[#allocation73_spill] sm:$0xff] %v4481_v47  ;;  %v4483_v35 = vpop.trf.xlu1 }
 0x278   :  { %6613 = vst [vmem:[#allocation74_spill] sm:$0xff] %v4483_v35 }
 0x27a   :  { %v4485_v12 = vpop.trf.xlu0 }
 0x27b   :  { %6614 = vst [vmem:[#allocation75_spill] sm:$0xff] %v4485_v12  ;;  %v4487_v3 = vpop.trf.xlu1 }
 0x27c   :  { %6615 = vst [vmem:[#allocation76_spill] sm:$0xff] %v4487_v3 }
 0x27e   :  { %v4489_v27 = vpop.trf.xlu0  ;;  %1418 = vxpose.xlu0.b32.start.end [1/1] (short) %v3830_v5, 128  ;;  %v6625_v5 = vsub.s32 6, %v4123_v9 }
 0x27f   :  { %v4491_v55 = vpop.trf.xlu1  ;;  %1450 = vxpose.xlu1.b32.start.end [1/1] (short) %v3832_v17, 128 }
 0x280   :  { %6616 = vst [vmem:[#allocation77_spill] sm:$0xff] %v4491_v55  ;;  %v311_v17 = vrot.slane %v4285_v6, %v6625_v5 }
 0x282   :  { %v4493_v39 = vpop.trf.xlu0 }
 0x283   :  { %6617 = vst [vmem:[#allocation78_spill] sm:$0xff] %v4493_v39  ;;  %v4495_v61 = vpop.trf.xlu1 }
 0x284   :  { %6618 = vst [vmem:[#allocation79_spill] sm:$0xff] %v4495_v61 }
 0x286   :  { %v4497_v56 = vpop.trf.xlu0 }
 0x287   :  { %6619 = vst [vmem:[#allocation80_spill] sm:$0xff] %v4497_v56  ;;  %v4499_v47 = vpop.trf.xlu1  ;;  %v941_v56 = vadd.f32 %v4387_v53, %v311_v17 }
 0x288   :  { %6620 = vst [vmem:[#allocation81_spill] sm:$0xff] %v4499_v47 }
 0x28a   :  { %v4501_v35 = vpop.trf.xlu0 }
 0x28b   :  { %6621 = vst [vmem:[#allocation82_spill] sm:$0xff] %v4501_v35  ;;  %v4503_v12 = vpop.trf.xlu1  ;;  %v3380_v35 = vmul.f32 -1.442695, %v941_v56 }
 0x28c   :  { %6622 = vst [vmem:[#allocation83_spill] sm:$0xff] %v4503_v12 }
 0x28d   :  { %3833 = vpow2.f32 %v3380_v35 }
 0x28e   :  { %v4505_v3 = vpop.trf.xlu0 }
 0x28f   :  { %6623 = vst [vmem:[#allocation84_spill] sm:$0xff] %v4505_v3  ;;  %v4507_v0 = vpop.trf.xlu1 }
 0x290   :  { %6624 = vst [vmem:[#allocation85_spill] sm:$0xff] %v4507_v0  ;;  %v3841_v0 = vmov 0  }
 0x292   :  { %v4512_v55 = vpop.trf.xlu0 }
 0x293   :  { %v4514_v39 = vpop.trf.xlu1 }
 0x294   :  { %6626 = vst [vmem:[#allocation86_spill] sm:$0xff] %v4514_v39 }
 0x296   :  { %v4517_v61 = vpop.trf.xlu0 }
 0x297   :  { %6627 = vst [vmem:[#allocation87_spill] sm:$0xff] %v4517_v61  ;;  %v4519_v47 = vpop.trf.xlu1  ;;  %v3834_v17 = vpop.eup %3833 }
 0x298   :  { %6628 = vst [vmem:[#allocation88_spill] sm:$0xff] %v4519_v47  ;;  %v1003_v56 = vadd.f32 1.0, %v3834_v17 }
 0x29a   :  { %v4521_v12 = vpop.trf.xlu0  ;;  %3835 = vrcp.f32 %v1003_v56 }
 0x29b   :  { %6629 = vst [vmem:[#allocation89_spill] sm:$0xff] %v4521_v12  ;;  %v4523_v3 = vpop.trf.xlu1 }
 0x29c   :  { %6630 = vst [vmem:[#allocation90_spill] sm:$0xff] %v4523_v3 }
 0x29d   :  { %3665 = vset.pattern.permute.xlu1 %v3841_v0 }
 0x29e   :  { %v4525_v9 = vpop.trf.xlu0 }
 0x29f   :  { %6631 = vst [vmem:[#allocation91_spill] sm:$0xff] %v4525_v9  ;;  %v4527_v6 = vpop.trf.xlu1 }
 0x2a0   :  { %6632 = vst [vmem:[#allocation92_spill] sm:$0xff] %v4527_v6 }
 0x2a2   :  { %v4529_v5 = vpop.trf.xlu0 }
 0x2a3   :  { %6633 = vst [vmem:[#allocation93_spill] sm:$0xff] %v4529_v5  ;;  %v4531_v39 = vpop.trf.xlu1 }
 0x2a4   :  { %6634 = vst [vmem:[#allocation94_spill] sm:$0xff] %v4531_v39  ;;  %v3836_v61 = vpop.eup %3835 }
 0x2a6   :  { %v4533_v53 = vpop.trf.xlu0 }
 0x2a7   :  { %6635 = vst [vmem:[#allocation95_spill] sm:$0xff] %v4533_v53  ;;  %v4535_v47 = vpop.trf.xlu1 }
 0x2a8   :  { %6636 = vst [vmem:[#allocation96_spill] sm:$0xff] %v4535_v47 }
 0x2aa   :  { %v4537_v12 = vpop.trf.xlu0 }
 0x2ab   :  { %v4539_v3 = vpop.trf.xlu1 }
 0x2ac   :  { %6637 = vst [vmem:[#allocation97_spill] sm:$0xff] %v4539_v3 }
 0x2ae   :  { %v4541_v35 = vpop.trf.xlu0 }
 0x2af   :  { %6638 = vst [vmem:[#allocation98_spill] sm:$0xff] %v4541_v35  ;;  %v4543_v9 = vpop.trf.xlu1 }
 0x2b0   :  { %6639 = vst [vmem:[#allocation99_spill] sm:$0xff] %v4543_v9 }
 0x2b2   :  { %v4545_v6 = vpop.trf.xlu0 }
 0x2b3   :  { %6640 = vst [vmem:[#allocation100_spill] sm:$0xff] %v4545_v6  ;;  %v4547_v5 = vpop.trf.xlu1 }
 0x2b4   :  { %6641 = vst [vmem:[#allocation101_spill] sm:$0xff] %v4547_v5 }
 0x2b6   :  { %v4549_v39 = vpop.trf.xlu0 }
 0x2b7   :  { %6642 = vst [vmem:[#allocation102_spill] sm:$0xff] %v4549_v39  ;;  %v4551_v53 = vpop.trf.xlu1 }
 0x2b8   :  { %6643 = vst [vmem:[#allocation103_spill] sm:$0xff] %v4551_v53 }
 0x2ba   :  { %v4553_v47 = vpop.trf.xlu0 }
 0x2bb   :  { %6644 = vst [vmem:[#allocation104_spill] sm:$0xff] %v4553_v47  ;;  %1482 = vxpose.xlu0.b32.start.end [1/1] (short) (narrow) %v3836_v61, 32  ;;  %v4555_v17 = vpop.trf.xlu1 }
 0x2bc   :  { %6645 = vst [vmem:[#allocation105_spill] sm:$0xff] %v4555_v17 }
 0x2be   :  { %v4557_v3 = vpop.trf.xlu0 }
 0x2bf   :  { %6646 = vst [vmem:[#allocation106_spill] sm:$0xff] %v4557_v3  ;;  %v4559_v56 = vpop.trf.xlu1 }
 0x2c0   :  { %6647 = vst [vmem:[#allocation107_spill] sm:$0xff] %v4559_v56 }
 0x2c2   :  { %v4561_v35 = vpop.trf.xlu0 }
 0x2c3   :  { %6648 = vst [vmem:[#allocation108_spill] sm:$0xff] %v4561_v35  ;;  %v4563_v9 = vpop.trf.xlu1 }
 0x2c6   :  { %v4565_v6 = vpop.trf.xlu0 }
 0x2c7   :  { %6649 = vst [vmem:[#allocation109_spill] sm:$0xff] %v4565_v6  ;;  %v4567_v5 = vpop.trf.xlu1 }
 0x2c8   :  { %6650 = vst [vmem:[#allocation110_spill] sm:$0xff] %v4567_v5 }
 0x2ca   :  { %v4569_v39 = vpop.trf.xlu0 }
 0x2cb   :  { %v4571_v53 = vpop.trf.xlu1 }
 0x2cc   :  { %6651 = vst [vmem:[#allocation111_spill] sm:$0xff] %v4571_v53 }
 0x2ce   :  { %v4573_v47 = vpop.trf.xlu0 }
 0x2cf   :  { %6652 = vst [vmem:[#allocation112_spill] sm:$0xff] %v4573_v47  ;;  %v4575_v61 = vpop.trf.xlu1 }
 0x2d0   :  { %6653 = vst [vmem:[#allocation113_spill] sm:$0xff] %v4575_v61 }
 0x2d2   :  { %v4577_v17 = vpop.trf.xlu0 }
 0x2d3   :  { %v4579_v3 = vpop.trf.xlu1 }
 0x2d4   :  { %6654 = vst [vmem:[#allocation114_spill] sm:$0xff] %v4579_v3 }
 0x2d6   :  { %v4581_v56 = vpop.trf.xlu0 }
 0x2d7   :  { %v4583_v35 = vpop.trf.xlu1 }
 0x2d8   :  { %6655 = vst [vmem:[#allocation115_spill] sm:$0xff] %v4583_v35 }
 0x2d9   :  { %1744 = vperm.xlu1 %3665, %v4194_v7  }
 0x2da   :  { %v4586_v6 = vpop.trf.xlu0 }
 0x2db   :  { %v4588_v5 = vpop.trf.xlu1 }
 0x2dc   :  { %6656 = vst [vmem:[#allocation116_spill] sm:$0xff] %v4588_v5 }
 0x2dd   :  { %1754 = vperm.xlu1 %3665, %v4202_v15  }
 0x2de   :  { %v4591_v53 = vpop.trf.xlu0 }
 0x2df   :  { %v4593_v47 = vpop.trf.xlu1 }
 0x2e0   :  { %6657 = vst [vmem:[#allocation117_spill] sm:$0xff] %v4593_v47 }
 0x2e1   :  { %1759 = vperm.xlu1 %3665, %v4208_v20  }
 0x2e2   :  { %v4596_v61 = vpop.trf.xlu0 }
 0x2e3   :  { %v4598_v3 = vpop.trf.xlu1 }
 0x2e4   :  { %3666 = vset.pattern.permute.xlu0 %v3841_v0 }
 0x2e5   :  { %1764 = vperm.xlu1 %3665, %v4216_v25  }
 0x2e6   :  { %v4601_v7 = vpop.trf.xlu0 }
 0x2e7   :  { %v4603_v35 = vpop.trf.xlu1 }
 0x2e9   :  { %1769 = vperm.xlu1 %3665, %v4222_v29  }
 0x2ea   :  { %v4606_v15 = vpop.trf.xlu0 }
 0x2eb   :  { %v4608_v5 = vpop.trf.xlu1 }
 0x2ec   :  { %6658 = vst [vmem:[#allocation118_spill] sm:$0xff] %v4608_v5 }
 0x2ed   :  { %1774 = vperm.xlu1 %3665, %v4226_v33  }
 0x2ee   :  { %v4611_v20 = vpop.trf.xlu0 }
 0x2ef   :  { %v4613_v47 = vpop.trf.xlu1 }
 0x2f0   :  { %1749 = vperm.xlu0 %3666, %v4198_v13  }
 0x2f1   :  { %1779 = vperm.xlu1 %3665, %v4232_v37  }
 0x2f2   :  { %v4617_v25 = vpop.trf.xlu0 }
 0x2f3   :  { %v4619_v0 = vpop.trf.xlu1 }
 0x2f4   :  { %1784 = vperm.xlu0 %3666, %v4238_v40  }
 0x2f5   :  { %1789 = vperm.xlu1 %3665, %v4242_v43  }
 0x2f6   :  { %v4623_v29 = vpop.trf.xlu0 }
 0x2f7   :  { %v4625_v5 = vpop.trf.xlu1 }
 0x2f8   :  { %1794 = vperm.xlu0 %3666, %v4246_v48  }
 0x2f9   :  { %1799 = vperm.xlu1 %3665, %v4250_v50  }
 0x2fa   :  { %v4629_v33 = vpop.trf.xlu0 }
 0x2fb   :  { %v4631_v13 = vpop.trf.xlu1 }
 0x2fc   :  { %1804 = vperm.xlu0 %3666, %v4254_v52  }
 0x2fd   :  { %1809 = vperm.xlu1 %3665, %v4258_v54  }
 0x2fe   :  { %v4635_v37 = vpop.trf.xlu0 }
 0x2ff   :  { %v4637_v40 = vpop.trf.xlu1 }
 0x300   :  { %1814 = vperm.xlu0 %3666, %v4262_v60  }
 0x301   :  { %1819 = vperm.xlu1 %3665, %v4266_v1  }
 0x302   :  { %v4641_v43 = vpop.trf.xlu0 }
 0x303   :  { %v4643_v48 = vpop.trf.xlu1 }
 0x304   :  { %1824 = vperm.xlu0 %3666, %v4270_v19  }
 0x305   :  { %1829 = vperm.xlu1 %3665, %v4274_v2  }
 0x306   :  { %v4647_v50 = vpop.trf.xlu0 }
 0x307   :  { %v4649_v52 = vpop.trf.xlu1 }
 0x308   :  { %1834 = vperm.xlu0 %3666, %v4278_v4  }
 0x309   :  { %1839 = vperm.xlu1 %3665, %v4287_v18  }
 0x30a   :  { %v4653_v54 = vpop.trf.xlu0 }
 0x30b   :  { %v4655_v60 = vpop.trf.xlu1 }
 0x30c   :  { %1844 = vperm.xlu0 %3666, %v4297_v28  }
 0x30d   :  { %1849 = vperm.xlu1 %3665, %v4303_v44  }
 0x30e   :  { %v4659_v1 = vpop.trf.xlu0 }
 0x30f   :  { %v4661_v19 = vpop.trf.xlu1 }
 0x310   :  { %1854 = vperm.xlu0 %3666, %v4307_v59  }
 0x311   :  { %1859 = vperm.xlu1 %3665, %v4315_v58  }
 0x312   :  { %v4665_v2 = vpop.trf.xlu0 }
 0x313   :  { %v4667_v4 = vpop.trf.xlu1 }
 0x314   :  { %1864 = vperm.xlu0 %3666, %v4319_v23  }
 0x315   :  { %1869 = vperm.xlu1 %3665, %v4323_v32  }
 0x316   :  { %v4671_v18 = vpop.trf.xlu0 }
 0x317   :  { %v4673_v28 = vpop.trf.xlu1 }
 0x318   :  { %1874 = vperm.xlu0 %3666, %v4327_v11  }
 0x319   :  { %1879 = vperm.xlu1 %3665, %v4331_v10  }
 0x31a   :  { %v4677_v44 = vpop.trf.xlu0 }
 0x31b   :  { %v4679_v59 = vpop.trf.xlu1 }
 0x31c   :  { %1884 = vperm.xlu0 %3666, %v4335_v46  }
 0x31d   :  { %1889 = vperm.xlu1 %3665, %v4339_v31  }
 0x31e   :  { %v4683_v58 = vpop.trf.xlu0 }
 0x31f   :  { %v4685_v23 = vpop.trf.xlu1 }
 0x320   :  { %6659 = vst [vmem:[#allocation119_spill] sm:$0xff] %v4685_v23  ;;  %1894 = vperm.xlu0 %3666, %v4343_v42  }
 0x321   :  { %1899 = vperm.xlu1 %3665, %v4347_v36   ;;  %v6669_v36 = vld [vmem:[#allocation5_spill] sm:$0xff] }
 0x322   :  { %v4689_v32 = vpop.trf.xlu0 }
 0x323   :  { %v4691_v11 = vpop.trf.xlu1 }
 0x324   :  { %6660 = vst [vmem:[#allocation120_spill] sm:$0xff] %v4691_v11  ;;  %1904 = vperm.xlu0 %3666, %v4196_v8   ;;  %v6687_v11 = vld [vmem:[#allocation19_spill] sm:$0xff] }
 0x325   :  { %1909 = vperm.xlu1 %3665, %v4200_v14  }
 0x326   :  { %v4695_v10 = vpop.trf.xlu0 }
 0x327   :  { %v4698_v31 = vpop.trf.xlu1 }
 0x328   :  { %1914 = vperm.xlu0 %3666, %v4204_v16   ;;  %6661 = vst [vmem:[#allocation121_spill] sm:$0xff] %v4698_v31 }
 0x329   :  { %1919 = vperm.xlu1 %3665, %v4210_v21  }
 0x32a   :  { %v4703_v46 = vpop.trf.xlu0 }
 0x32b   :  { %v4705_v42 = vpop.trf.xlu1 }
 0x32c   :  { %1924 = vperm.xlu0 %3666, %v4218_v26   ;;  %6662 = vst [vmem:[#allocation122_spill] sm:$0xff] %v4705_v42  ;;  %v6665_v26 = vld [vmem:[#allocation2_spill] sm:$0xff] }
 0x32d   :  { %1929 = vperm.xlu1 %3665, %v4224_v30   ;;  %v6666_v30 = vld [vmem:[#allocation3_spill] sm:$0xff]  ;;  %v6675_v42 = vld [vmem:[#allocation10_spill] sm:$0xff] }
 0x32e   :  { %v4709_v8 = vpop.trf.xlu0 }
 0x32f   :  { %v4712_v14 = vpop.trf.xlu1 }
 0x330   :  { %1934 = vperm.xlu0 %3666, %v4228_v34   ;;  %6663 = vst [vmem:[#allocation123_spill] sm:$0xff] %v4712_v14 }
 0x331   :  { %1939 = vperm.xlu1 %3665, %v4234_v38   ;;  %v6667_v38 = vld [vmem:[#allocation4_spill] sm:$0xff] }
 0x332   :  { %v4717_v16 = vpop.trf.xlu0 }
 0x333   :  { %v4719_v21 = vpop.trf.xlu1 }
 0x334   :  { %1944 = vperm.xlu0 %3666, %v4240_v41   ;;  %6664 = vst [vmem:[#allocation124_spill] sm:$0xff] %v4719_v21  ;;  %v6673_v21 = vld [vmem:[#allocation8_spill] sm:$0xff] }
 0x335   :  { %1949 = vperm.xlu1 %3665, %v4244_v45   ;;  %v6670_v45 = vld [vmem:[#allocation6_spill] sm:$0xff] }
 0x336   :  { %v4723_v34 = vpop.trf.xlu0 }
 0x337   :  { %v4726_v41 = vpop.trf.xlu1 }
 0x338   :  { %1954 = vperm.xlu0 %3666, %v4248_v49   ;;  %6668 = vst [vmem:[#allocation2_spill] sm:$0xff] %v4726_v41  ;;  %v6671_v49 = vld [vmem:[#allocation7_spill] sm:$0xff] }
 0x339   :  { %1959 = vperm.xlu1 %3665, %v4252_v51   ;;  %v6677_v41 = vld [vmem:[#allocation11_spill] sm:$0xff] }
 0x33a   :  { %v4731_v51 = vpop.trf.xlu0 }
 0x33b   :  { %v4733_v14 = vpop.trf.xlu1 }
 0x33c   :  { %1964 = vperm.xlu0 %3666, %v6665_v26   ;;  %6672 = vst [vmem:[#allocation3_spill] sm:$0xff] %v4733_v14  ;;  %v6674_v26 = vld [vmem:[#allocation9_spill] sm:$0xff]  ;;  %v6681_v14 = vld [vmem:[#allocation14_spill] sm:$0xff] }
 0x33d   :  { %1969 = vperm.xlu1 %3665, %v6666_v30  }
 0x33e   :  { %v4737_v30 = vpop.trf.xlu0 }
 0x340   :  { %1974 = vperm.xlu0 %3666, %v6667_v38   ;;  %v4740_v38 = vpop.trf.xlu1 }
 0x341   :  { %1979 = vperm.xlu1 %3665, %v6669_v36   ;;  %6676 = vst [vmem:[#allocation4_spill] sm:$0xff] %v4740_v38  ;;  %v6678_v36 = vld [vmem:[#allocation12_spill] sm:$0xff] }
 0x342   :  { %v6684_v38 = vld [vmem:[#allocation16_spill] sm:$0xff] }
 0x344   :  { %1984 = vperm.xlu0 %3666, %v6670_v45   ;;  %v6679_v45 = vld [vmem:[#allocation13_spill] sm:$0xff]  ;;  %v4747_v31 = vpop.trf.xlu1 }
 0x345   :  { %1989 = vperm.xlu1 %3665, %v6671_v49   ;;  %v4745_v49 = vpop.trf.xlu0  ;;  %6680 = vst [vmem:[#allocation5_spill] sm:$0xff] %v4747_v31  ;;  %v1516_v31 = vld [vmem:[%s6528_s3 + $0x10] sm:$0xff] }
 0x348   :  { %1994 = vperm.xlu0 %3666, %v6673_v21   ;;  %v6682_v21 = vld [vmem:[#allocation15_spill] sm:$0xff] }
 0x349   :  { %1999 = vperm.xlu1 %3665, %v6674_v26   ;;  %v4754_v26 = vpop.trf.xlu0 }
 0x34a   :  { %6683 = vst [vmem:[#allocation6_spill] sm:$0xff] %v4754_v26 }
 0x34c   :  { %2004 = vperm.xlu0 %3666, %v6675_v42   ;;  %v1514_v42 = vld [vmem:[%s6528_s3] sm:$0xff] }
 0x34d   :  { %2009 = vperm.xlu1 %3665, %v6677_v41   ;;  %v4767_v23 = vpop.trf.xlu0 }
 0x34e   :  { %6688 = vst [vmem:[#allocation7_spill] sm:$0xff] %v4767_v23  ;;  %v6693_v23 = vld [vmem:[#allocation24_spill] sm:$0xff] }
 0x350   :  { %2014 = vperm.xlu0 %3666, %v6678_v36  }
 0x351   :  { %2019 = vperm.xlu1 %3665, %v6679_v45   ;;  %v6685_v45 = vld [vmem:[#allocation17_spill] sm:$0xff] }
 0x354   :  { %2024 = vperm.xlu0 %3666, %v6681_v14  }
 0x355   :  { %2029 = vperm.xlu1 %3665, %v6682_v21   ;;  %v6686_v21 = vld [vmem:[#allocation18_spill] sm:$0xff] }
 0x358   :  { %v1745_v41 = vpop.permute.xlu1 %1744  ;;  %2034 = vperm.xlu0 %3666, %v6684_v38  }
 0x359   :  { %v2882_v36 = vmul.f32 %v1745_v41, %v1514_v42  ;;  %2039 = vperm.xlu1 %3665, %v6685_v45   ;;  %v6689_v41 = vld [vmem:[#allocation20_spill] sm:$0xff]  ;;  %v6690_v45 = vld [vmem:[#allocation21_spill] sm:$0xff] }
 0x35b   :  { %3111 = vst.msk [vmem:[%s6529_s4] sm:$0xff] %vm3110_vm5, %v2882_v36 }
 0x35c   :  { %v1755_v14 = vpop.permute.xlu1 %1754  ;;  %2044 = vperm.xlu0 %3666, %v6686_v21   ;;  %v6692_v21 = vld [vmem:[#allocation22_spill] sm:$0xff] }
 0x35d   :  { %v2884_v26 = vmul.f32 %v1755_v14, %v1516_v31  ;;  %2049 = vperm.xlu1 %3665, %v6687_v11   ;;  %v4785_v31 = vpop.trf.xlu0 }
 0x35e   :  { %6691 = vst [vmem:[#allocation8_spill] sm:$0xff] %v4785_v31 }
 0x360   :  { %v1760_v42 = vpop.permute.xlu1 %1759  ;;  %2054 = vperm.xlu0 %3666, %v6689_v41   ;;  %v6694_v41 = vld [vmem:[#allocation26_spill] sm:$0xff] }
 0x361   :  { %2059 = vperm.xlu1 %3665, %v6690_v45   ;;  %v6695_v45 = vld [vmem:[#allocation28_spill] sm:$0xff]  ;;  %v4798_v31 = vpop.trf.xlu0 }
 0x362   :  { %v1517_v38 = vld [vmem:[%s6528_s3 + $0x18] sm:$0xff] }
 0x363   :  { %3113 = vst.msk [vmem:[%s6529_s4 + $0x10] sm:$0xff] %vm3110_vm5, %v2884_v26  ;;  %v2885_v36 = vmul.f32 %v1760_v42, %v1517_v38 }
 0x364   :  { %v1765_v14 = vpop.permute.xlu1 %1764  ;;  %2064 = vperm.xlu0 %3666, %v6692_v21   ;;  %v6696_v21 = vld [vmem:[#allocation31_spill] sm:$0xff] }
 0x365   :  { %2069 = vperm.xlu1 %3665, %v6693_v23  }
 0x368   :  { %v1770_v42 = vpop.permute.xlu1 %1769  ;;  %2074 = vperm.xlu0 %3666, %v6694_v41  }
 0x369   :  { %2079 = vperm.xlu1 %3665, %v6695_v45  }
 0x36a   :  { %v1518_v11 = vld [vmem:[%s6528_s3 + $0x20] sm:$0xff] }
 0x36b   :  { %3114 = vst.msk [vmem:[%s6529_s4 + $0x18] sm:$0xff] %vm3110_vm5, %v2885_v36  ;;  %v2886_v26 = vmul.f32 %v1765_v14, %v1518_v11 }
 0x36c   :  { %v1775_v11 = vpop.permute.xlu1 %1774  ;;  %2084 = vperm.xlu0 %3666, %v4373_v62   ;;  %v6697_v62 = vld [vmem:[#allocation33_spill] sm:$0xff] }
 0x36d   :  { %2089 = vperm.xlu1 %3665, %v6696_v21  }
 0x370   :  { %v1780_v41 = vpop.permute.xlu1 %1779  ;;  %2094 = vperm.xlu0 %3666, %v6697_v62  }
 0x371   :  { %2099 = vperm.xlu1 %3665, %v4389_v24  }
 0x372   :  { %v1519_v38 = vld [vmem:[%s6528_s3 + $0x28] sm:$0xff] }
 0x373   :  { %3115 = vst.msk [vmem:[%s6529_s4 + $0x20] sm:$0xff] %vm3110_vm5, %v2886_v26  ;;  %v2887_v36 = vmul.f32 %v1770_v42, %v1519_v38  ;;  %v1750_v42 = vpop.permute.xlu0 %1749 }
 0x374   :  { %v1790_v24 = vpop.permute.xlu1 %1789 }
 0x37a   :  { %v1520_v23 = vld [vmem:[%s6528_s3 + $0x30] sm:$0xff] }
 0x37b   :  { %3116 = vst.msk [vmem:[%s6529_s4 + $0x28] sm:$0xff] %vm3110_vm5, %v2887_v36  ;;  %v2888_v14 = vmul.f32 %v1775_v11, %v1520_v23 }
 0x382   :  { %v1515_v26 = vld [vmem:[%s6528_s3 + $0x8] sm:$0xff]  ;;  %v1521_v38 = vld [vmem:[%s6528_s3 + $0x38] sm:$0xff] }
 0x383   :  { %3117 = vst.msk [vmem:[%s6529_s4 + $0x30] sm:$0xff] %vm3110_vm5, %v2888_v14  ;;  %v2883_v36 = vmul.f32 %v1750_v42, %v1515_v26  ;;  %v2889_v45 = vmul.f32 %v1780_v41, %v1521_v38  ;;  %v1785_v14 = vpop.permute.xlu0 %1784  ;;  %v6698_v26 = vld [vmem:[#allocation36_spill] sm:$0xff]  ;;  %v6699_v42 = vld [vmem:[#allocation38_spill] sm:$0xff] }
 0x384   :  { %2104 = vperm.xlu0 %3666, %v6698_v26   ;;  %2109 = vperm.xlu1 %3665, %v6699_v42  }
 0x387   :  { %v1795_v62 = vpop.permute.xlu0 %1794 }
 0x38a   :  { %v1522_v23 = vld [vmem:[%s6528_s3 + $0x40] sm:$0xff] }
 0x38b   :  { %3112 = vst.msk [vmem:[%s6529_s4 + $0x8] sm:$0xff] %vm3110_vm5, %v2883_v36  ;;  %v2890_v21 = vmul.f32 %v1785_v14, %v1522_v23 }
 0x392   :  { %v1523_v11 = vld [vmem:[%s6528_s3 + $0x48] sm:$0xff] }
 0x393   :  { %3118 = vst.msk [vmem:[%s6529_s4 + $0x38] sm:$0xff] %vm3110_vm5, %v2889_v45  ;;  %v2891_v38 = vmul.f32 %v1790_v24, %v1523_v11  ;;  %v1800_v45 = vpop.permute.xlu1 %1799  ;;  %v6700_v11 = vld [vmem:[#allocation40_spill] sm:$0xff]  ;;  %v6701_v24 = vld [vmem:[#allocation42_spill] sm:$0xff] }
 0x394   :  { %2114 = vperm.xlu0 %3666, %v6700_v11   ;;  %2119 = vperm.xlu1 %3665, %v6701_v24  }
 0x397   :  { %v1810_v42 = vpop.permute.xlu1 %1809 }
 0x39a   :  { %v1524_v41 = vld [vmem:[%s6528_s3 + $0x50] sm:$0xff] }
 0x39b   :  { %3119 = vst.msk [vmem:[%s6529_s4 + $0x40] sm:$0xff] %vm3110_vm5, %v2890_v21  ;;  %v2892_v23 = vmul.f32 %v1795_v62, %v1524_v41  ;;  %v1820_v24 = vpop.permute.xlu1 %1819 }
 0x3a2   :  { %v1525_v36 = vld [vmem:[%s6528_s3 + $0x58] sm:$0xff] }
 0x3a3   :  { %3120 = vst.msk [vmem:[%s6529_s4 + $0x48] sm:$0xff] %vm3110_vm5, %v2891_v38  ;;  %v2893_v14 = vmul.f32 %v1800_v45, %v1525_v36  ;;  %v1805_v38 = vpop.permute.xlu0 %1804  ;;  %v6702_v36 = vld [vmem:[#allocation44_spill] sm:$0xff]  ;;  %v6703_v45 = vld [vmem:[#allocation46_spill] sm:$0xff] }
 0x3a4   :  { %2124 = vperm.xlu0 %3666, %v6702_v36   ;;  %2129 = vperm.xlu1 %3665, %v6703_v45   ;;  %v1830_v45 = vpop.permute.xlu1 %1829 }
 0x3aa   :  { %v1526_v21 = vld [vmem:[%s6528_s3 + $0x60] sm:$0xff] }
 0x3ab   :  { %3121 = vst.msk [vmem:[%s6529_s4 + $0x50] sm:$0xff] %vm3110_vm5, %v2892_v23  ;;  %v2894_v41 = vmul.f32 %v1805_v38, %v1526_v21 }
 0x3b2   :  { %v1527_v26 = vld [vmem:[%s6528_s3 + $0x68] sm:$0xff] }
 0x3b3   :  { %3122 = vst.msk [vmem:[%s6529_s4 + $0x58] sm:$0xff] %vm3110_vm5, %v2893_v14  ;;  %v2895_v62 = vmul.f32 %v1810_v42, %v1527_v26  ;;  %v1815_v14 = vpop.permute.xlu0 %1814  ;;  %v6704_v26 = vld [vmem:[#allocation48_spill] sm:$0xff]  ;;  %v6705_v42 = vld [vmem:[#allocation50_spill] sm:$0xff] }
 0x3b4   :  { %2134 = vperm.xlu0 %3666, %v6704_v26   ;;  %2139 = vperm.xlu1 %3665, %v6705_v42   ;;  %v1840_v42 = vpop.permute.xlu1 %1839 }
 0x3ba   :  { %v1528_v23 = vld [vmem:[%s6528_s3 + $0x70] sm:$0xff] }
 0x3bb   :  { %3123 = vst.msk [vmem:[%s6529_s4 + $0x60] sm:$0xff] %vm3110_vm5, %v2894_v41  ;;  %v2896_v21 = vmul.f32 %v1815_v14, %v1528_v23 }
 0x3c2   :  { %v1529_v11 = vld [vmem:[%s6528_s3 + $0x78] sm:$0xff] }
 0x3c3   :  { %3124 = vst.msk [vmem:[%s6529_s4 + $0x68] sm:$0xff] %vm3110_vm5, %v2895_v62  ;;  %v2897_v38 = vmul.f32 %v1820_v24, %v1529_v11  ;;  %v1825_v62 = vpop.permute.xlu0 %1824  ;;  %v6706_v11 = vld [vmem:[#allocation23_spill] sm:$0xff]  ;;  %v6707_v24 = vld [vmem:[#allocation25_spill] sm:$0xff] }
 0x3c4   :  { %2144 = vperm.xlu0 %3666, %v6706_v11   ;;  %2149 = vperm.xlu1 %3665, %v6707_v24   ;;  %v1850_v24 = vpop.permute.xlu1 %1849 }
 0x3ca   :  { %v1530_v41 = vld [vmem:[%s6528_s3 + $0x80] sm:$0xff] }
 0x3cb   :  { %3125 = vst.msk [vmem:[%s6529_s4 + $0x70] sm:$0xff] %vm3110_vm5, %v2896_v21  ;;  %v2898_v23 = vmul.f32 %v1825_v62, %v1530_v41 }
 0x3d2   :  { %v1531_v36 = vld [vmem:[%s6528_s3 + $0x88] sm:$0xff] }
 0x3d3   :  { %3126 = vst.msk [vmem:[%s6529_s4 + $0x78] sm:$0xff] %vm3110_vm5, %v2897_v38  ;;  %v2899_v14 = vmul.f32 %v1830_v45, %v1531_v36  ;;  %v1835_v38 = vpop.permute.xlu0 %1834  ;;  %v6708_v36 = vld [vmem:[#allocation27_spill] sm:$0xff]  ;;  %v6709_v45 = vld [vmem:[#allocation29_spill] sm:$0xff] }
 0x3d4   :  { %2154 = vperm.xlu0 %3666, %v6708_v36   ;;  %2159 = vperm.xlu1 %3665, %v6709_v45   ;;  %v1860_v45 = vpop.permute.xlu1 %1859 }
 0x3da   :  { %v1532_v21 = vld [vmem:[%s6528_s3 + $0x90] sm:$0xff] }
 0x3db   :  { %3127 = vst.msk [vmem:[%s6529_s4 + $0x80] sm:$0xff] %vm3110_vm5, %v2898_v23  ;;  %v2900_v41 = vmul.f32 %v1835_v38, %v1532_v21 }
 0x3e2   :  { %v1533_v26 = vld [vmem:[%s6528_s3 + $0x98] sm:$0xff] }
 0x3e3   :  { %3128 = vst.msk [vmem:[%s6529_s4 + $0x88] sm:$0xff] %vm3110_vm5, %v2899_v14  ;;  %v2901_v62 = vmul.f32 %v1840_v42, %v1533_v26  ;;  %v1845_v14 = vpop.permute.xlu0 %1844  ;;  %v6710_v26 = vld [vmem:[#allocation30_spill] sm:$0xff]  ;;  %v6711_v42 = vld [vmem:[#allocation32_spill] sm:$0xff] }
 0x3e4   :  { %2164 = vperm.xlu0 %3666, %v6710_v26   ;;  %2169 = vperm.xlu1 %3665, %v6711_v42   ;;  %v1870_v42 = vpop.permute.xlu1 %1869 }
 0x3ea   :  { %v1534_v23 = vld [vmem:[%s6528_s3 + $0xa0] sm:$0xff] }
 0x3eb   :  { %3129 = vst.msk [vmem:[%s6529_s4 + $0x90] sm:$0xff] %vm3110_vm5, %v2900_v41  ;;  %v2902_v21 = vmul.f32 %v1845_v14, %v1534_v23 }
 0x3f2   :  { %v1535_v11 = vld [vmem:[%s6528_s3 + $0xa8] sm:$0xff] }
 0x3f3   :  { %3130 = vst.msk [vmem:[%s6529_s4 + $0x98] sm:$0xff] %vm3110_vm5, %v2901_v62  ;;  %v2903_v38 = vmul.f32 %v1850_v24, %v1535_v11  ;;  %v1855_v62 = vpop.permute.xlu0 %1854  ;;  %v6712_v11 = vld [vmem:[#allocation34_spill] sm:$0xff]  ;;  %v6713_v24 = vld [vmem:[#allocation35_spill] sm:$0xff] }
 0x3f4   :  { %2174 = vperm.xlu0 %3666, %v6712_v11   ;;  %2179 = vperm.xlu1 %3665, %v6713_v24   ;;  %v1880_v24 = vpop.permute.xlu1 %1879 }
 0x3fa   :  { %v1536_v41 = vld [vmem:[%s6528_s3 + $0xb0] sm:$0xff] }
 0x3fb   :  { %3131 = vst.msk [vmem:[%s6529_s4 + $0xa0] sm:$0xff] %vm3110_vm5, %v2902_v21  ;;  %v2904_v23 = vmul.f32 %v1855_v62, %v1536_v41 }
 0x402   :  { %v1537_v36 = vld [vmem:[%s6528_s3 + $0xb8] sm:$0xff] }
 0x403   :  { %3132 = vst.msk [vmem:[%s6529_s4 + $0xa8] sm:$0xff] %vm3110_vm5, %v2903_v38  ;;  %v2905_v14 = vmul.f32 %v1860_v45, %v1537_v36  ;;  %v1865_v38 = vpop.permute.xlu0 %1864  ;;  %v6714_v36 = vld [vmem:[#allocation37_spill] sm:$0xff]  ;;  %v6715_v45 = vld [vmem:[#allocation39_spill] sm:$0xff] }
 0x404   :  { %2184 = vperm.xlu0 %3666, %v6714_v36   ;;  %2189 = vperm.xlu1 %3665, %v6715_v45   ;;  %v1890_v45 = vpop.permute.xlu1 %1889 }
 0x40a   :  { %v1538_v21 = vld [vmem:[%s6528_s3 + $0xc0] sm:$0xff] }
 0x40b   :  { %3133 = vst.msk [vmem:[%s6529_s4 + $0xb0] sm:$0xff] %vm3110_vm5, %v2904_v23  ;;  %v2906_v41 = vmul.f32 %v1865_v38, %v1538_v21 }
 0x412   :  { %v1539_v26 = vld [vmem:[%s6528_s3 + $0xc8] sm:$0xff] }
 0x413   :  { %3134 = vst.msk [vmem:[%s6529_s4 + $0xb8] sm:$0xff] %vm3110_vm5, %v2905_v14  ;;  %v2907_v62 = vmul.f32 %v1870_v42, %v1539_v26  ;;  %v1875_v14 = vpop.permute.xlu0 %1874  ;;  %v6716_v26 = vld [vmem:[#allocation41_spill] sm:$0xff]  ;;  %v6717_v42 = vld [vmem:[#allocation43_spill] sm:$0xff] }
 0x414   :  { %2194 = vperm.xlu0 %3666, %v6716_v26   ;;  %2199 = vperm.xlu1 %3665, %v6717_v42   ;;  %v1900_v42 = vpop.permute.xlu1 %1899 }
 0x41a   :  { %v1540_v23 = vld [vmem:[%s6528_s3 + $0xd0] sm:$0xff] }
 0x41b   :  { %3135 = vst.msk [vmem:[%s6529_s4 + $0xc0] sm:$0xff] %vm3110_vm5, %v2906_v41  ;;  %v2908_v21 = vmul.f32 %v1875_v14, %v1540_v23 }
 0x422   :  { %v1541_v11 = vld [vmem:[%s6528_s3 + $0xd8] sm:$0xff] }
 0x423   :  { %3136 = vst.msk [vmem:[%s6529_s4 + $0xc8] sm:$0xff] %vm3110_vm5, %v2907_v62  ;;  %v2909_v38 = vmul.f32 %v1880_v24, %v1541_v11  ;;  %v1885_v62 = vpop.permute.xlu0 %1884  ;;  %v6718_v11 = vld [vmem:[#allocation45_spill] sm:$0xff]  ;;  %v6719_v24 = vld [vmem:[#allocation47_spill] sm:$0xff] }
 0x424   :  { %2204 = vperm.xlu0 %3666, %v6718_v11   ;;  %2209 = vperm.xlu1 %3665, %v6719_v24   ;;  %v1910_v24 = vpop.permute.xlu1 %1909 }
 0x42a   :  { %v1542_v41 = vld [vmem:[%s6528_s3 + $0xe0] sm:$0xff] }
 0x42b   :  { %3137 = vst.msk [vmem:[%s6529_s4 + $0xd0] sm:$0xff] %vm3110_vm5, %v2908_v21  ;;  %v2910_v23 = vmul.f32 %v1885_v62, %v1542_v41 }
 0x432   :  { %v1543_v36 = vld [vmem:[%s6528_s3 + $0xe8] sm:$0xff] }
 0x433   :  { %3138 = vst.msk [vmem:[%s6529_s4 + $0xd8] sm:$0xff] %vm3110_vm5, %v2909_v38  ;;  %v2911_v14 = vmul.f32 %v1890_v45, %v1543_v36  ;;  %v1895_v38 = vpop.permute.xlu0 %1894  ;;  %v6720_v36 = vld [vmem:[#allocation49_spill] sm:$0xff]  ;;  %v6721_v45 = vld [vmem:[#allocation51_spill] sm:$0xff] }
 0x434   :  { %2214 = vperm.xlu0 %3666, %v6720_v36   ;;  %2219 = vperm.xlu1 %3665, %v6721_v45   ;;  %v1920_v45 = vpop.permute.xlu1 %1919 }
 0x43a   :  { %v1544_v21 = vld [vmem:[%s6528_s3 + $0xf0] sm:$0xff] }
 0x43b   :  { %3139 = vst.msk [vmem:[%s6529_s4 + $0xe0] sm:$0xff] %vm3110_vm5, %v2910_v23  ;;  %v2912_v41 = vmul.f32 %v1895_v38, %v1544_v21 }
 0x442   :  { %v1545_v26 = vld [vmem:[%s6528_s3 + $0xf8] sm:$0xff] }
 0x443   :  { %3140 = vst.msk [vmem:[%s6529_s4 + $0xe8] sm:$0xff] %vm3110_vm5, %v2911_v14  ;;  %v2913_v62 = vmul.f32 %v1900_v42, %v1545_v26  ;;  %v1905_v14 = vpop.permute.xlu0 %1904  ;;  %v6722_v26 = vld [vmem:[#allocation52_spill] sm:$0xff]  ;;  %v6723_v42 = vld [vmem:[#allocation54_spill] sm:$0xff] }
 0x444   :  { %2224 = vperm.xlu0 %3666, %v6722_v26   ;;  %2229 = vperm.xlu1 %3665, %v6723_v42   ;;  %v1930_v42 = vpop.permute.xlu1 %1929 }
 0x44a   :  { %v1546_v23 = vld [vmem:[%s6528_s3 + $0x100] sm:$0xff] }
 0x44b   :  { %3141 = vst.msk [vmem:[%s6529_s4 + $0xf0] sm:$0xff] %vm3110_vm5, %v2912_v41  ;;  %v2914_v21 = vmul.f32 %v1905_v14, %v1546_v23 }
 0x452   :  { %v1547_v11 = vld [vmem:[%s6528_s3 + $0x108] sm:$0xff] }
 0x453   :  { %3142 = vst.msk [vmem:[%s6529_s4 + $0xf8] sm:$0xff] %vm3110_vm5, %v2913_v62  ;;  %v2915_v38 = vmul.f32 %v1910_v24, %v1547_v11  ;;  %v1915_v62 = vpop.permute.xlu0 %1914  ;;  %v6724_v11 = vld [vmem:[#allocation56_spill] sm:$0xff]  ;;  %v6725_v24 = vld [vmem:[#allocation58_spill] sm:$0xff] }
 0x454   :  { %2234 = vperm.xlu0 %3666, %v6724_v11   ;;  %2239 = vperm.xlu1 %3665, %v6725_v24   ;;  %v6727_v24 = vld [vmem:[#allocation63_spill] sm:$0xff] }
 0x458   :  { %2249 = vperm.xlu1 %3665, %v4453_v22   ;;  %v1940_v22 = vpop.permute.xlu1 %1939 }
 0x45a   :  { %v1548_v41 = vld [vmem:[%s6528_s3 + $0x110] sm:$0xff] }
 0x45b   :  { %3143 = vst.msk [vmem:[%s6529_s4 + $0x100] sm:$0xff] %vm3110_vm5, %v2914_v21  ;;  %v2916_v23 = vmul.f32 %v1915_v62, %v1548_v41 }
 0x45c   :  { %2259 = vperm.xlu1 %3665, %v4461_v63   ;;  %v1950_v63 = vpop.permute.xlu1 %1949 }
 0x462   :  { %v1549_v36 = vld [vmem:[%s6528_s3 + $0x118] sm:$0xff] }
 0x463   :  { %3144 = vst.msk [vmem:[%s6529_s4 + $0x108] sm:$0xff] %vm3110_vm5, %v2915_v38  ;;  %v2917_v14 = vmul.f32 %v1920_v45, %v1549_v36  ;;  %v1925_v38 = vpop.permute.xlu0 %1924  ;;  %v6726_v36 = vld [vmem:[#allocation60_spill] sm:$0xff] }
 0x464   :  { %2244 = vperm.xlu0 %3666, %v6726_v36   ;;  %v6728_v36 = vld [vmem:[#allocation66_spill] sm:$0xff] }
 0x467   :  { %v1935_v11 = vpop.permute.xlu0 %1934 }
 0x468   :  { %2254 = vperm.xlu0 %3666, %v6727_v24  }
 0x46a   :  { %v1550_v21 = vld [vmem:[%s6528_s3 + $0x120] sm:$0xff] }
 0x46b   :  { %3145 = vst.msk [vmem:[%s6529_s4 + $0x110] sm:$0xff] %vm3110_vm5, %v2916_v23  ;;  %v2918_v41 = vmul.f32 %v1925_v38, %v1550_v21 }
 0x46c   :  { %2264 = vperm.xlu0 %3666, %v6728_v36   ;;  %v6731_v36 = vld [vmem:[#allocation73_spill] sm:$0xff] }
 0x470   :  { %2274 = vperm.xlu0 %3666, %v4473_v57  }
 0x472   :  { %v1551_v26 = vld [vmem:[%s6528_s3 + $0x128] sm:$0xff] }
 0x473   :  { %3146 = vst.msk [vmem:[%s6529_s4 + $0x118] sm:$0xff] %vm3110_vm5, %v2917_v14  ;;  %v2919_v62 = vmul.f32 %v1930_v42, %v1551_v26  ;;  %v1945_v42 = vpop.permute.xlu0 %1944 }
 0x474   :  { %2284 = vperm.xlu0 %3666, %v6731_v36  }
 0x478   :  { %2294 = vperm.xlu0 %3666, %v4489_v27  }
 0x47a   :  { %v1552_v45 = vld [vmem:[%s6528_s3 + $0x130] sm:$0xff] }
 0x47b   :  { %3147 = vst.msk [vmem:[%s6529_s4 + $0x120] sm:$0xff] %vm3110_vm5, %v2918_v41  ;;  %v2920_v14 = vmul.f32 %v1935_v11, %v1552_v45  ;;  %v6729_v45 = vld [vmem:[#allocation68_spill] sm:$0xff] }
 0x47c   :  { %2269 = vperm.xlu1 %3665, %v6729_v45   ;;  %v6732_v45 = vld [vmem:[#allocation75_spill] sm:$0xff] }
 0x482   :  { %v1553_v23 = vld [vmem:[%s6528_s3 + $0x138] sm:$0xff] }
 0x483   :  { %3148 = vst.msk [vmem:[%s6529_s4 + $0x128] sm:$0xff] %vm3110_vm5, %v2919_v62  ;;  %v2921_v21 = vmul.f32 %v1940_v22, %v1553_v23  ;;  %v1955_v22 = vpop.permute.xlu0 %1954 }
 0x487   :  { %v1965_v57 = vpop.permute.xlu0 %1964 }
 0x48a   :  { %v1554_v26 = vld [vmem:[%s6528_s3 + $0x140] sm:$0xff] }
 0x48b   :  { %3149 = vst.msk [vmem:[%s6529_s4 + $0x130] sm:$0xff] %vm3110_vm5, %v2920_v14  ;;  %v2922_v41 = vmul.f32 %v1945_v42, %v1554_v26  ;;  %v1960_v14 = vpop.permute.xlu1 %1959  ;;  %v6730_v26 = vld [vmem:[#allocation71_spill] sm:$0xff] }
 0x48c   :  { %2279 = vperm.xlu1 %3665, %v6730_v26   ;;  %v6733_v26 = vld [vmem:[#allocation78_spill] sm:$0xff] }
 0x490   :  { %2289 = vperm.xlu1 %3665, %v6732_v45  }
 0x492   :  { %v1555_v38 = vld [vmem:[%s6528_s3 + $0x148] sm:$0xff] }
 0x493   :  { %3150 = vst.msk [vmem:[%s6529_s4 + $0x138] sm:$0xff] %vm3110_vm5, %v2921_v21  ;;  %v2923_v62 = vmul.f32 %v1950_v63, %v1555_v38  ;;  %v1970_v63 = vpop.permute.xlu1 %1969 }
 0x494   :  { %2299 = vperm.xlu1 %3665, %v6733_v26   ;;  %v6737_v26 = vld [vmem:[#allocation59_spill] sm:$0xff] }
 0x49a   :  { %v1556_v23 = vld [vmem:[%s6528_s3 + $0x150] sm:$0xff] }
 0x49b   :  { %3151 = vst.msk [vmem:[%s6529_s4 + $0x140] sm:$0xff] %vm3110_vm5, %v2922_v41  ;;  %v2924_v24 = vmul.f32 %v1955_v22, %v1556_v23  ;;  %v1975_v22 = vpop.permute.xlu0 %1974 }
 0x49f   :  { %v1985_v27 = vpop.permute.xlu0 %1984 }
 0x4a2   :  { %v1557_v11 = vld [vmem:[%s6528_s3 + $0x158] sm:$0xff] }
 0x4a3   :  { %3152 = vst.msk [vmem:[%s6529_s4 + $0x148] sm:$0xff] %vm3110_vm5, %v2923_v62  ;;  %v2925_v21 = vmul.f32 %v1960_v14, %v1557_v11  ;;  %v1980_v14 = vpop.permute.xlu1 %1979 }
 0x4aa   :  { %v1558_v38 = vld [vmem:[%s6528_s3 + $0x160] sm:$0xff] }
 0x4ab   :  { %3153 = vst.msk [vmem:[%s6529_s4 + $0x150] sm:$0xff] %vm3110_vm5, %v2924_v24  ;;  %v2926_v41 = vmul.f32 %v1965_v57, %v1558_v38  ;;  %v1990_v57 = vpop.permute.xlu1 %1989 }
 0x4b2   :  { %v1559_v42 = vld [vmem:[%s6528_s3 + $0x168] sm:$0xff] }
 0x4b3   :  { %3154 = vst.msk [vmem:[%s6529_s4 + $0x158] sm:$0xff] %vm3110_vm5, %v2925_v21  ;;  %v2927_v62 = vmul.f32 %v1970_v63, %v1559_v42 }
 0x4ba   :  { %v1560_v23 = vld [vmem:[%s6528_s3 + $0x170] sm:$0xff] }
 0x4bb   :  { %3155 = vst.msk [vmem:[%s6529_s4 + $0x160] sm:$0xff] %vm3110_vm5, %v2926_v41  ;;  %v2928_v24 = vmul.f32 %v1975_v22, %v1560_v23  ;;  %v6734_v41 = vld [vmem:[#allocation53_spill] sm:$0xff]  ;;  %v2000_v22 = vpop.permute.xlu1 %1999 }
 0x4bc   :  { %2304 = vperm.xlu0 %3666, %v6734_v41   ;;  %v6738_v41 = vld [vmem:[#allocation61_spill] sm:$0xff] }
 0x4c2   :  { %v1561_v11 = vld [vmem:[%s6528_s3 + $0x178] sm:$0xff] }
 0x4c3   :  { %3156 = vst.msk [vmem:[%s6529_s4 + $0x168] sm:$0xff] %vm3110_vm5, %v2927_v62  ;;  %v2929_v21 = vmul.f32 %v1980_v14, %v1561_v11  ;;  %v6735_v62 = vld [vmem:[#allocation55_spill] sm:$0xff]  ;;  %v1995_v11 = vpop.permute.xlu0 %1994 }
 0x4c4   :  { %2309 = vperm.xlu1 %3665, %v6735_v62   ;;  %v6739_v62 = vld [vmem:[#allocation62_spill] sm:$0xff] }
 0x4c8   :  { %2319 = vperm.xlu1 %3665, %v6737_v26   ;;  %v6741_v26 = vld [vmem:[#allocation65_spill] sm:$0xff] }
 0x4ca   :  { %v1562_v38 = vld [vmem:[%s6528_s3 + $0x180] sm:$0xff] }
 0x4cb   :  { %3157 = vst.msk [vmem:[%s6529_s4 + $0x170] sm:$0xff] %vm3110_vm5, %v2928_v24  ;;  %v2930_v63 = vmul.f32 %v1985_v27, %v1562_v38  ;;  %v6736_v24 = vld [vmem:[#allocation57_spill] sm:$0xff]  ;;  %v2005_v27 = vpop.permute.xlu0 %2004 }
 0x4cc   :  { %2314 = vperm.xlu0 %3666, %v6736_v24   ;;  %2329 = vperm.xlu1 %3665, %v6739_v62   ;;  %v6740_v24 = vld [vmem:[#allocation64_spill] sm:$0xff]  ;;  %v6743_v62 = vld [vmem:[#allocation69_spill] sm:$0xff] }
 0x4d0   :  { %2324 = vperm.xlu0 %3666, %v6738_v41   ;;  %2339 = vperm.xlu1 %3665, %v6741_v26   ;;  %v6742_v41 = vld [vmem:[#allocation67_spill] sm:$0xff]  ;;  %v6745_v26 = vld [vmem:[#allocation72_spill] sm:$0xff] }
 0x4d2   :  { %v1563_v42 = vld [vmem:[%s6528_s3 + $0x188] sm:$0xff] }
 0x4d3   :  { %3158 = vst.msk [vmem:[%s6529_s4 + $0x178] sm:$0xff] %vm3110_vm5, %v2929_v21  ;;  %v2931_v36 = vmul.f32 %v1990_v57, %v1563_v42  ;;  %v2010_v57 = vpop.permute.xlu1 %2009 }
 0x4d4   :  { %2334 = vperm.xlu0 %3666, %v6740_v24   ;;  %2349 = vperm.xlu1 %3665, %v6743_v62   ;;  %v6744_v24 = vld [vmem:[#allocation70_spill] sm:$0xff]  ;;  %v6747_v62 = vld [vmem:[#allocation76_spill] sm:$0xff] }
 0x4d8   :  { %2344 = vperm.xlu0 %3666, %v6742_v41   ;;  %2359 = vperm.xlu1 %3665, %v6745_v26   ;;  %v6746_v41 = vld [vmem:[#allocation74_spill] sm:$0xff]  ;;  %v6749_v26 = vld [vmem:[#allocation79_spill] sm:$0xff] }
 0x4da   :  { %v1564_v45 = vld [vmem:[%s6528_s3 + $0x190] sm:$0xff] }
 0x4db   :  { %3159 = vst.msk [vmem:[%s6529_s4 + $0x180] sm:$0xff] %vm3110_vm5, %v2930_v63  ;;  %v2932_v14 = vmul.f32 %v1995_v11, %v1564_v45  ;;  %v2015_v11 = vpop.permute.xlu0 %2014 }
 0x4dc   :  { %2354 = vperm.xlu0 %3666, %v6744_v24   ;;  %2369 = vperm.xlu1 %3665, %v6747_v62   ;;  %v6748_v24 = vld [vmem:[#allocation77_spill] sm:$0xff]  ;;  %v6751_v62 = vld [vmem:[#allocation82_spill] sm:$0xff] }
 0x4e0   :  { %2364 = vperm.xlu0 %3666, %v6746_v41   ;;  %2379 = vperm.xlu1 %3665, %v6749_v26   ;;  %v6750_v41 = vld [vmem:[#allocation80_spill] sm:$0xff] }
 0x4e2   :  { %v1565_v23 = vld [vmem:[%s6528_s3 + $0x198] sm:$0xff] }
 0x4e3   :  { %3160 = vst.msk [vmem:[%s6529_s4 + $0x188] sm:$0xff] %vm3110_vm5, %v2931_v36  ;;  %v2933_v21 = vmul.f32 %v2000_v22, %v1565_v23  ;;  %v2020_v22 = vpop.permute.xlu1 %2019 }
 0x4e4   :  { %2374 = vperm.xlu0 %3666, %v6748_v24   ;;  %2389 = vperm.xlu1 %3665, %v6751_v62   ;;  %v6752_v24 = vld [vmem:[#allocation84_spill] sm:$0xff] }
 0x4e8   :  { %2384 = vperm.xlu0 %3666, %v6750_v41   ;;  %2399 = vperm.xlu1 %3665, %v4512_v55   ;;  %v6754_v41 = vld [vmem:[#allocation89_spill] sm:$0xff] }
 0x4ea   :  { %v1566_v38 = vld [vmem:[%s6528_s3 + $0x1a0] sm:$0xff] }
 0x4eb   :  { %3161 = vst.msk [vmem:[%s6529_s4 + $0x190] sm:$0xff] %vm3110_vm5, %v2932_v14  ;;  %v2934_v63 = vmul.f32 %v2005_v27, %v1566_v38  ;;  %v2025_v27 = vpop.permute.xlu0 %2024 }
 0x4ec   :  { %2394 = vperm.xlu0 %3666, %v6752_v24   ;;  %2409 = vperm.xlu1 %3665, %v6754_v41   ;;  %v6756_v24 = vld [vmem:[#allocation93_spill] sm:$0xff] }
 0x4f0   :  { %2419 = vperm.xlu1 %3665, %v6756_v24  }
 0x4f2   :  { %v1567_v42 = vld [vmem:[%s6528_s3 + $0x1a8] sm:$0xff] }
 0x4f3   :  { %3162 = vst.msk [vmem:[%s6529_s4 + $0x198] sm:$0xff] %vm3110_vm5, %v2933_v21  ;;  %v2935_v36 = vmul.f32 %v2010_v57, %v1567_v42  ;;  %v2030_v57 = vpop.permute.xlu1 %2029 }
 0x4f4   :  { %2429 = vperm.xlu1 %3665, %v4537_v12  }
 0x4fa   :  { %v1568_v45 = vld [vmem:[%s6528_s3 + $0x1b0] sm:$0xff] }
 0x4fb   :  { %3163 = vst.msk [vmem:[%s6529_s4 + $0x1a0] sm:$0xff] %vm3110_vm5, %v2934_v63  ;;  %v2936_v14 = vmul.f32 %v2015_v11, %v1568_v45  ;;  %v2035_v11 = vpop.permute.xlu0 %2034 }
 0x502   :  { %v1569_v23 = vld [vmem:[%s6528_s3 + $0x1b8] sm:$0xff] }
 0x503   :  { %3164 = vst.msk [vmem:[%s6529_s4 + $0x1a8] sm:$0xff] %vm3110_vm5, %v2935_v36  ;;  %v2937_v21 = vmul.f32 %v2020_v22, %v1569_v23  ;;  %v2040_v22 = vpop.permute.xlu1 %2039 }
 0x50a   :  { %v1570_v38 = vld [vmem:[%s6528_s3 + $0x1c0] sm:$0xff] }
 0x50b   :  { %3165 = vst.msk [vmem:[%s6529_s4 + $0x1b0] sm:$0xff] %vm3110_vm5, %v2936_v14  ;;  %v2938_v63 = vmul.f32 %v2025_v27, %v1570_v38  ;;  %v2045_v27 = vpop.permute.xlu0 %2044 }
 0x512   :  { %v1571_v42 = vld [vmem:[%s6528_s3 + $0x1c8] sm:$0xff] }
 0x513   :  { %3166 = vst.msk [vmem:[%s6529_s4 + $0x1b8] sm:$0xff] %vm3110_vm5, %v2937_v21  ;;  %v2939_v36 = vmul.f32 %v2030_v57, %v1571_v42  ;;  %v2050_v57 = vpop.permute.xlu1 %2049 }
 0x51a   :  { %v1572_v45 = vld [vmem:[%s6528_s3 + $0x1d0] sm:$0xff] }
 0x51b   :  { %3167 = vst.msk [vmem:[%s6529_s4 + $0x1c0] sm:$0xff] %vm3110_vm5, %v2938_v63  ;;  %v2940_v14 = vmul.f32 %v2035_v11, %v1572_v45  ;;  %v2055_v11 = vpop.permute.xlu0 %2054 }
 0x522   :  { %v1573_v23 = vld [vmem:[%s6528_s3 + $0x1d8] sm:$0xff] }
 0x523   :  { %3168 = vst.msk [vmem:[%s6529_s4 + $0x1c8] sm:$0xff] %vm3110_vm5, %v2939_v36  ;;  %v2941_v21 = vmul.f32 %v2040_v22, %v1573_v23  ;;  %v2060_v22 = vpop.permute.xlu1 %2059 }
 0x52a   :  { %v1574_v38 = vld [vmem:[%s6528_s3 + $0x1e0] sm:$0xff] }
 0x52b   :  { %3169 = vst.msk [vmem:[%s6529_s4 + $0x1d0] sm:$0xff] %vm3110_vm5, %v2940_v14  ;;  %v2942_v63 = vmul.f32 %v2045_v27, %v1574_v38  ;;  %v2065_v27 = vpop.permute.xlu0 %2064 }
 0x532   :  { %v1575_v42 = vld [vmem:[%s6528_s3 + $0x1e8] sm:$0xff] }
 0x533   :  { %3170 = vst.msk [vmem:[%s6529_s4 + $0x1d8] sm:$0xff] %vm3110_vm5, %v2941_v21  ;;  %v2943_v36 = vmul.f32 %v2050_v57, %v1575_v42  ;;  %v2070_v57 = vpop.permute.xlu1 %2069 }
 0x53a   :  { %v1576_v45 = vld [vmem:[%s6528_s3 + $0x1f0] sm:$0xff] }
 0x53b   :  { %3171 = vst.msk [vmem:[%s6529_s4 + $0x1e0] sm:$0xff] %vm3110_vm5, %v2942_v63  ;;  %v2944_v14 = vmul.f32 %v2055_v11, %v1576_v45  ;;  %v2075_v11 = vpop.permute.xlu0 %2074 }
 0x542   :  { %v1577_v23 = vld [vmem:[%s6528_s3 + $0x1f8] sm:$0xff] }
 0x543   :  { %3172 = vst.msk [vmem:[%s6529_s4 + $0x1e8] sm:$0xff] %vm3110_vm5, %v2943_v36  ;;  %v2945_v21 = vmul.f32 %v2060_v22, %v1577_v23  ;;  %v2080_v22 = vpop.permute.xlu1 %2079 }
 0x547   :  { %v2090_v55 = vpop.permute.xlu1 %2089 }
 0x54a   :  { %v1578_v38 = vld [vmem:[%s6528_s3 + $0x200] sm:$0xff] }
 0x54b   :  { %3173 = vst.msk [vmem:[%s6529_s4 + $0x1f0] sm:$0xff] %vm3110_vm5, %v2944_v14  ;;  %v2946_v63 = vmul.f32 %v2065_v27, %v1578_v38 }
 0x552   :  { %v1579_v42 = vld [vmem:[%s6528_s3 + $0x208] sm:$0xff] }
 0x553   :  { %3174 = vst.msk [vmem:[%s6529_s4 + $0x1f8] sm:$0xff] %vm3110_vm5, %v2945_v21  ;;  %v2947_v36 = vmul.f32 %v2070_v57, %v1579_v42  ;;  %v2085_v42 = vpop.permute.xlu0 %2084  ;;  %v6753_v57 = vld [vmem:[#allocation87_spill] sm:$0xff] }
 0x554   :  { %2404 = vperm.xlu0 %3666, %v6753_v57  }
 0x55a   :  { %v1580_v45 = vld [vmem:[%s6528_s3 + $0x210] sm:$0xff] }
 0x55b   :  { %3175 = vst.msk [vmem:[%s6529_s4 + $0x200] sm:$0xff] %vm3110_vm5, %v2946_v63  ;;  %v2948_v14 = vmul.f32 %v2075_v11, %v1580_v45  ;;  %v2095_v45 = vpop.permute.xlu0 %2094 }
 0x562   :  { %v1581_v23 = vld [vmem:[%s6528_s3 + $0x218] sm:$0xff] }
 0x563   :  { %3176 = vst.msk [vmem:[%s6529_s4 + $0x208] sm:$0xff] %vm3110_vm5, %v2947_v36  ;;  %v2949_v21 = vmul.f32 %v2080_v22, %v1581_v23  ;;  %v2100_v23 = vpop.permute.xlu1 %2099  ;;  %v6755_v22 = vld [vmem:[#allocation91_spill] sm:$0xff] }
 0x564   :  { %2414 = vperm.xlu0 %3666, %v6755_v22  }
 0x56a   :  { %v1582_v26 = vld [vmem:[%s6528_s3 + $0x220] sm:$0xff] }
 0x56b   :  { %3177 = vst.msk [vmem:[%s6529_s4 + $0x210] sm:$0xff] %vm3110_vm5, %v2948_v14  ;;  %v2950_v27 = vmul.f32 %v2085_v42, %v1582_v26  ;;  %v2110_v42 = vpop.permute.xlu1 %2109 }
 0x56f   :  { %v2120_v12 = vpop.permute.xlu1 %2119 }
 0x572   :  { %v1583_v38 = vld [vmem:[%s6528_s3 + $0x228] sm:$0xff] }
 0x573   :  { %3178 = vst.msk [vmem:[%s6529_s4 + $0x218] sm:$0xff] %vm3110_vm5, %v2949_v21  ;;  %v2951_v63 = vmul.f32 %v2090_v55, %v1583_v38  ;;  %v2105_v38 = vpop.permute.xlu0 %2104 }
 0x57a   :  { %v1584_v36 = vld [vmem:[%s6528_s3 + $0x230] sm:$0xff] }
 0x57b   :  { %3179 = vst.msk [vmem:[%s6529_s4 + $0x220] sm:$0xff] %vm3110_vm5, %v2950_v27  ;;  %v2952_v11 = vmul.f32 %v2095_v45, %v1584_v36  ;;  %v6757_v27 = vld [vmem:[#allocation95_spill] sm:$0xff]  ;;  %v2115_v36 = vpop.permute.xlu0 %2114  ;;  %v6758_v45 = vld [vmem:[#allocation98_spill] sm:$0xff] }
 0x57c   :  { %2424 = vperm.xlu0 %3666, %v6757_v27  }
 0x57f   :  { %v2125_v24 = vpop.permute.xlu0 %2124 }
 0x580   :  { %2434 = vperm.xlu0 %3666, %v6758_v45   ;;  %v6763_v45 = vld [vmem:[#allocation108_spill] sm:$0xff] }
 0x582   :  { %v1585_v62 = vld [vmem:[%s6528_s3 + $0x238] sm:$0xff] }
 0x583   :  { %3180 = vst.msk [vmem:[%s6529_s4 + $0x228] sm:$0xff] %vm3110_vm5, %v2951_v63  ;;  %v2953_v14 = vmul.f32 %v2100_v23, %v1585_v62 }
 0x58a   :  { %v1586_v21 = vld [vmem:[%s6528_s3 + $0x240] sm:$0xff] }
 0x58b   :  { %3181 = vst.msk [vmem:[%s6529_s4 + $0x230] sm:$0xff] %vm3110_vm5, %v2952_v11  ;;  %v2954_v55 = vmul.f32 %v2105_v38, %v1586_v21  ;;  %v6759_v11 = vld [vmem:[#allocation100_spill] sm:$0xff]  ;;  %v2130_v21 = vpop.permute.xlu1 %2129  ;;  %v6760_v38 = vld [vmem:[#allocation102_spill] sm:$0xff] }
 0x58c   :  { %2439 = vperm.xlu1 %3665, %v6759_v11   ;;  %2444 = vperm.xlu0 %3666, %v6760_v38   ;;  %v6765_v38 = vld [vmem:[#allocation83_spill] sm:$0xff] }
 0x592   :  { %v1587_v26 = vld [vmem:[%s6528_s3 + $0x248] sm:$0xff] }
 0x593   :  { %3182 = vst.msk [vmem:[%s6529_s4 + $0x238] sm:$0xff] %vm3110_vm5, %v2953_v14  ;;  %v2955_v57 = vmul.f32 %v2110_v42, %v1587_v26 }
 0x59a   :  { %v1588_v63 = vld [vmem:[%s6528_s3 + $0x250] sm:$0xff] }
 0x59b   :  { %3183 = vst.msk [vmem:[%s6529_s4 + $0x240] sm:$0xff] %vm3110_vm5, %v2954_v55  ;;  %v2956_v62 = vmul.f32 %v2115_v36, %v1588_v63  ;;  %v6761_v55 = vld [vmem:[#allocation104_spill] sm:$0xff]  ;;  %v2135_v63 = vpop.permute.xlu0 %2134 }
 0x59c   :  { %2449 = vperm.xlu1 %3665, %v6761_v55  }
 0x5a0   :  { %2459 = vperm.xlu1 %3665, %v6763_v45  }
 0x5a2   :  { %v1589_v41 = vld [vmem:[%s6528_s3 + $0x258] sm:$0xff] }
 0x5a3   :  { %3184 = vst.msk [vmem:[%s6529_s4 + $0x248] sm:$0xff] %vm3110_vm5, %v2955_v57  ;;  %v2957_v23 = vmul.f32 %v2120_v12, %v1589_v41  ;;  %v2140_v41 = vpop.permute.xlu1 %2139  ;;  %v6762_v12 = vld [vmem:[#allocation106_spill] sm:$0xff] }
 0x5a4   :  { %2454 = vperm.xlu0 %3666, %v6762_v12   ;;  %2469 = vperm.xlu1 %3665, %v6765_v38   ;;  %v6767_v12 = vld [vmem:[#allocation86_spill] sm:$0xff] }
 0x5a8   :  { %2479 = vperm.xlu1 %3665, %v6767_v12  }
 0x5aa   :  { %v1590_v22 = vld [vmem:[%s6528_s3 + $0x260] sm:$0xff] }
 0x5ab   :  { %3185 = vst.msk [vmem:[%s6529_s4 + $0x250] sm:$0xff] %vm3110_vm5, %v2956_v62  ;;  %v2958_v26 = vmul.f32 %v2125_v24, %v1590_v22  ;;  %v2145_v22 = vpop.permute.xlu0 %2144 }
 0x5b2   :  { %v1591_v14 = vld [vmem:[%s6528_s3 + $0x268] sm:$0xff] }
 0x5b3   :  { %3186 = vst.msk [vmem:[%s6529_s4 + $0x258] sm:$0xff] %vm3110_vm5, %v2957_v23  ;;  %v2959_v42 = vmul.f32 %v2130_v21, %v1591_v14  ;;  %v2150_v14 = vpop.permute.xlu1 %2149  ;;  %v6764_v21 = vld [vmem:[#allocation81_spill] sm:$0xff] }
 0x5b4   :  { %2464 = vperm.xlu0 %3666, %v6764_v21   ;;  %v6769_v21 = vld [vmem:[#allocation90_spill] sm:$0xff] }
 0x5b5   :  { %2489 = vperm.xlu1 %3665, %v6769_v21  }
 0x5ba   :  { %v1592_v27 = vld [vmem:[%s6528_s3 + $0x270] sm:$0xff] }
 0x5bb   :  { %3187 = vst.msk [vmem:[%s6529_s4 + $0x260] sm:$0xff] %vm3110_vm5, %v2958_v26  ;;  %v2960_v36 = vmul.f32 %v2135_v63, %v1592_v27  ;;  %v2155_v27 = vpop.permute.xlu0 %2154 }
 0x5c2   :  { %v1593_v57 = vld [vmem:[%s6528_s3 + $0x278] sm:$0xff] }
 0x5c3   :  { %3188 = vst.msk [vmem:[%s6529_s4 + $0x268] sm:$0xff] %vm3110_vm5, %v2959_v42  ;;  %v2961_v62 = vmul.f32 %v2140_v41, %v1593_v57  ;;  %v2160_v57 = vpop.permute.xlu1 %2159  ;;  %v6766_v41 = vld [vmem:[#allocation85_spill] sm:$0xff] }
 0x5c4   :  { %2474 = vperm.xlu0 %3666, %v6766_v41   ;;  %v6771_v41 = vld [vmem:[#allocation94_spill] sm:$0xff] }
 0x5c5   :  { %2499 = vperm.xlu1 %3665, %v6771_v41  }
 0x5ca   :  { %v1594_v23 = vld [vmem:[%s6528_s3 + $0x280] sm:$0xff] }
 0x5cb   :  { %3189 = vst.msk [vmem:[%s6529_s4 + $0x270] sm:$0xff] %vm3110_vm5, %v2960_v36  ;;  %v2962_v24 = vmul.f32 %v2145_v22, %v1594_v23  ;;  %v2165_v23 = vpop.permute.xlu0 %2164 }
 0x5d2   :  { %v1595_v11 = vld [vmem:[%s6528_s3 + $0x288] sm:$0xff] }
 0x5d3   :  { %3190 = vst.msk [vmem:[%s6529_s4 + $0x278] sm:$0xff] %vm3110_vm5, %v2961_v62  ;;  %v2963_v26 = vmul.f32 %v2150_v14, %v1595_v11  ;;  %v2170_v11 = vpop.permute.xlu1 %2169  ;;  %v6768_v14 = vld [vmem:[#allocation88_spill] sm:$0xff] }
 0x5d4   :  { %2484 = vperm.xlu0 %3666, %v6768_v14   ;;  %v6773_v14 = vld [vmem:[#allocation97_spill] sm:$0xff] }
 0x5d5   :  { %2509 = vperm.xlu1 %3665, %v6773_v14  }
 0x5da   :  { %v1596_v42 = vld [vmem:[%s6528_s3 + $0x290] sm:$0xff] }
 0x5db   :  { %3191 = vst.msk [vmem:[%s6529_s4 + $0x280] sm:$0xff] %vm3110_vm5, %v2962_v24  ;;  %v2964_v63 = vmul.f32 %v2155_v27, %v1596_v42  ;;  %v2175_v42 = vpop.permute.xlu0 %2174 }
 0x5e2   :  { %v1597_v55 = vld [vmem:[%s6528_s3 + $0x298] sm:$0xff] }
 0x5e3   :  { %3192 = vst.msk [vmem:[%s6529_s4 + $0x288] sm:$0xff] %vm3110_vm5, %v2963_v26  ;;  %v2965_v36 = vmul.f32 %v2160_v57, %v1597_v55  ;;  %v2180_v55 = vpop.permute.xlu1 %2179  ;;  %v6770_v57 = vld [vmem:[#allocation92_spill] sm:$0xff] }
 0x5e4   :  { %2494 = vperm.xlu0 %3666, %v6770_v57   ;;  %v6775_v57 = vld [vmem:[#allocation101_spill] sm:$0xff] }
 0x5e5   :  { %2519 = vperm.xlu1 %3665, %v6775_v57  }
 0x5ea   :  { %v1598_v62 = vld [vmem:[%s6528_s3 + $0x2a0] sm:$0xff] }
 0x5eb   :  { %3193 = vst.msk [vmem:[%s6529_s4 + $0x290] sm:$0xff] %vm3110_vm5, %v2964_v63  ;;  %v2966_v22 = vmul.f32 %v2165_v23, %v1598_v62  ;;  %v2185_v62 = vpop.permute.xlu0 %2184 }
 0x5f2   :  { %v1599_v45 = vld [vmem:[%s6528_s3 + $0x2a8] sm:$0xff] }
 0x5f3   :  { %3194 = vst.msk [vmem:[%s6529_s4 + $0x298] sm:$0xff] %vm3110_vm5, %v2965_v36  ;;  %v2967_v24 = vmul.f32 %v2170_v11, %v1599_v45  ;;  %v2190_v45 = vpop.permute.xlu1 %2189  ;;  %v6772_v11 = vld [vmem:[#allocation96_spill] sm:$0xff] }
 0x5f4   :  { %2504 = vperm.xlu0 %3666, %v6772_v11   ;;  %v6777_v11 = vld [vmem:[#allocation105_spill] sm:$0xff] }
 0x5f5   :  { %2529 = vperm.xlu1 %3665, %v6777_v11   ;;  %v6780_v11 = vld [vmem:[#allocation112_spill] sm:$0xff] }
 0x5f9   :  { %2539 = vperm.xlu1 %3665, %v4563_v9  }
 0x5fa   :  { %v1600_v26 = vld [vmem:[%s6528_s3 + $0x2b0] sm:$0xff] }
 0x5fb   :  { %3195 = vst.msk [vmem:[%s6529_s4 + $0x2a0] sm:$0xff] %vm3110_vm5, %v2966_v22  ;;  %v2968_v27 = vmul.f32 %v2175_v42, %v1600_v26  ;;  %v2195_v26 = vpop.permute.xlu0 %2194 }
 0x5fd   :  { %2549 = vperm.xlu1 %3665, %v4569_v39  }
 0x601   :  { %2559 = vperm.xlu1 %3665, %v4577_v17  }
 0x602   :  { %v1601_v38 = vld [vmem:[%s6528_s3 + $0x2b8] sm:$0xff] }
 0x603   :  { %3196 = vst.msk [vmem:[%s6529_s4 + $0x2a8] sm:$0xff] %vm3110_vm5, %v2967_v24  ;;  %v2969_v63 = vmul.f32 %v2180_v55, %v1601_v38  ;;  %v2200_v38 = vpop.permute.xlu1 %2199  ;;  %v6774_v55 = vld [vmem:[#allocation99_spill] sm:$0xff] }
 0x604   :  { %2514 = vperm.xlu0 %3666, %v6774_v55  }
 0x605   :  { %2569 = vperm.xlu1 %3665, %v4586_v6  }
 0x609   :  { %2579 = vperm.xlu1 %3665, %v4596_v61  }
 0x60a   :  { %v1602_v36 = vld [vmem:[%s6528_s3 + $0x2c0] sm:$0xff] }
 0x60b   :  { %3197 = vst.msk [vmem:[%s6529_s4 + $0x2b0] sm:$0xff] %vm3110_vm5, %v2968_v27  ;;  %v2970_v23 = vmul.f32 %v2185_v62, %v1602_v36  ;;  %v2205_v36 = vpop.permute.xlu0 %2204 }
 0x60d   :  { %2589 = vperm.xlu1 %3665, %v4606_v15  }
 0x611   :  { %2599 = vperm.xlu1 %3665, %v4617_v25  }
 0x612   :  { %v1603_v12 = vld [vmem:[%s6528_s3 + $0x2c8] sm:$0xff] }
 0x613   :  { %3198 = vst.msk [vmem:[%s6529_s4 + $0x2b8] sm:$0xff] %vm3110_vm5, %v2969_v63  ;;  %v2971_v22 = vmul.f32 %v2190_v45, %v1603_v12  ;;  %v2210_v12 = vpop.permute.xlu1 %2209  ;;  %v6776_v45 = vld [vmem:[#allocation103_spill] sm:$0xff] }
 0x614   :  { %2524 = vperm.xlu0 %3666, %v6776_v45  }
 0x615   :  { %2609 = vperm.xlu1 %3665, %v4629_v33  }
 0x619   :  { %2619 = vperm.xlu1 %3665, %v4641_v43  }
 0x61a   :  { %v1604_v24 = vld [vmem:[%s6528_s3 + $0x2d0] sm:$0xff] }
 0x61b   :  { %3199 = vst.msk [vmem:[%s6529_s4 + $0x2c0] sm:$0xff] %vm3110_vm5, %v2970_v23  ;;  %v2972_v42 = vmul.f32 %v2195_v26, %v1604_v24  ;;  %v2215_v24 = vpop.permute.xlu0 %2214 }
 0x61f   :  { %v2225_v57 = vpop.permute.xlu0 %2224 }
 0x622   :  { %v1605_v21 = vld [vmem:[%s6528_s3 + $0x2d8] sm:$0xff] }
 0x623   :  { %3200 = vst.msk [vmem:[%s6529_s4 + $0x2c8] sm:$0xff] %vm3110_vm5, %v2971_v22  ;;  %v2973_v27 = vmul.f32 %v2200_v38, %v1605_v21  ;;  %v2220_v21 = vpop.permute.xlu1 %2219  ;;  %v6778_v38 = vld [vmem:[#allocation107_spill] sm:$0xff]  ;;  %v2235_v45 = vpop.permute.xlu0 %2234 }
 0x624   :  { %2534 = vperm.xlu0 %3666, %v6778_v38  }
 0x627   :  { %v2230_v9 = vpop.permute.xlu1 %2229 }
 0x62a   :  { %v1606_v63 = vld [vmem:[%s6528_s3 + $0x2e0] sm:$0xff] }
 0x62b   :  { %3201 = vst.msk [vmem:[%s6529_s4 + $0x2d0] sm:$0xff] %vm3110_vm5, %v2972_v42  ;;  %v2974_v62 = vmul.f32 %v2205_v36, %v1606_v63  ;;  %v2240_v39 = vpop.permute.xlu1 %2239 }
 0x62f   :  { %v2250_v17 = vpop.permute.xlu1 %2249 }
 0x632   :  { %v1607_v41 = vld [vmem:[%s6528_s3 + $0x2e8] sm:$0xff] }
 0x633   :  { %3202 = vst.msk [vmem:[%s6529_s4 + $0x2d8] sm:$0xff] %vm3110_vm5, %v2973_v27  ;;  %v2975_v23 = vmul.f32 %v2210_v12, %v1607_v41  ;;  %v6779_v41 = vld [vmem:[#allocation109_spill] sm:$0xff]  ;;  %v2260_v6 = vpop.permute.xlu1 %2259 }
 0x634   :  { %2544 = vperm.xlu0 %3666, %v6779_v41  }
 0x637   :  { %v2270_v61 = vpop.permute.xlu1 %2269 }
 0x638   :  { %2554 = vperm.xlu0 %3666, %v6780_v11  }
 0x63a   :  { %v1608_v22 = vld [vmem:[%s6528_s3 + $0x2f0] sm:$0xff] }
 0x63b   :  { %3203 = vst.msk [vmem:[%s6529_s4 + $0x2e0] sm:$0xff] %vm3110_vm5, %v2974_v62  ;;  %v2976_v26 = vmul.f32 %v2215_v24, %v1608_v22  ;;  %v2280_v15 = vpop.permute.xlu1 %2279 }
 0x63c   :  { %2564 = vperm.xlu0 %3666, %v4581_v56  }
 0x63f   :  { %v2290_v25 = vpop.permute.xlu1 %2289 }
 0x640   :  { %2574 = vperm.xlu0 %3666, %v4591_v53  }
 0x642   :  { %v1609_v14 = vld [vmem:[%s6528_s3 + $0x2f8] sm:$0xff] }
 0x643   :  { %3204 = vst.msk [vmem:[%s6529_s4 + $0x2e8] sm:$0xff] %vm3110_vm5, %v2975_v23  ;;  %v2977_v42 = vmul.f32 %v2220_v21, %v1609_v14  ;;  %v2245_v21 = vpop.permute.xlu0 %2244  ;;  %v2300_v33 = vpop.permute.xlu1 %2299 }
 0x644   :  { %2584 = vperm.xlu0 %3666, %v4601_v7  }
 0x647   :  { %v2255_v56 = vpop.permute.xlu0 %2254  ;;  %v2310_v43 = vpop.permute.xlu1 %2309 }
 0x648   :  { %2594 = vperm.xlu0 %3666, %v4611_v20  }
 0x64a   :  { %v1610_v55 = vld [vmem:[%s6528_s3 + $0x300] sm:$0xff] }
 0x64b   :  { %3205 = vst.msk [vmem:[%s6529_s4 + $0x2f0] sm:$0xff] %vm3110_vm5, %v2976_v26  ;;  %v2978_v63 = vmul.f32 %v2225_v57, %v1610_v55  ;;  %v2265_v53 = vpop.permute.xlu0 %2264 }
 0x64c   :  { %2604 = vperm.xlu0 %3666, %v4623_v29  }
 0x64f   :  { %v2275_v7 = vpop.permute.xlu0 %2274 }
 0x650   :  { %2614 = vperm.xlu0 %3666, %v4635_v37  }
 0x652   :  { %v1611_v27 = vld [vmem:[%s6528_s3 + $0x308] sm:$0xff] }
 0x653   :  { %3206 = vst.msk [vmem:[%s6529_s4 + $0x2f8] sm:$0xff] %vm3110_vm5, %v2977_v42  ;;  %v2979_v36 = vmul.f32 %v2230_v9, %v1611_v27  ;;  %v2285_v20 = vpop.permute.xlu0 %2284 }
 0x657   :  { %v2295_v29 = vpop.permute.xlu0 %2294 }
 0x65a   :  { %v1612_v12 = vld [vmem:[%s6528_s3 + $0x310] sm:$0xff] }
 0x65b   :  { %3207 = vst.msk [vmem:[%s6529_s4 + $0x300] sm:$0xff] %vm3110_vm5, %v2978_v63  ;;  %v2980_v23 = vmul.f32 %v2235_v45, %v1612_v12  ;;  %v2305_v37 = vpop.permute.xlu0 %2304 }
 0x662   :  { %v1613_v62 = vld [vmem:[%s6528_s3 + $0x318] sm:$0xff] }
 0x663   :  { %3208 = vst.msk [vmem:[%s6529_s4 + $0x308] sm:$0xff] %vm3110_vm5, %v2979_v36  ;;  %v2981_v22 = vmul.f32 %v2240_v39, %v1613_v62 }
 0x66a   :  { %v1614_v14 = vld [vmem:[%s6528_s3 + $0x320] sm:$0xff] }
 0x66b   :  { %3209 = vst.msk [vmem:[%s6529_s4 + $0x310] sm:$0xff] %vm3110_vm5, %v2980_v23  ;;  %v2982_v26 = vmul.f32 %v2245_v21, %v1614_v14 }
 0x672   :  { %v1615_v24 = vld [vmem:[%s6528_s3 + $0x328] sm:$0xff] }
 0x673   :  { %3210 = vst.msk [vmem:[%s6529_s4 + $0x318] sm:$0xff] %vm3110_vm5, %v2981_v22  ;;  %v2983_v38 = vmul.f32 %v2250_v17, %v1615_v24 }
 0x67a   :  { %v1616_v42 = vld [vmem:[%s6528_s3 + $0x330] sm:$0xff] }
 0x67b   :  { %3211 = vst.msk [vmem:[%s6529_s4 + $0x320] sm:$0xff] %vm3110_vm5, %v2982_v26  ;;  %v2984_v27 = vmul.f32 %v2255_v56, %v1616_v42  ;;  %v6781_v56 = vld [vmem:[#allocation110_spill] sm:$0xff] }
 0x67c   :  { %2624 = vperm.xlu0 %3666, %v6781_v56  }
 0x682   :  { %v1617_v55 = vld [vmem:[%s6528_s3 + $0x338] sm:$0xff] }
 0x683   :  { %3212 = vst.msk [vmem:[%s6529_s4 + $0x328] sm:$0xff] %vm3110_vm5, %v2983_v38  ;;  %v2985_v57 = vmul.f32 %v2260_v6, %v1617_v55 }
 0x68a   :  { %v1618_v9 = vld [vmem:[%s6528_s3 + $0x340] sm:$0xff] }
 0x68b   :  { %3213 = vst.msk [vmem:[%s6529_s4 + $0x330] sm:$0xff] %vm3110_vm5, %v2984_v27  ;;  %v2986_v41 = vmul.f32 %v2265_v53, %v1618_v9  ;;  %v6782_v27 = vld [vmem:[#allocation111_spill] sm:$0xff]  ;;  %v2320_v53 = vpop.permute.xlu1 %2319 }
 0x68c   :  { %2629 = vperm.xlu1 %3665, %v6782_v27  }
 0x692   :  { %v1619_v63 = vld [vmem:[%s6528_s3 + $0x348] sm:$0xff] }
 0x693   :  { %3214 = vst.msk [vmem:[%s6529_s4 + $0x338] sm:$0xff] %vm3110_vm5, %v2985_v57  ;;  %v2987_v36 = vmul.f32 %v2270_v61, %v1619_v63  ;;  %v2315_v63 = vpop.permute.xlu0 %2314 }
 0x69a   :  { %v1620_v12 = vld [vmem:[%s6528_s3 + $0x350] sm:$0xff] }
 0x69b   :  { %3215 = vst.msk [vmem:[%s6529_s4 + $0x340] sm:$0xff] %vm3110_vm5, %v2986_v41  ;;  %v2988_v45 = vmul.f32 %v2275_v7, %v1620_v12  ;;  %v6783_v41 = vld [vmem:[#allocation113_spill] sm:$0xff]  ;;  %v6784_v12 = vld [vmem:[#allocation114_spill] sm:$0xff] }
 0x69c   :  { %2634 = vperm.xlu0 %3666, %v6783_v41   ;;  %2639 = vperm.xlu1 %3665, %v6784_v12  }
 0x6a2   :  { %v1621_v62 = vld [vmem:[%s6528_s3 + $0x358] sm:$0xff] }
 0x6a3   :  { %3216 = vst.msk [vmem:[%s6529_s4 + $0x348] sm:$0xff] %vm3110_vm5, %v2987_v36  ;;  %v2989_v39 = vmul.f32 %v2280_v15, %v1621_v62  ;;  %v2325_v15 = vpop.permute.xlu0 %2324 }
 0x6aa   :  { %v1622_v23 = vld [vmem:[%s6528_s3 + $0x360] sm:$0xff] }
 0x6ab   :  { %3217 = vst.msk [vmem:[%s6529_s4 + $0x350] sm:$0xff] %vm3110_vm5, %v2988_v45  ;;  %v2990_v22 = vmul.f32 %v2285_v20, %v1622_v23  ;;  %v2330_v45 = vpop.permute.xlu1 %2329  ;;  %v6785_v23 = vld [vmem:[#allocation115_spill] sm:$0xff]  ;;  %v6786_v20 = vld [vmem:[#allocation116_spill] sm:$0xff] }
 0x6ac   :  { %2644 = vperm.xlu0 %3666, %v6785_v23   ;;  %2649 = vperm.xlu1 %3665, %v6786_v20  }
 0x6b0   :  { %2659 = vperm.xlu1 %3665, %v4598_v3  }
 0x6b2   :  { %v1623_v11 = vld [vmem:[%s6528_s3 + $0x368] sm:$0xff] }
 0x6b3   :  { %3218 = vst.msk [vmem:[%s6529_s4 + $0x358] sm:$0xff] %vm3110_vm5, %v2989_v39  ;;  %v2991_v14 = vmul.f32 %v2290_v25, %v1623_v11 }
 0x6ba   :  { %v1624_v24 = vld [vmem:[%s6528_s3 + $0x370] sm:$0xff] }
 0x6bb   :  { %3219 = vst.msk [vmem:[%s6529_s4 + $0x360] sm:$0xff] %vm3110_vm5, %v2990_v22  ;;  %v2992_v17 = vmul.f32 %v2295_v29, %v1624_v24  ;;  %v2340_v24 = vpop.permute.xlu1 %2339  ;;  %v6787_v29 = vld [vmem:[#allocation117_spill] sm:$0xff] }
 0x6bc   :  { %2654 = vperm.xlu0 %3666, %v6787_v29  }
 0x6bf   :  { %v2350_v3 = vpop.permute.xlu1 %2349 }
 0x6c0   :  { %2664 = vperm.xlu0 %3666, %v4603_v35  }
 0x6c2   :  { %v1625_v21 = vld [vmem:[%s6528_s3 + $0x378] sm:$0xff] }
 0x6c3   :  { %3220 = vst.msk [vmem:[%s6529_s4 + $0x368] sm:$0xff] %vm3110_vm5, %v2991_v14  ;;  %v2993_v26 = vmul.f32 %v2300_v33, %v1625_v21  ;;  %v2335_v14 = vpop.permute.xlu0 %2334 }
 0x6c4   :  { %2674 = vperm.xlu0 %3666, %v4613_v47  }
 0x6c8   :  { %2684 = vperm.xlu0 %3666, %v4625_v5  }
 0x6ca   :  { %v1626_v38 = vld [vmem:[%s6528_s3 + $0x380] sm:$0xff] }
 0x6cb   :  { %3221 = vst.msk [vmem:[%s6529_s4 + $0x370] sm:$0xff] %vm3110_vm5, %v2992_v17  ;;  %v2994_v55 = vmul.f32 %v2305_v37, %v1626_v38  ;;  %v2345_v38 = vpop.permute.xlu0 %2344 }
 0x6cc   :  { %2694 = vperm.xlu0 %3666, %v4637_v40  }
 0x6cf   :  { %v2355_v35 = vpop.permute.xlu0 %2354 }
 0x6d0   :  { %2704 = vperm.xlu0 %3666, %v4647_v50  }
 0x6d2   :  { %v1627_v42 = vld [vmem:[%s6528_s3 + $0x388] sm:$0xff] }
 0x6d3   :  { %3222 = vst.msk [vmem:[%s6529_s4 + $0x378] sm:$0xff] %vm3110_vm5, %v2993_v26  ;;  %v2995_v6 = vmul.f32 %v2310_v43, %v1627_v42  ;;  %v6788_v43 = vld [vmem:[#allocation118_spill] sm:$0xff]  ;;  %v2365_v47 = vpop.permute.xlu0 %2364 }
 0x6d4   :  { %2669 = vperm.xlu1 %3665, %v6788_v43   ;;  %2714 = vperm.xlu0 %3666, %v4659_v1  }
 0x6d7   :  { %v2375_v5 = vpop.permute.xlu0 %2374 }
 0x6d8   :  { %2679 = vperm.xlu1 %3665, %v4619_v0   ;;  %2724 = vperm.xlu0 %3666, %v4671_v18  }
 0x6da   :  { %v1628_v57 = vld [vmem:[%s6528_s3 + $0x390] sm:$0xff] }
 0x6db   :  { %3223 = vst.msk [vmem:[%s6529_s4 + $0x380] sm:$0xff] %vm3110_vm5, %v2994_v55  ;;  %v2996_v61 = vmul.f32 %v2315_v63, %v1628_v57  ;;  %v2385_v40 = vpop.permute.xlu0 %2384 }
 0x6dc   :  { %2689 = vperm.xlu1 %3665, %v4631_v13   ;;  %2734 = vperm.xlu0 %3666, %v4683_v58  }
 0x6df   :  { %v2395_v50 = vpop.permute.xlu0 %2394 }
 0x6e0   :  { %2699 = vperm.xlu1 %3665, %v4643_v48   ;;  %2744 = vperm.xlu0 %3666, %v4695_v10  }
 0x6e2   :  { %v1629_v9 = vld [vmem:[%s6528_s3 + $0x398] sm:$0xff] }
 0x6e3   :  { %3224 = vst.msk [vmem:[%s6529_s4 + $0x388] sm:$0xff] %vm3110_vm5, %v2995_v6  ;;  %v2997_v36 = vmul.f32 %v2320_v53, %v1629_v9  ;;  %v2360_v6 = vpop.permute.xlu1 %2359  ;;  %v2405_v1 = vpop.permute.xlu0 %2404 }
 0x6e4   :  { %2709 = vperm.xlu1 %3665, %v4653_v54   ;;  %2754 = vperm.xlu0 %3666, %v4709_v8  }
 0x6e7   :  { %v2370_v0 = vpop.permute.xlu1 %2369  ;;  %v2415_v18 = vpop.permute.xlu0 %2414 }
 0x6e8   :  { %2719 = vperm.xlu1 %3665, %v4665_v2   ;;  %2764 = vperm.xlu0 %3666, %v4723_v34  }
 0x6ea   :  { %v1630_v62 = vld [vmem:[%s6528_s3 + $0x3a0] sm:$0xff] }
 0x6eb   :  { %3225 = vst.msk [vmem:[%s6529_s4 + $0x390] sm:$0xff] %vm3110_vm5, %v2996_v61  ;;  %v2998_v39 = vmul.f32 %v2325_v15, %v1630_v62  ;;  %v2380_v13 = vpop.permute.xlu1 %2379  ;;  %v2425_v58 = vpop.permute.xlu0 %2424 }
 0x6ec   :  { %2729 = vperm.xlu1 %3665, %v4677_v44   ;;  %2774 = vperm.xlu0 %3666, %v4737_v30  }
 0x6ef   :  { %v2390_v48 = vpop.permute.xlu1 %2389  ;;  %v2435_v10 = vpop.permute.xlu0 %2434 }
 0x6f0   :  { %2739 = vperm.xlu1 %3665, %v4689_v32   ;;  %2784 = vperm.xlu0 %3666, %v4649_v52  }
 0x6f2   :  { %v1631_v7 = vld [vmem:[%s6528_s3 + $0x3a8] sm:$0xff] }
 0x6f3   :  { %3226 = vst.msk [vmem:[%s6529_s4 + $0x398] sm:$0xff] %vm3110_vm5, %v2997_v36  ;;  %v2999_v11 = vmul.f32 %v2330_v45, %v1631_v7  ;;  %v2400_v54 = vpop.permute.xlu1 %2399  ;;  %v2445_v8 = vpop.permute.xlu0 %2444 }
 0x6f4   :  { %2749 = vperm.xlu1 %3665, %v4703_v46   ;;  %2794 = vperm.xlu0 %3666, %v4661_v19  }
 0x6f7   :  { %v2410_v2 = vpop.permute.xlu1 %2409  ;;  %v2455_v34 = vpop.permute.xlu0 %2454 }
 0x6f8   :  { %2759 = vperm.xlu1 %3665, %v4717_v16   ;;  %2804 = vperm.xlu0 %3666, %v4673_v28  }
 0x6fa   :  { %v1632_v25 = vld [vmem:[%s6528_s3 + $0x3b0] sm:$0xff] }
 0x6fb   :  { %3227 = vst.msk [vmem:[%s6529_s4 + $0x3a0] sm:$0xff] %vm3110_vm5, %v2998_v39  ;;  %v3000_v21 = vmul.f32 %v2335_v14, %v1632_v25  ;;  %v2420_v44 = vpop.permute.xlu1 %2419  ;;  %v2465_v30 = vpop.permute.xlu0 %2464 }
 0x6fc   :  { %2769 = vperm.xlu1 %3665, %v4731_v51  }
 0x6ff   :  { %v2430_v32 = vpop.permute.xlu1 %2429  ;;  %v2475_v52 = vpop.permute.xlu0 %2474 }
 0x700   :  { %2779 = vperm.xlu1 %3665, %v4745_v49  }
 0x702   :  { %v1633_v22 = vld [vmem:[%s6528_s3 + $0x3b8] sm:$0xff] }
 0x703   :  { %3228 = vst.msk [vmem:[%s6529_s4 + $0x3a8] sm:$0xff] %vm3110_vm5, %v2999_v11  ;;  %v3001_v33 = vmul.f32 %v2340_v24, %v1633_v22  ;;  %v2440_v46 = vpop.permute.xlu1 %2439  ;;  %v2485_v19 = vpop.permute.xlu0 %2484 }
 0x704   :  { %2789 = vperm.xlu1 %3665, %v4655_v60  }
 0x707   :  { %v2450_v16 = vpop.permute.xlu1 %2449  ;;  %v2495_v28 = vpop.permute.xlu0 %2494 }
 0x708   :  { %2799 = vperm.xlu1 %3665, %v4667_v4  }
 0x70a   :  { %v1634_v17 = vld [vmem:[%s6528_s3 + $0x3c0] sm:$0xff] }
 0x70b   :  { %3229 = vst.msk [vmem:[%s6529_s4 + $0x3b0] sm:$0xff] %vm3110_vm5, %v3000_v21  ;;  %v3002_v42 = vmul.f32 %v2345_v38, %v1634_v17  ;;  %v2460_v51 = vpop.permute.xlu1 %2459 }
 0x70c   :  { %2809 = vperm.xlu1 %3665, %v4679_v59  }
 0x70f   :  { %v2470_v49 = vpop.permute.xlu1 %2469 }
 0x712   :  { %v1635_v26 = vld [vmem:[%s6528_s3 + $0x3c8] sm:$0xff] }
 0x713   :  { %3230 = vst.msk [vmem:[%s6529_s4 + $0x3b8] sm:$0xff] %vm3110_vm5, %v3001_v33  ;;  %v3003_v37 = vmul.f32 %v2350_v3, %v1635_v26  ;;  %v2480_v60 = vpop.permute.xlu1 %2479 }
 0x717   :  { %v2490_v4 = vpop.permute.xlu1 %2489 }
 0x71a   :  { %v1636_v55 = vld [vmem:[%s6528_s3 + $0x3d0] sm:$0xff] }
 0x71b   :  { %3231 = vst.msk [vmem:[%s6529_s4 + $0x3c0] sm:$0xff] %vm3110_vm5, %v3002_v42  ;;  %v3004_v27 = vmul.f32 %v2355_v35, %v1636_v55  ;;  %v2500_v59 = vpop.permute.xlu1 %2499 }
 0x722   :  { %v1637_v56 = vld [vmem:[%s6528_s3 + $0x3d8] sm:$0xff] }
 0x723   :  { %3232 = vst.msk [vmem:[%s6529_s4 + $0x3c8] sm:$0xff] %vm3110_vm5, %v3003_v37  ;;  %v3005_v57 = vmul.f32 %v2360_v6, %v1637_v56 }
 0x72a   :  { %v1638_v9 = vld [vmem:[%s6528_s3 + $0x3e0] sm:$0xff] }
 0x72b   :  { %3233 = vst.msk [vmem:[%s6529_s4 + $0x3d0] sm:$0xff] %vm3110_vm5, %v3004_v27  ;;  %v3006_v53 = vmul.f32 %v2365_v47, %v1638_v9 }
 0x732   :  { %v1639_v63 = vld [vmem:[%s6528_s3 + $0x3e8] sm:$0xff] }
 0x733   :  { %3234 = vst.msk [vmem:[%s6529_s4 + $0x3d8] sm:$0xff] %vm3110_vm5, %v3005_v57  ;;  %v3007_v61 = vmul.f32 %v2370_v0, %v1639_v63 }
 0x73a   :  { %v1640_v41 = vld [vmem:[%s6528_s3 + $0x3f0] sm:$0xff] }
 0x73b   :  { %3235 = vst.msk [vmem:[%s6529_s4 + $0x3e0] sm:$0xff] %vm3110_vm5, %v3006_v53  ;;  %v3008_v12 = vmul.f32 %v2375_v5, %v1640_v41 }
 0x742   :  { %v1641_v36 = vld [vmem:[%s6528_s3 + $0x3f8] sm:$0xff] }
 0x743   :  { %3236 = vst.msk [vmem:[%s6529_s4 + $0x3e8] sm:$0xff] %vm3110_vm5, %v3007_v61  ;;  %v3009_v62 = vmul.f32 %v2380_v13, %v1641_v36 }
 0x74a   :  { %v1642_v7 = vld [vmem:[%s6528_s3 + $0x400] sm:$0xff] }
 0x74b   :  { %3237 = vst.msk [vmem:[%s6529_s4 + $0x3f0] sm:$0xff] %vm3110_vm5, %v3008_v12  ;;  %v3010_v45 = vmul.f32 %v2385_v40, %v1642_v7 }
 0x752   :  { %v1643_v15 = vld [vmem:[%s6528_s3 + $0x408] sm:$0xff] }
 0x753   :  { %3238 = vst.msk [vmem:[%s6529_s4 + $0x3f8] sm:$0xff] %vm3110_vm5, %v3009_v62  ;;  %v3011_v39 = vmul.f32 %v2390_v48, %v1643_v15 }
 0x75a   :  { %v1644_v23 = vld [vmem:[%s6528_s3 + $0x410] sm:$0xff] }
 0x75b   :  { %3239 = vst.msk [vmem:[%s6529_s4 + $0x400] sm:$0xff] %vm3110_vm5, %v3010_v45  ;;  %v3012_v20 = vmul.f32 %v2395_v50, %v1644_v23  ;;  %v6789_v50 = vld [vmem:[#allocation119_spill] sm:$0xff] }
 0x75c   :  { %2814 = vperm.xlu0 %3666, %v6789_v50  }
 0x762   :  { %v1645_v11 = vld [vmem:[%s6528_s3 + $0x418] sm:$0xff] }
 0x763   :  { %3240 = vst.msk [vmem:[%s6529_s4 + $0x408] sm:$0xff] %vm3110_vm5, %v3011_v39  ;;  %v3013_v25 = vmul.f32 %v2400_v54, %v1645_v11 }
 0x76a   :  { %v1646_v22 = vld [vmem:[%s6528_s3 + $0x420] sm:$0xff] }
 0x76b   :  { %3241 = vst.msk [vmem:[%s6529_s4 + $0x410] sm:$0xff] %vm3110_vm5, %v3012_v20  ;;  %v3014_v24 = vmul.f32 %v2405_v1, %v1646_v22  ;;  %v6790_v20 = vld [vmem:[#allocation120_spill] sm:$0xff]  ;;  %v2510_v1 = vpop.permute.xlu1 %2509 }
 0x76c   :  { %2819 = vperm.xlu1 %3665, %v6790_v20  }
 0x772   :  { %v1647_v14 = vld [vmem:[%s6528_s3 + $0x428] sm:$0xff] }
 0x773   :  { %3242 = vst.msk [vmem:[%s6529_s4 + $0x418] sm:$0xff] %vm3110_vm5, %v3013_v25  ;;  %v3015_v21 = vmul.f32 %v2410_v2, %v1647_v14  ;;  %v2505_v14 = vpop.permute.xlu0 %2504 }
 0x77a   :  { %v1648_v29 = vld [vmem:[%s6528_s3 + $0x430] sm:$0xff] }
 0x77b   :  { %3243 = vst.msk [vmem:[%s6529_s4 + $0x420] sm:$0xff] %vm3110_vm5, %v3014_v24  ;;  %v3016_v17 = vmul.f32 %v2415_v18, %v1648_v29  ;;  %v6791_v24 = vld [vmem:[#allocation121_spill] sm:$0xff]  ;;  %v6792_v29 = vld [vmem:[#allocation122_spill] sm:$0xff] }
 0x77c   :  { %2824 = vperm.xlu0 %3666, %v6791_v24   ;;  %2829 = vperm.xlu1 %3665, %v6792_v29  }
 0x782   :  { %v1649_v33 = vld [vmem:[%s6528_s3 + $0x438] sm:$0xff] }
 0x783   :  { %3244 = vst.msk [vmem:[%s6529_s4 + $0x428] sm:$0xff] %vm3110_vm5, %v3015_v21  ;;  %v3017_v26 = vmul.f32 %v2420_v44, %v1649_v33  ;;  %v2515_v44 = vpop.permute.xlu0 %2514 }
 0x78a   :  { %v1650_v38 = vld [vmem:[%s6528_s3 + $0x440] sm:$0xff] }
 0x78b   :  { %3245 = vst.msk [vmem:[%s6529_s4 + $0x430] sm:$0xff] %vm3110_vm5, %v3016_v17  ;;  %v3018_v42 = vmul.f32 %v2425_v58, %v1650_v38  ;;  %v2520_v17 = vpop.permute.xlu1 %2519  ;;  %v6793_v38 = vld [vmem:[#allocation123_spill] sm:$0xff]  ;;  %v6794_v58 = vld [vmem:[#allocation124_spill] sm:$0xff] }
 0x78c   :  { %2834 = vperm.xlu0 %3666, %v6793_v38   ;;  %2839 = vperm.xlu1 %3665, %v6794_v58  }
 0x792   :  { %v1651_v3 = vld [vmem:[%s6528_s3 + $0x448] sm:$0xff] }
 0x793   :  { %3246 = vst.msk [vmem:[%s6529_s4 + $0x438] sm:$0xff] %vm3110_vm5, %v3017_v26  ;;  %v3019_v37 = vmul.f32 %v2430_v32, %v1651_v3 }
 0x79a   :  { %v1652_v43 = vld [vmem:[%s6528_s3 + $0x450] sm:$0xff] }
 0x79b   :  { %3247 = vst.msk [vmem:[%s6529_s4 + $0x440] sm:$0xff] %vm3110_vm5, %v3018_v42  ;;  %v3020_v56 = vmul.f32 %v2435_v10, %v1652_v43  ;;  %v2530_v43 = vpop.permute.xlu1 %2529  ;;  %v6795_v10 = vld [vmem:[#allocation2_spill] sm:$0xff] }
 0x79c   :  { %2844 = vperm.xlu0 %3666, %v6795_v10  }
 0x7a2   :  { %v1653_v55 = vld [vmem:[%s6528_s3 + $0x458] sm:$0xff] }
 0x7a3   :  { %3248 = vst.msk [vmem:[%s6529_s4 + $0x448] sm:$0xff] %vm3110_vm5, %v3019_v37  ;;  %v3021_v35 = vmul.f32 %v2440_v46, %v1653_v55  ;;  %v2525_v37 = vpop.permute.xlu0 %2524 }
 0x7aa   :  { %v1654_v6 = vld [vmem:[%s6528_s3 + $0x460] sm:$0xff] }
 0x7ab   :  { %3249 = vst.msk [vmem:[%s6529_s4 + $0x450] sm:$0xff] %vm3110_vm5, %v3020_v56  ;;  %v3022_v57 = vmul.f32 %v2445_v8, %v1654_v6  ;;  %v6796_v56 = vld [vmem:[#allocation3_spill] sm:$0xff]  ;;  %v2540_v8 = vpop.permute.xlu1 %2539 }
 0x7ac   :  { %2849 = vperm.xlu1 %3665, %v6796_v56  }
 0x7b2   :  { %v1655_v27 = vld [vmem:[%s6528_s3 + $0x468] sm:$0xff] }
 0x7b3   :  { %3250 = vst.msk [vmem:[%s6529_s4 + $0x458] sm:$0xff] %vm3110_vm5, %v3021_v35  ;;  %v3023_v9 = vmul.f32 %v2450_v16, %v1655_v27  ;;  %v2535_v27 = vpop.permute.xlu0 %2534 }
 0x7ba   :  { %v1656_v63 = vld [vmem:[%s6528_s3 + $0x470] sm:$0xff] }
 0x7bb   :  { %3251 = vst.msk [vmem:[%s6529_s4 + $0x460] sm:$0xff] %vm3110_vm5, %v3022_v57  ;;  %v3024_v0 = vmul.f32 %v2455_v34, %v1656_v63  ;;  %v6797_v57 = vld [vmem:[#allocation4_spill] sm:$0xff]  ;;  %v6798_v63 = vld [vmem:[#allocation5_spill] sm:$0xff] }
 0x7bc   :  { %2854 = vperm.xlu0 %3666, %v6797_v57   ;;  %2859 = vperm.xlu1 %3665, %v6798_v63  }
 0x7c2   :  { %v1657_v47 = vld [vmem:[%s6528_s3 + $0x478] sm:$0xff] }
 0x7c3   :  { %3252 = vst.msk [vmem:[%s6529_s4 + $0x468] sm:$0xff] %vm3110_vm5, %v3023_v9  ;;  %v3025_v53 = vmul.f32 %v2460_v51, %v1657_v47  ;;  %v2545_v51 = vpop.permute.xlu0 %2544 }
 0x7ca   :  { %v1658_v61 = vld [vmem:[%s6528_s3 + $0x480] sm:$0xff] }
 0x7cb   :  { %3253 = vst.msk [vmem:[%s6529_s4 + $0x470] sm:$0xff] %vm3110_vm5, %v3024_v0  ;;  %v3026_v36 = vmul.f32 %v2465_v30, %v1658_v61  ;;  %v2550_v0 = vpop.permute.xlu1 %2549  ;;  %v6799_v61 = vld [vmem:[#allocation6_spill] sm:$0xff]  ;;  %v6800_v30 = vld [vmem:[#allocation7_spill] sm:$0xff] }
 0x7cc   :  { %2864 = vperm.xlu0 %3666, %v6799_v61   ;;  %2869 = vperm.xlu1 %3665, %v6800_v30  }
 0x7d0   :  { %2879 = vperm.xlu1 %3665, %v4798_v31  }
 0x7d2   :  { %v1659_v41 = vld [vmem:[%s6528_s3 + $0x488] sm:$0xff] }
 0x7d3   :  { %3254 = vst.msk [vmem:[%s6529_s4 + $0x478] sm:$0xff] %vm3110_vm5, %v3025_v53  ;;  %v3027_v5 = vmul.f32 %v2470_v49, %v1659_v41 }
 0x7da   :  { %v1660_v13 = vld [vmem:[%s6528_s3 + $0x490] sm:$0xff] }
 0x7db   :  { %3255 = vst.msk [vmem:[%s6529_s4 + $0x480] sm:$0xff] %vm3110_vm5, %v3026_v36  ;;  %v3028_v62 = vmul.f32 %v2475_v52, %v1660_v13  ;;  %v2560_v13 = vpop.permute.xlu1 %2559  ;;  %v6801_v52 = vld [vmem:[#allocation8_spill] sm:$0xff] }
 0x7dc   :  { %2874 = vperm.xlu0 %3666, %v6801_v52  }
 0x7df   :  { %v2570_v31 = vpop.permute.xlu1 %2569 }
 0x7e2   :  { %v1661_v12 = vld [vmem:[%s6528_s3 + $0x498] sm:$0xff] }
 0x7e3   :  { %3256 = vst.msk [vmem:[%s6529_s4 + $0x488] sm:$0xff] %vm3110_vm5, %v3027_v5  ;;  %v3029_v7 = vmul.f32 %v2480_v60, %v1661_v12  ;;  %v2555_v5 = vpop.permute.xlu0 %2554 }
 0x7ea   :  { %v1662_v15 = vld [vmem:[%s6528_s3 + $0x4a0] sm:$0xff] }
 0x7eb   :  { %3257 = vst.msk [vmem:[%s6529_s4 + $0x490] sm:$0xff] %vm3110_vm5, %v3028_v62  ;;  %v3030_v48 = vmul.f32 %v2485_v19, %v1662_v15  ;;  %v2565_v15 = vpop.permute.xlu0 %2564 }
 0x7f2   :  { %v1663_v40 = vld [vmem:[%s6528_s3 + $0x4a8] sm:$0xff] }
 0x7f3   :  { %3258 = vst.msk [vmem:[%s6529_s4 + $0x498] sm:$0xff] %vm3110_vm5, %v3029_v7  ;;  %v3031_v45 = vmul.f32 %v2490_v4, %v1663_v40 }
 0x7fa   :  { %v1664_v39 = vld [vmem:[%s6528_s3 + $0x4b0] sm:$0xff] }
 0x7fb   :  { %3259 = vst.msk [vmem:[%s6529_s4 + $0x4a0] sm:$0xff] %vm3110_vm5, %v3030_v48  ;;  %v3032_v11 = vmul.f32 %v2495_v28, %v1664_v39  ;;  %v2580_v39 = vpop.permute.xlu1 %2579 }
 0x802   :  { %v1665_v23 = vld [vmem:[%s6528_s3 + $0x4b8] sm:$0xff] }
 0x803   :  { %3260 = vst.msk [vmem:[%s6529_s4 + $0x4a8] sm:$0xff] %vm3110_vm5, %v3031_v45  ;;  %v3033_v54 = vmul.f32 %v2500_v59, %v1665_v23  ;;  %v2575_v45 = vpop.permute.xlu0 %2574 }
 0x807   :  { %v2585_v50 = vpop.permute.xlu0 %2584 }
 0x80a   :  { %v1666_v25 = vld [vmem:[%s6528_s3 + $0x4c0] sm:$0xff] }
 0x80b   :  { %3261 = vst.msk [vmem:[%s6529_s4 + $0x4b0] sm:$0xff] %vm3110_vm5, %v3032_v11  ;;  %v3034_v2 = vmul.f32 %v2505_v14, %v1666_v25 }
 0x812   :  { %v1667_v22 = vld [vmem:[%s6528_s3 + $0x4c8] sm:$0xff] }
 0x813   :  { %3262 = vst.msk [vmem:[%s6529_s4 + $0x4b8] sm:$0xff] %vm3110_vm5, %v3033_v54  ;;  %v3035_v21 = vmul.f32 %v2510_v1, %v1667_v22  ;;  %v2590_v54 = vpop.permute.xlu1 %2589  ;;  %v2595_v1 = vpop.permute.xlu0 %2594 }
 0x81a   :  { %v1668_v33 = vld [vmem:[%s6528_s3 + $0x4d0] sm:$0xff] }
 0x81b   :  { %3263 = vst.msk [vmem:[%s6529_s4 + $0x4c0] sm:$0xff] %vm3110_vm5, %v3034_v2  ;;  %v3036_v26 = vmul.f32 %v2515_v44, %v1668_v33  ;;  %v2600_v2 = vpop.permute.xlu1 %2599 }
 0x81f   :  { %v2610_v44 = vpop.permute.xlu1 %2609 }
 0x822   :  { %v1669_v18 = vld [vmem:[%s6528_s3 + $0x4d8] sm:$0xff] }
 0x823   :  { %3264 = vst.msk [vmem:[%s6529_s4 + $0x4c8] sm:$0xff] %vm3110_vm5, %v3035_v21  ;;  %v3037_v3 = vmul.f32 %v2520_v17, %v1669_v18  ;;  %v2605_v18 = vpop.permute.xlu0 %2604 }
 0x827   :  { %v2615_v58 = vpop.permute.xlu0 %2614 }
 0x82a   :  { %v1670_v32 = vld [vmem:[%s6528_s3 + $0x4e0] sm:$0xff] }
 0x82b   :  { %3265 = vst.msk [vmem:[%s6529_s4 + $0x4d0] sm:$0xff] %vm3110_vm5, %v3036_v26  ;;  %v3038_v55 = vmul.f32 %v2525_v37, %v1670_v32  ;;  %v2620_v32 = vpop.permute.xlu1 %2619  ;;  %v2625_v10 = vpop.permute.xlu0 %2624 }
 0x832   :  { %v1671_v42 = vld [vmem:[%s6528_s3 + $0x4e8] sm:$0xff] }
 0x833   :  { %3266 = vst.msk [vmem:[%s6529_s4 + $0x4d8] sm:$0xff] %vm3110_vm5, %v3037_v3  ;;  %v3039_v46 = vmul.f32 %v2530_v43, %v1671_v42 }
 0x83a   :  { %v1672_v35 = vld [vmem:[%s6528_s3 + $0x4f0] sm:$0xff] }
 0x83b   :  { %3267 = vst.msk [vmem:[%s6529_s4 + $0x4e0] sm:$0xff] %vm3110_vm5, %v3038_v55  ;;  %v3040_v16 = vmul.f32 %v2535_v27, %v1672_v35 }
 0x842   :  { %v1673_v6 = vld [vmem:[%s6528_s3 + $0x4f8] sm:$0xff] }
 0x843   :  { %3268 = vst.msk [vmem:[%s6529_s4 + $0x4e8] sm:$0xff] %vm3110_vm5, %v3039_v46  ;;  %v3041_v9 = vmul.f32 %v2540_v8, %v1673_v6  ;;  %v2630_v46 = vpop.permute.xlu1 %2629  ;;  %v2635_v8 = vpop.permute.xlu0 %2634 }
 0x84a   :  { %v1674_v47 = vld [vmem:[%s6528_s3 + $0x500] sm:$0xff] }
 0x84b   :  { %3269 = vst.msk [vmem:[%s6529_s4 + $0x4f0] sm:$0xff] %vm3110_vm5, %v3040_v16  ;;  %v3042_v53 = vmul.f32 %v2545_v51, %v1674_v47  ;;  %v2640_v16 = vpop.permute.xlu1 %2639 }
 0x84f   :  { %v2650_v51 = vpop.permute.xlu1 %2649 }
 0x852   :  { %v1675_v34 = vld [vmem:[%s6528_s3 + $0x508] sm:$0xff] }
 0x853   :  { %3270 = vst.msk [vmem:[%s6529_s4 + $0x4f8] sm:$0xff] %vm3110_vm5, %v3041_v9  ;;  %v3043_v41 = vmul.f32 %v2550_v0, %v1675_v34  ;;  %v2645_v34 = vpop.permute.xlu0 %2644 }
 0x857   :  { %v2655_v30 = vpop.permute.xlu0 %2654 }
 0x85a   :  { %v1676_v49 = vld [vmem:[%s6528_s3 + $0x510] sm:$0xff] }
 0x85b   :  { %3271 = vst.msk [vmem:[%s6529_s4 + $0x500] sm:$0xff] %vm3110_vm5, %v3042_v53  ;;  %v3044_v12 = vmul.f32 %v2555_v5, %v1676_v49  ;;  %v2660_v49 = vpop.permute.xlu1 %2659  ;;  %v2665_v52 = vpop.permute.xlu0 %2664 }
 0x862   :  { %v1677_v36 = vld [vmem:[%s6528_s3 + $0x518] sm:$0xff] }
 0x863   :  { %3272 = vst.msk [vmem:[%s6529_s4 + $0x508] sm:$0xff] %vm3110_vm5, %v3043_v41  ;;  %v3045_v60 = vmul.f32 %v2560_v13, %v1677_v36 }
 0x86a   :  { %v1678_v62 = vld [vmem:[%s6528_s3 + $0x520] sm:$0xff] }
 0x86b   :  { %3273 = vst.msk [vmem:[%s6529_s4 + $0x510] sm:$0xff] %vm3110_vm5, %v3044_v12  ;;  %v3046_v40 = vmul.f32 %v2565_v15, %v1678_v62 }
 0x872   :  { %v1679_v7 = vld [vmem:[%s6528_s3 + $0x528] sm:$0xff] }
 0x873   :  { %3274 = vst.msk [vmem:[%s6529_s4 + $0x518] sm:$0xff] %vm3110_vm5, %v3045_v60  ;;  %v3047_v19 = vmul.f32 %v2570_v31, %v1679_v7  ;;  %v2670_v60 = vpop.permute.xlu1 %2669 }
 0x87a   :  { %v1680_v4 = vld [vmem:[%s6528_s3 + $0x530] sm:$0xff] }
 0x87b   :  { %3275 = vst.msk [vmem:[%s6529_s4 + $0x520] sm:$0xff] %vm3110_vm5, %v3046_v40  ;;  %v3048_v23 = vmul.f32 %v2575_v45, %v1680_v4  ;;  %v2675_v40 = vpop.permute.xlu0 %2674 }
 0x882   :  { %v1681_v48 = vld [vmem:[%s6528_s3 + $0x538] sm:$0xff] }
 0x883   :  { %3276 = vst.msk [vmem:[%s6529_s4 + $0x528] sm:$0xff] %vm3110_vm5, %v3047_v19  ;;  %v3049_v28 = vmul.f32 %v2580_v39, %v1681_v48  ;;  %v2680_v19 = vpop.permute.xlu1 %2679 }
 0x88a   :  { %v1682_v59 = vld [vmem:[%s6528_s3 + $0x540] sm:$0xff] }
 0x88b   :  { %3277 = vst.msk [vmem:[%s6529_s4 + $0x530] sm:$0xff] %vm3110_vm5, %v3048_v23  ;;  %v3050_v20 = vmul.f32 %v2585_v50, %v1682_v59  ;;  %v2685_v23 = vpop.permute.xlu0 %2684 }
 0x892   :  { %v1683_v11 = vld [vmem:[%s6528_s3 + $0x548] sm:$0xff] }
 0x893   :  { %3278 = vst.msk [vmem:[%s6529_s4 + $0x538] sm:$0xff] %vm3110_vm5, %v3049_v28  ;;  %v3051_v25 = vmul.f32 %v2590_v54, %v1683_v11  ;;  %v2690_v28 = vpop.permute.xlu1 %2689 }
 0x89a   :  { %v1684_v22 = vld [vmem:[%s6528_s3 + $0x550] sm:$0xff] }
 0x89b   :  { %3279 = vst.msk [vmem:[%s6529_s4 + $0x540] sm:$0xff] %vm3110_vm5, %v3050_v20  ;;  %v3052_v24 = vmul.f32 %v2595_v1, %v1684_v22  ;;  %v2695_v20 = vpop.permute.xlu0 %2694 }
 0x8a2   :  { %v1685_v14 = vld [vmem:[%s6528_s3 + $0x558] sm:$0xff] }
 0x8a3   :  { %3280 = vst.msk [vmem:[%s6529_s4 + $0x548] sm:$0xff] %vm3110_vm5, %v3051_v25  ;;  %v3053_v21 = vmul.f32 %v2600_v2, %v1685_v14  ;;  %v2700_v25 = vpop.permute.xlu1 %2699 }
 0x8aa   :  { %v1686_v29 = vld [vmem:[%s6528_s3 + $0x560] sm:$0xff] }
 0x8ab   :  { %3281 = vst.msk [vmem:[%s6529_s4 + $0x550] sm:$0xff] %vm3110_vm5, %v3052_v24  ;;  %v3054_v17 = vmul.f32 %v2605_v18, %v1686_v29  ;;  %v2705_v24 = vpop.permute.xlu0 %2704 }
 0x8b2   :  { %v1687_v33 = vld [vmem:[%s6528_s3 + $0x568] sm:$0xff] }
 0x8b3   :  { %3282 = vst.msk [vmem:[%s6529_s4 + $0x558] sm:$0xff] %vm3110_vm5, %v3053_v21  ;;  %v3055_v26 = vmul.f32 %v2610_v44, %v1687_v33  ;;  %v2710_v21 = vpop.permute.xlu1 %2709 }
 0x8ba   :  { %v1688_v38 = vld [vmem:[%s6528_s3 + $0x570] sm:$0xff] }
 0x8bb   :  { %3283 = vst.msk [vmem:[%s6529_s4 + $0x560] sm:$0xff] %vm3110_vm5, %v3054_v17  ;;  %v3056_v42 = vmul.f32 %v2615_v58, %v1688_v38  ;;  %v2715_v17 = vpop.permute.xlu0 %2714 }
 0x8c2   :  { %v1689_v3 = vld [vmem:[%s6528_s3 + $0x578] sm:$0xff] }
 0x8c3   :  { %3284 = vst.msk [vmem:[%s6529_s4 + $0x568] sm:$0xff] %vm3110_vm5, %v3055_v26  ;;  %v3057_v37 = vmul.f32 %v2620_v32, %v1689_v3  ;;  %v2720_v26 = vpop.permute.xlu1 %2719 }
 0x8ca   :  { %v1690_v43 = vld [vmem:[%s6528_s3 + $0x580] sm:$0xff] }
 0x8cb   :  { %3285 = vst.msk [vmem:[%s6529_s4 + $0x570] sm:$0xff] %vm3110_vm5, %v3056_v42  ;;  %v3058_v56 = vmul.f32 %v2625_v10, %v1690_v43  ;;  %v2725_v42 = vpop.permute.xlu0 %2724 }
 0x8d2   :  { %v1691_v55 = vld [vmem:[%s6528_s3 + $0x588] sm:$0xff] }
 0x8d3   :  { %3286 = vst.msk [vmem:[%s6529_s4 + $0x578] sm:$0xff] %vm3110_vm5, %v3057_v37  ;;  %v3059_v35 = vmul.f32 %v2630_v46, %v1691_v55  ;;  %v2730_v37 = vpop.permute.xlu1 %2729 }
 0x8da   :  { %v1692_v6 = vld [vmem:[%s6528_s3 + $0x590] sm:$0xff] }
 0x8db   :  { %3287 = vst.msk [vmem:[%s6529_s4 + $0x580] sm:$0xff] %vm3110_vm5, %v3058_v56  ;;  %v3060_v57 = vmul.f32 %v2635_v8, %v1692_v6  ;;  %v2735_v56 = vpop.permute.xlu0 %2734 }
 0x8e2   :  { %v1693_v27 = vld [vmem:[%s6528_s3 + $0x598] sm:$0xff] }
 0x8e3   :  { %3288 = vst.msk [vmem:[%s6529_s4 + $0x588] sm:$0xff] %vm3110_vm5, %v3059_v35  ;;  %v3061_v9 = vmul.f32 %v2640_v16, %v1693_v27  ;;  %v2740_v35 = vpop.permute.xlu1 %2739 }
 0x8ea   :  { %v1694_v63 = vld [vmem:[%s6528_s3 + $0x5a0] sm:$0xff] }
 0x8eb   :  { %3289 = vst.msk [vmem:[%s6529_s4 + $0x590] sm:$0xff] %vm3110_vm5, %v3060_v57  ;;  %v3062_v0 = vmul.f32 %v2645_v34, %v1694_v63  ;;  %v2745_v57 = vpop.permute.xlu0 %2744 }
 0x8f2   :  { %v1695_v47 = vld [vmem:[%s6528_s3 + $0x5a8] sm:$0xff] }
 0x8f3   :  { %3290 = vst.msk [vmem:[%s6529_s4 + $0x598] sm:$0xff] %vm3110_vm5, %v3061_v9  ;;  %v3063_v53 = vmul.f32 %v2650_v51, %v1695_v47  ;;  %v2750_v9 = vpop.permute.xlu1 %2749 }
 0x8fa   :  { %v1696_v61 = vld [vmem:[%s6528_s3 + $0x5b0] sm:$0xff] }
 0x8fb   :  { %3291 = vst.msk [vmem:[%s6529_s4 + $0x5a0] sm:$0xff] %vm3110_vm5, %v3062_v0  ;;  %v3064_v36 = vmul.f32 %v2655_v30, %v1696_v61  ;;  %v2755_v0 = vpop.permute.xlu0 %2754 }
 0x902   :  { %v1697_v41 = vld [vmem:[%s6528_s3 + $0x5b8] sm:$0xff] }
 0x903   :  { %3292 = vst.msk [vmem:[%s6529_s4 + $0x5a8] sm:$0xff] %vm3110_vm5, %v3063_v53  ;;  %v3065_v5 = vmul.f32 %v2660_v49, %v1697_v41  ;;  %v2760_v53 = vpop.permute.xlu1 %2759 }
 0x90a   :  { %v1698_v13 = vld [vmem:[%s6528_s3 + $0x5c0] sm:$0xff] }
 0x90b   :  { %3293 = vst.msk [vmem:[%s6529_s4 + $0x5b0] sm:$0xff] %vm3110_vm5, %v3064_v36  ;;  %v3066_v62 = vmul.f32 %v2665_v52, %v1698_v13  ;;  %v2765_v36 = vpop.permute.xlu0 %2764 }
 0x912   :  { %v1699_v12 = vld [vmem:[%s6528_s3 + $0x5c8] sm:$0xff] }
 0x913   :  { %3294 = vst.msk [vmem:[%s6529_s4 + $0x5b8] sm:$0xff] %vm3110_vm5, %v3065_v5  ;;  %v3067_v7 = vmul.f32 %v2670_v60, %v1699_v12  ;;  %v2770_v5 = vpop.permute.xlu1 %2769 }
 0x91a   :  { %v1700_v15 = vld [vmem:[%s6528_s3 + $0x5d0] sm:$0xff] }
 0x91b   :  { %3295 = vst.msk [vmem:[%s6529_s4 + $0x5c0] sm:$0xff] %vm3110_vm5, %v3066_v62  ;;  %v3068_v4 = vmul.f32 %v2675_v40, %v1700_v15  ;;  %v2775_v62 = vpop.permute.xlu0 %2774 }
 0x922   :  { %v1701_v31 = vld [vmem:[%s6528_s3 + $0x5d8] sm:$0xff] }
 0x923   :  { %3296 = vst.msk [vmem:[%s6529_s4 + $0x5c8] sm:$0xff] %vm3110_vm5, %v3067_v7  ;;  %v3069_v48 = vmul.f32 %v2680_v19, %v1701_v31  ;;  %v2780_v7 = vpop.permute.xlu1 %2779 }
 0x92a   :  { %v1702_v45 = vld [vmem:[%s6528_s3 + $0x5e0] sm:$0xff] }
 0x92b   :  { %3297 = vst.msk [vmem:[%s6529_s4 + $0x5d0] sm:$0xff] %vm3110_vm5, %v3068_v4  ;;  %v3070_v59 = vmul.f32 %v2685_v23, %v1702_v45  ;;  %v2785_v4 = vpop.permute.xlu0 %2784 }
 0x932   :  { %v1703_v39 = vld [vmem:[%s6528_s3 + $0x5e8] sm:$0xff] }
 0x933   :  { %3298 = vst.msk [vmem:[%s6529_s4 + $0x5d8] sm:$0xff] %vm3110_vm5, %v3069_v48  ;;  %v3071_v11 = vmul.f32 %v2690_v28, %v1703_v39  ;;  %v2790_v48 = vpop.permute.xlu1 %2789 }
 0x93a   :  { %v1704_v50 = vld [vmem:[%s6528_s3 + $0x5f0] sm:$0xff] }
 0x93b   :  { %3299 = vst.msk [vmem:[%s6529_s4 + $0x5e0] sm:$0xff] %vm3110_vm5, %v3070_v59  ;;  %v3072_v22 = vmul.f32 %v2695_v20, %v1704_v50  ;;  %v2795_v59 = vpop.permute.xlu0 %2794 }
 0x942   :  { %v1705_v54 = vld [vmem:[%s6528_s3 + $0x5f8] sm:$0xff] }
 0x943   :  { %3300 = vst.msk [vmem:[%s6529_s4 + $0x5e8] sm:$0xff] %vm3110_vm5, %v3071_v11  ;;  %v3073_v14 = vmul.f32 %v2700_v25, %v1705_v54  ;;  %v2800_v11 = vpop.permute.xlu1 %2799 }
 0x94a   :  { %v1706_v1 = vld [vmem:[%s6528_s3 + $0x600] sm:$0xff] }
 0x94b   :  { %3301 = vst.msk [vmem:[%s6529_s4 + $0x5f0] sm:$0xff] %vm3110_vm5, %v3072_v22  ;;  %v3074_v29 = vmul.f32 %v2705_v24, %v1706_v1  ;;  %v2805_v22 = vpop.permute.xlu0 %2804 }
 0x952   :  { %v1707_v2 = vld [vmem:[%s6528_s3 + $0x608] sm:$0xff] }
 0x953   :  { %3302 = vst.msk [vmem:[%s6529_s4 + $0x5f8] sm:$0xff] %vm3110_vm5, %v3073_v14  ;;  %v3075_v33 = vmul.f32 %v2710_v21, %v1707_v2  ;;  %v2810_v14 = vpop.permute.xlu1 %2809 }
 0x95a   :  { %v1708_v18 = vld [vmem:[%s6528_s3 + $0x610] sm:$0xff] }
 0x95b   :  { %3303 = vst.msk [vmem:[%s6529_s4 + $0x600] sm:$0xff] %vm3110_vm5, %v3074_v29  ;;  %v3076_v38 = vmul.f32 %v2715_v17, %v1708_v18  ;;  %v2815_v29 = vpop.permute.xlu0 %2814 }
 0x962   :  { %v1709_v44 = vld [vmem:[%s6528_s3 + $0x618] sm:$0xff] }
 0x963   :  { %3304 = vst.msk [vmem:[%s6529_s4 + $0x608] sm:$0xff] %vm3110_vm5, %v3075_v33  ;;  %v3077_v3 = vmul.f32 %v2720_v26, %v1709_v44  ;;  %v2820_v33 = vpop.permute.xlu1 %2819 }
 0x96a   :  { %v1710_v58 = vld [vmem:[%s6528_s3 + $0x620] sm:$0xff] }
 0x96b   :  { %3305 = vst.msk [vmem:[%s6529_s4 + $0x610] sm:$0xff] %vm3110_vm5, %v3076_v38  ;;  %v3078_v43 = vmul.f32 %v2725_v42, %v1710_v58  ;;  %v2825_v38 = vpop.permute.xlu0 %2824 }
 0x972   :  { %v1711_v32 = vld [vmem:[%s6528_s3 + $0x628] sm:$0xff] }
 0x973   :  { %3306 = vst.msk [vmem:[%s6529_s4 + $0x618] sm:$0xff] %vm3110_vm5, %v3077_v3  ;;  %v3079_v55 = vmul.f32 %v2730_v37, %v1711_v32  ;;  %v2830_v3 = vpop.permute.xlu1 %2829 }
 0x97a   :  { %v1712_v10 = vld [vmem:[%s6528_s3 + $0x630] sm:$0xff] }
 0x97b   :  { %3307 = vst.msk [vmem:[%s6529_s4 + $0x620] sm:$0xff] %vm3110_vm5, %v3078_v43  ;;  %v3080_v6 = vmul.f32 %v2735_v56, %v1712_v10  ;;  %v2835_v43 = vpop.permute.xlu0 %2834 }
 0x982   :  { %v1713_v46 = vld [vmem:[%s6528_s3 + $0x638] sm:$0xff] }
 0x983   :  { %3308 = vst.msk [vmem:[%s6529_s4 + $0x628] sm:$0xff] %vm3110_vm5, %v3079_v55  ;;  %v3081_v27 = vmul.f32 %v2740_v35, %v1713_v46  ;;  %v2840_v55 = vpop.permute.xlu1 %2839 }
 0x98a   :  { %v1714_v8 = vld [vmem:[%s6528_s3 + $0x640] sm:$0xff] }
 0x98b   :  { %3309 = vst.msk [vmem:[%s6529_s4 + $0x630] sm:$0xff] %vm3110_vm5, %v3080_v6  ;;  %v3082_v63 = vmul.f32 %v2745_v57, %v1714_v8  ;;  %v2845_v6 = vpop.permute.xlu0 %2844 }
 0x992   :  { %v1715_v16 = vld [vmem:[%s6528_s3 + $0x648] sm:$0xff] }
 0x993   :  { %3310 = vst.msk [vmem:[%s6529_s4 + $0x638] sm:$0xff] %vm3110_vm5, %v3081_v27  ;;  %v3083_v47 = vmul.f32 %v2750_v9, %v1715_v16  ;;  %v2850_v27 = vpop.permute.xlu1 %2849 }
 0x99a   :  { %v1716_v34 = vld [vmem:[%s6528_s3 + $0x650] sm:$0xff] }
 0x99b   :  { %3311 = vst.msk [vmem:[%s6529_s4 + $0x640] sm:$0xff] %vm3110_vm5, %v3082_v63  ;;  %v3084_v61 = vmul.f32 %v2755_v0, %v1716_v34  ;;  %v2855_v63 = vpop.permute.xlu0 %2854 }
 0x9a2   :  { %v1717_v51 = vld [vmem:[%s6528_s3 + $0x658] sm:$0xff] }
 0x9a3   :  { %3312 = vst.msk [vmem:[%s6529_s4 + $0x648] sm:$0xff] %vm3110_vm5, %v3083_v47  ;;  %v3085_v41 = vmul.f32 %v2760_v53, %v1717_v51  ;;  %v2860_v47 = vpop.permute.xlu1 %2859 }
 0x9aa   :  { %v1718_v30 = vld [vmem:[%s6528_s3 + $0x660] sm:$0xff] }
 0x9ab   :  { %3313 = vst.msk [vmem:[%s6529_s4 + $0x650] sm:$0xff] %vm3110_vm5, %v3084_v61  ;;  %v3086_v13 = vmul.f32 %v2765_v36, %v1718_v30  ;;  %v2865_v61 = vpop.permute.xlu0 %2864 }
 0x9b2   :  { %v1719_v49 = vld [vmem:[%s6528_s3 + $0x668] sm:$0xff] }
 0x9b3   :  { %3314 = vst.msk [vmem:[%s6529_s4 + $0x658] sm:$0xff] %vm3110_vm5, %v3085_v41  ;;  %v3087_v12 = vmul.f32 %v2770_v5, %v1719_v49  ;;  %v2870_v41 = vpop.permute.xlu1 %2869 }
 0x9ba   :  { %v1720_v52 = vld [vmem:[%s6528_s3 + $0x670] sm:$0xff] }
 0x9bb   :  { %3315 = vst.msk [vmem:[%s6529_s4 + $0x660] sm:$0xff] %vm3110_vm5, %v3086_v13  ;;  %v3088_v15 = vmul.f32 %v2775_v62, %v1720_v52  ;;  %v2875_v13 = vpop.permute.xlu0 %2874 }
 0x9c2   :  { %v1721_v60 = vld [vmem:[%s6528_s3 + $0x678] sm:$0xff] }
 0x9c3   :  { %3316 = vst.msk [vmem:[%s6529_s4 + $0x668] sm:$0xff] %vm3110_vm5, %v3087_v12  ;;  %v3089_v31 = vmul.f32 %v2780_v7, %v1721_v60  ;;  %v2880_v12 = vpop.permute.xlu1 %2879 }
 0x9ca   :  { %v1722_v40 = vld [vmem:[%s6528_s3 + $0x680] sm:$0xff] }
 0x9cb   :  { %3317 = vst.msk [vmem:[%s6529_s4 + $0x670] sm:$0xff] %vm3110_vm5, %v3088_v15  ;;  %v3090_v45 = vmul.f32 %v2785_v4, %v1722_v40 }
 0x9d2   :  { %v1723_v19 = vld [vmem:[%s6528_s3 + $0x688] sm:$0xff] }
 0x9d3   :  { %3318 = vst.msk [vmem:[%s6529_s4 + $0x678] sm:$0xff] %vm3110_vm5, %v3089_v31  ;;  %v3091_v39 = vmul.f32 %v2790_v48, %v1723_v19 }
 0x9da   :  { %v1724_v23 = vld [vmem:[%s6528_s3 + $0x690] sm:$0xff] }
 0x9db   :  { %3319 = vst.msk [vmem:[%s6529_s4 + $0x680] sm:$0xff] %vm3110_vm5, %v3090_v45  ;;  %v3092_v50 = vmul.f32 %v2795_v59, %v1724_v23 }
 0x9e2   :  { %v1725_v28 = vld [vmem:[%s6528_s3 + $0x698] sm:$0xff] }
 0x9e3   :  { %3320 = vst.msk [vmem:[%s6529_s4 + $0x688] sm:$0xff] %vm3110_vm5, %v3091_v39  ;;  %v3093_v54 = vmul.f32 %v2800_v11, %v1725_v28 }
 0x9ea   :  { %v1726_v20 = vld [vmem:[%s6528_s3 + $0x6a0] sm:$0xff] }
 0x9eb   :  { %3321 = vst.msk [vmem:[%s6529_s4 + $0x690] sm:$0xff] %vm3110_vm5, %v3092_v50  ;;  %v3094_v1 = vmul.f32 %v2805_v22, %v1726_v20 }
 0x9f2   :  { %v1727_v25 = vld [vmem:[%s6528_s3 + $0x6a8] sm:$0xff] }
 0x9f3   :  { %3322 = vst.msk [vmem:[%s6529_s4 + $0x698] sm:$0xff] %vm3110_vm5, %v3093_v54  ;;  %v3095_v2 = vmul.f32 %v2810_v14, %v1727_v25 }
 0x9fa   :  { %v1728_v24 = vld [vmem:[%s6528_s3 + $0x6b0] sm:$0xff] }
 0x9fb   :  { %3323 = vst.msk [vmem:[%s6529_s4 + $0x6a0] sm:$0xff] %vm3110_vm5, %v3094_v1  ;;  %v3096_v18 = vmul.f32 %v2815_v29, %v1728_v24 }
 0xa02   :  { %v1729_v21 = vld [vmem:[%s6528_s3 + $0x6b8] sm:$0xff] }
 0xa03   :  { %3324 = vst.msk [vmem:[%s6529_s4 + $0x6a8] sm:$0xff] %vm3110_vm5, %v3095_v2  ;;  %v3097_v44 = vmul.f32 %v2820_v33, %v1729_v21 }
 0xa0a   :  { %v1730_v17 = vld [vmem:[%s6528_s3 + $0x6c0] sm:$0xff] }
 0xa0b   :  { %3325 = vst.msk [vmem:[%s6529_s4 + $0x6b0] sm:$0xff] %vm3110_vm5, %v3096_v18  ;;  %v3098_v58 = vmul.f32 %v2825_v38, %v1730_v17 }
 0xa12   :  { %v1731_v26 = vld [vmem:[%s6528_s3 + $0x6c8] sm:$0xff] }
 0xa13   :  { %3326 = vst.msk [vmem:[%s6529_s4 + $0x6b8] sm:$0xff] %vm3110_vm5, %v3097_v44  ;;  %v3099_v32 = vmul.f32 %v2830_v3, %v1731_v26 }
 0xa1a   :  { %v1732_v42 = vld [vmem:[%s6528_s3 + $0x6d0] sm:$0xff] }
 0xa1b   :  { %3327 = vst.msk [vmem:[%s6529_s4 + $0x6c0] sm:$0xff] %vm3110_vm5, %v3098_v58  ;;  %v3100_v10 = vmul.f32 %v2835_v43, %v1732_v42 }
 0xa22   :  { %v1733_v37 = vld [vmem:[%s6528_s3 + $0x6d8] sm:$0xff] }
 0xa23   :  { %3328 = vst.msk [vmem:[%s6529_s4 + $0x6c8] sm:$0xff] %vm3110_vm5, %v3099_v32  ;;  %v3101_v46 = vmul.f32 %v2840_v55, %v1733_v37 }
 0xa2a   :  { %v1734_v56 = vld [vmem:[%s6528_s3 + $0x6e0] sm:$0xff] }
 0xa2b   :  { %3329 = vst.msk [vmem:[%s6529_s4 + $0x6d0] sm:$0xff] %vm3110_vm5, %v3100_v10  ;;  %v3102_v8 = vmul.f32 %v2845_v6, %v1734_v56 }
 0xa32   :  { %v1735_v35 = vld [vmem:[%s6528_s3 + $0x6e8] sm:$0xff] }
 0xa33   :  { %3330 = vst.msk [vmem:[%s6529_s4 + $0x6d8] sm:$0xff] %vm3110_vm5, %v3101_v46  ;;  %v3103_v16 = vmul.f32 %v2850_v27, %v1735_v35 }
 0xa3a   :  { %v1736_v57 = vld [vmem:[%s6528_s3 + $0x6f0] sm:$0xff] }
 0xa3b   :  { %3331 = vst.msk [vmem:[%s6529_s4 + $0x6e0] sm:$0xff] %vm3110_vm5, %v3102_v8  ;;  %v3104_v34 = vmul.f32 %v2855_v63, %v1736_v57 }
 0xa42   :  { %v1737_v9 = vld [vmem:[%s6528_s3 + $0x6f8] sm:$0xff] }
 0xa43   :  { %3332 = vst.msk [vmem:[%s6529_s4 + $0x6e8] sm:$0xff] %vm3110_vm5, %v3103_v16  ;;  %v3105_v51 = vmul.f32 %v2860_v47, %v1737_v9 }
 0xa4a   :  { %v1738_v0 = vld [vmem:[%s6528_s3 + $0x700] sm:$0xff] }
 0xa4b   :  { %3333 = vst.msk [vmem:[%s6529_s4 + $0x6f0] sm:$0xff] %vm3110_vm5, %v3104_v34  ;;  %v3106_v30 = vmul.f32 %v2865_v61, %v1738_v0 }
 0xa52   :  { %v1739_v53 = vld [vmem:[%s6528_s3 + $0x708] sm:$0xff] }
 0xa53   :  { %3334 = vst.msk [vmem:[%s6529_s4 + $0x6f8] sm:$0xff] %vm3110_vm5, %v3105_v51  ;;  %v3107_v49 = vmul.f32 %v2870_v41, %v1739_v53 }
 0xa5a   :  { %v1740_v36 = vld [vmem:[%s6528_s3 + $0x710] sm:$0xff] }
 0xa5b   :  { %3335 = vst.msk [vmem:[%s6529_s4 + $0x700] sm:$0xff] %vm3110_vm5, %v3106_v30  ;;  %v3108_v52 = vmul.f32 %v2875_v13, %v1740_v36 }
 0xa62   :  { %v1741_v5 = vld [vmem:[%s6528_s3 + $0x718] sm:$0xff] }
 0xa63   :  { %3336 = vst.msk [vmem:[%s6529_s4 + $0x708] sm:$0xff] %vm3110_vm5, %v3107_v49  ;;  %v3109_v60 = vmul.f32 %v2880_v12, %v1741_v5  ;;  %3337 = vst.msk [vmem:[%s6529_s4 + $0x710] sm:$0xff] %vm3110_vm5, %v3108_v52 }
 0xa65   :  { %3338 = vst.msk [vmem:[%s6529_s4 + $0x718] sm:$0xff] %vm3110_vm5, %v3109_v60 }

</bundles_post_ra>
